<compile_context>
chip_gen: v7x
topology: tpu7x:2x2x1
jax: 0.10.0
libtpu: 0.0.40
codegen_flags: <defaults>
</compile_context>

<pallas_src>
import jax
import jax.numpy as jnp
from jax.experimental import pallas as pl
from jax.experimental.pallas import tpu as pltpu


def cbow_kernel(idx_ref, emb_ref, wt_ref, b_ref, out_ref, *, vchunk):
    # idx_ref : (Bt, C)  int32   VMEM   context word indices
    # emb_ref : (V,  D)  f32     VMEM   full embedding table
    # wt_ref  : (D,  V)  f32     VMEM   pre-transposed linear weight
    # b_ref   : (1,  V)  f32     VMEM   linear bias
    # out_ref : (Bt, V)  f32     VMEM   log-probs (written once)
    Bt, C = idx_ref.shape
    V, D = emb_ref.shape

    idx = idx_ref[...]                                            # (Bt, C) int32

    # ---- gather + context-sum as chunked one-hot counts matmuls (MXU) ----
    # counts are accumulated in-register (int32), cast to f32 once per chunk.
    chunk = min(vchunk, V)
    lane_iota = jax.lax.broadcasted_iota(jnp.int32, (Bt, chunk), 1)  # 0..chunk-1
    summed = jnp.zeros((Bt, D), jnp.float32)
    for ci in range(V // chunk):                                  # static, small
        base = ci * chunk
        local = idx - base                                        # (Bt, C)
        counts = jnp.zeros((Bt, chunk), jnp.int32)
        for c in range(C):                                        # static, small C
            counts = counts + (lane_iota == local[:, c:c + 1]).astype(jnp.int32)
        summed = summed + jnp.dot(counts.astype(jnp.float32),
                                  emb_ref[pl.ds(base, chunk), :],
                                  preferred_element_type=jnp.float32)

    # ---- linear layer over the FULL vocab in one matmul (MXU) ----
    logits = jnp.dot(summed, wt_ref[...],
                     preferred_element_type=jnp.float32) + b_ref[...]   # (Bt, V)

    # ---- log-softmax, single pass, single store ----
    m = jnp.max(logits, axis=-1, keepdims=True)
    lse = m + jnp.log(jnp.sum(jnp.exp(logits - m), axis=-1, keepdims=True))
    out_ref[...] = logits - lse


def cbow_forward(word_indices, emb_weight, lin_weight_t, lin_bias,
                 *, block_b=128, vchunk=256):
    """word_indices: (B, C) int32; emb_weight: (V, D); lin_weight_t: (D, V); lin_bias: (V,)."""
    B, C = word_indices.shape
    V, D = emb_weight.shape
    bt = min(block_b, B)
    assert B % bt == 0, "demo assumes batch divisible by the batch tile"
    assert V % 128 == 0, "demo assumes lane-dense vocab (multiple of 128)"
    bias2d = lin_bias.reshape(1, V)

    kernel = lambda *refs: cbow_kernel(*refs, vchunk=vchunk)

    return pl.pallas_call(
        kernel,
        out_shape=jax.ShapeDtypeStruct((B, V), jnp.float32),
        grid_spec=pltpu.PrefetchScalarGridSpec(
            num_scalar_prefetch=0,
            grid=(B // bt,),
            in_specs=[
                pl.BlockSpec((bt, C), lambda i: (i, 0)),   # context indices
                pl.BlockSpec((V, D), lambda i: (0, 0)),    # full embedding table
                pl.BlockSpec((D, V), lambda i: (0, 0)),    # pre-transposed W
                pl.BlockSpec((1, V), lambda i: (0, 0)),    # bias
            ],
            out_specs=pl.BlockSpec((bt, V), lambda i: (i, 0)),
        ),
        compiler_params=pltpu.CompilerParams(
            dimension_semantics=("parallel",),
        ),
    )(word_indices.astype(jnp.int32), emb_weight, lin_weight_t, bias2d)


def cbow_reference(word_indices, emb_weight, lin_weight, lin_bias):
    emb = jnp.take(emb_weight, word_indices, axis=0)        # (B, C, D)
    summed = jnp.sum(emb, axis=1)                           # (B, D)
    logits = summed @ lin_weight.T + lin_bias               # (B, V)
    return jax.nn.log_softmax(logits, axis=1)


if __name__ == "__main__":
    vocab_size = 512
    embedding_dim = 128
    batch = 256          # two 128-row batch tiles -> grid=(2,) "parallel"
    context = 8

    key = jax.random.PRNGKey(0)
    k_emb, k_w, k_b, k_idx = jax.random.split(key, 4)

    # nn.Embedding weight: uniform(-1, 1)
    emb_weight = jax.random.uniform(k_emb, (vocab_size, embedding_dim),
                                    minval=-1.0, maxval=1.0, dtype=jnp.float32)
    # nn.Linear default init: uniform(-1/sqrt(D), 1/sqrt(D))
    bound = 1.0 / (embedding_dim ** 0.5)
    lin_weight = jax.random.uniform(k_w, (vocab_size, embedding_dim),
                                    minval=-bound, maxval=bound, dtype=jnp.float32)
    lin_bias = jax.random.uniform(k_b, (vocab_size,),
                                  minval=-bound, maxval=bound, dtype=jnp.float32)

    # Pre-transpose the linear weight ONCE at parameter setup (not in the hot path).
    lin_weight_t = jnp.asarray(lin_weight.T)                # (D, V)

    word_indices = jax.random.randint(k_idx, (batch, context), 0, vocab_size,
                                      dtype=jnp.int32)

    out = cbow_forward(word_indices, emb_weight, lin_weight_t, lin_bias)
    out = jax.block_until_ready(out)

    ref = cbow_reference(word_indices, emb_weight, lin_weight, lin_bias)
    assert out.shape == (batch, vocab_size)
    assert jnp.allclose(out, ref, atol=1e-4, rtol=1e-4), "mismatch vs reference"

    print("KERNEL_OK")
</pallas_src>

<mosaic_0001>
module attributes {stable_mosaic.version = 11 : i64} {
  func.func @_lambda_(%arg0: i32, %arg1: memref<128x8xi32, #tpu.memory_space<vmem>>, %arg2: memref<512x128xf32, #tpu.memory_space<vmem>>, %arg3: memref<128x512xf32, #tpu.memory_space<vmem>>, %arg4: memref<1x512xf32, #tpu.memory_space<vmem>>, %arg5: memref<128x512xf32, #tpu.memory_space<vmem>>) attributes {dimension_semantics = [#tpu.dimension_semantics<parallel>], iteration_bounds = array<i64: 2>, scalar_prefetch = 0 : i64, scratch_operands = 0 : i64, tpu.core_type = #tpu.core_type<tc>, window_params = [{transform_indices = @transform_0, window_bounds = array<i64: 128, 8>}, {pipeline_mode = #tpu.pipeline_mode<synchronous>, transform_indices = @transform_1, window_bounds = array<i64: 512, 128>}, {pipeline_mode = #tpu.pipeline_mode<synchronous>, transform_indices = @transform_2, window_bounds = array<i64: 128, 512>}, {pipeline_mode = #tpu.pipeline_mode<synchronous>, transform_indices = @transform_3, window_bounds = array<i64: 1, 512>}, {transform_indices = @transform_4, window_bounds = array<i64: 128, 512>}]} {
    %c0 = arith.constant 0 : index
    %c0_0 = arith.constant 0 : index
    %0 = vector.load %arg1[%c0, %c0_0] : memref<128x8xi32, #tpu.memory_space<vmem>>, vector<128x8xi32>
    %1 = tpu.iota {dimensions = array<i32: 1>} : vector<128x256xi32>
    %cst = arith.constant 0.000000e+00 : f32
    %2 = vector.broadcast %cst : f32 to vector<128x128xf32>
    %c0_i32 = arith.constant 0 : i32
    %3 = vector.broadcast %c0_i32 : i32 to vector<128x8xi32>
    %4 = arith.subi %0, %3 : vector<128x8xi32>
    %c0_i32_1 = arith.constant 0 : i32
    %5 = vector.broadcast %c0_i32_1 : i32 to vector<128x256xi32>
    %6 = vector.extract_strided_slice %4 {offsets = [0, 0], sizes = [128, 1], strides = [1, 1]} : vector<128x8xi32> to vector<128x1xi32>
    %7 = vector.broadcast %6 : vector<128x1xi32> to vector<128x256xi32>
    %8 = arith.cmpi eq, %1, %7 : vector<128x256xi32>
    %9 = arith.extui %8 : vector<128x256xi1> to vector<128x256xi32>
    %10 = arith.addi %5, %9 : vector<128x256xi32>
    %11 = vector.extract_strided_slice %4 {offsets = [0, 1], sizes = [128, 1], strides = [1, 1]} : vector<128x8xi32> to vector<128x1xi32>
    %12 = vector.broadcast %11 : vector<128x1xi32> to vector<128x256xi32>
    %13 = arith.cmpi eq, %1, %12 : vector<128x256xi32>
    %14 = arith.extui %13 : vector<128x256xi1> to vector<128x256xi32>
    %15 = arith.addi %10, %14 : vector<128x256xi32>
    %16 = vector.extract_strided_slice %4 {offsets = [0, 2], sizes = [128, 1], strides = [1, 1]} : vector<128x8xi32> to vector<128x1xi32>
    %17 = vector.broadcast %16 : vector<128x1xi32> to vector<128x256xi32>
    %18 = arith.cmpi eq, %1, %17 : vector<128x256xi32>
    %19 = arith.extui %18 : vector<128x256xi1> to vector<128x256xi32>
    %20 = arith.addi %15, %19 : vector<128x256xi32>
    %21 = vector.extract_strided_slice %4 {offsets = [0, 3], sizes = [128, 1], strides = [1, 1]} : vector<128x8xi32> to vector<128x1xi32>
    %22 = vector.broadcast %21 : vector<128x1xi32> to vector<128x256xi32>
    %23 = arith.cmpi eq, %1, %22 : vector<128x256xi32>
    %24 = arith.extui %23 : vector<128x256xi1> to vector<128x256xi32>
    %25 = arith.addi %20, %24 : vector<128x256xi32>
    %26 = vector.extract_strided_slice %4 {offsets = [0, 4], sizes = [128, 1], strides = [1, 1]} : vector<128x8xi32> to vector<128x1xi32>
    %27 = vector.broadcast %26 : vector<128x1xi32> to vector<128x256xi32>
    %28 = arith.cmpi eq, %1, %27 : vector<128x256xi32>
    %29 = arith.extui %28 : vector<128x256xi1> to vector<128x256xi32>
    %30 = arith.addi %25, %29 : vector<128x256xi32>
    %31 = vector.extract_strided_slice %4 {offsets = [0, 5], sizes = [128, 1], strides = [1, 1]} : vector<128x8xi32> to vector<128x1xi32>
    %32 = vector.broadcast %31 : vector<128x1xi32> to vector<128x256xi32>
    %33 = arith.cmpi eq, %1, %32 : vector<128x256xi32>
    %34 = arith.extui %33 : vector<128x256xi1> to vector<128x256xi32>
    %35 = arith.addi %30, %34 : vector<128x256xi32>
    %36 = vector.extract_strided_slice %4 {offsets = [0, 6], sizes = [128, 1], strides = [1, 1]} : vector<128x8xi32> to vector<128x1xi32>
    %37 = vector.broadcast %36 : vector<128x1xi32> to vector<128x256xi32>
    %38 = arith.cmpi eq, %1, %37 : vector<128x256xi32>
    %39 = arith.extui %38 : vector<128x256xi1> to vector<128x256xi32>
    %40 = arith.addi %35, %39 : vector<128x256xi32>
    %41 = vector.extract_strided_slice %4 {offsets = [0, 7], sizes = [128, 1], strides = [1, 1]} : vector<128x8xi32> to vector<128x1xi32>
    %42 = vector.broadcast %41 : vector<128x1xi32> to vector<128x256xi32>
    %43 = arith.cmpi eq, %1, %42 : vector<128x256xi32>
    %44 = arith.extui %43 : vector<128x256xi1> to vector<128x256xi32>
    %45 = arith.addi %40, %44 : vector<128x256xi32>
    %46 = arith.sitofp %45 : vector<128x256xi32> to vector<128x256xf32>
    %c0_2 = arith.constant 0 : index
    %c0_3 = arith.constant 0 : index
    %47 = vector.load %arg2[%c0_2, %c0_3] : memref<512x128xf32, #tpu.memory_space<vmem>>, vector<256x128xf32>
    %cst_4 = arith.constant dense<0.000000e+00> : vector<128x128xf32>
    %48 = tpu.matmul %46, %47, %cst_4 {dimension_numbers = #tpu.dot_dimension_numbers<[1], [0], [0], [1], [0, 0, 1, 1], [], []>} : vector<128x256xf32>, vector<256x128xf32>, vector<128x128xf32> -> vector<128x128xf32>
    %49 = arith.addf %2, %48 : vector<128x128xf32>
    %c256_i32 = arith.constant 256 : i32
    %50 = vector.broadcast %c256_i32 : i32 to vector<128x8xi32>
    %51 = arith.subi %0, %50 : vector<128x8xi32>
    %c0_i32_5 = arith.constant 0 : i32
    %52 = vector.broadcast %c0_i32_5 : i32 to vector<128x256xi32>
    %53 = vector.extract_strided_slice %51 {offsets = [0, 0], sizes = [128, 1], strides = [1, 1]} : vector<128x8xi32> to vector<128x1xi32>
    %54 = vector.broadcast %53 : vector<128x1xi32> to vector<128x256xi32>
    %55 = arith.cmpi eq, %1, %54 : vector<128x256xi32>
    %56 = arith.extui %55 : vector<128x256xi1> to vector<128x256xi32>
    %57 = arith.addi %52, %56 : vector<128x256xi32>
    %58 = vector.extract_strided_slice %51 {offsets = [0, 1], sizes = [128, 1], strides = [1, 1]} : vector<128x8xi32> to vector<128x1xi32>
    %59 = vector.broadcast %58 : vector<128x1xi32> to vector<128x256xi32>
    %60 = arith.cmpi eq, %1, %59 : vector<128x256xi32>
    %61 = arith.extui %60 : vector<128x256xi1> to vector<128x256xi32>
    %62 = arith.addi %57, %61 : vector<128x256xi32>
    %63 = vector.extract_strided_slice %51 {offsets = [0, 2], sizes = [128, 1], strides = [1, 1]} : vector<128x8xi32> to vector<128x1xi32>
    %64 = vector.broadcast %63 : vector<128x1xi32> to vector<128x256xi32>
    %65 = arith.cmpi eq, %1, %64 : vector<128x256xi32>
    %66 = arith.extui %65 : vector<128x256xi1> to vector<128x256xi32>
    %67 = arith.addi %62, %66 : vector<128x256xi32>
    %68 = vector.extract_strided_slice %51 {offsets = [0, 3], sizes = [128, 1], strides = [1, 1]} : vector<128x8xi32> to vector<128x1xi32>
    %69 = vector.broadcast %68 : vector<128x1xi32> to vector<128x256xi32>
    %70 = arith.cmpi eq, %1, %69 : vector<128x256xi32>
    %71 = arith.extui %70 : vector<128x256xi1> to vector<128x256xi32>
    %72 = arith.addi %67, %71 : vector<128x256xi32>
    %73 = vector.extract_strided_slice %51 {offsets = [0, 4], sizes = [128, 1], strides = [1, 1]} : vector<128x8xi32> to vector<128x1xi32>
    %74 = vector.broadcast %73 : vector<128x1xi32> to vector<128x256xi32>
    %75 = arith.cmpi eq, %1, %74 : vector<128x256xi32>
    %76 = arith.extui %75 : vector<128x256xi1> to vector<128x256xi32>
    %77 = arith.addi %72, %76 : vector<128x256xi32>
    %78 = vector.extract_strided_slice %51 {offsets = [0, 5], sizes = [128, 1], strides = [1, 1]} : vector<128x8xi32> to vector<128x1xi32>
    %79 = vector.broadcast %78 : vector<128x1xi32> to vector<128x256xi32>
    %80 = arith.cmpi eq, %1, %79 : vector<128x256xi32>
    %81 = arith.extui %80 : vector<128x256xi1> to vector<128x256xi32>
    %82 = arith.addi %77, %81 : vector<128x256xi32>
    %83 = vector.extract_strided_slice %51 {offsets = [0, 6], sizes = [128, 1], strides = [1, 1]} : vector<128x8xi32> to vector<128x1xi32>
    %84 = vector.broadcast %83 : vector<128x1xi32> to vector<128x256xi32>
    %85 = arith.cmpi eq, %1, %84 : vector<128x256xi32>
    %86 = arith.extui %85 : vector<128x256xi1> to vector<128x256xi32>
    %87 = arith.addi %82, %86 : vector<128x256xi32>
    %88 = vector.extract_strided_slice %51 {offsets = [0, 7], sizes = [128, 1], strides = [1, 1]} : vector<128x8xi32> to vector<128x1xi32>
    %89 = vector.broadcast %88 : vector<128x1xi32> to vector<128x256xi32>
    %90 = arith.cmpi eq, %1, %89 : vector<128x256xi32>
    %91 = arith.extui %90 : vector<128x256xi1> to vector<128x256xi32>
    %92 = arith.addi %87, %91 : vector<128x256xi32>
    %93 = arith.sitofp %92 : vector<128x256xi32> to vector<128x256xf32>
    %c256 = arith.constant 256 : index
    %c0_6 = arith.constant 0 : index
    %94 = vector.load %arg2[%c256, %c0_6] : memref<512x128xf32, #tpu.memory_space<vmem>>, vector<256x128xf32>
    %cst_7 = arith.constant dense<0.000000e+00> : vector<128x128xf32>
    %95 = tpu.matmul %93, %94, %cst_7 {dimension_numbers = #tpu.dot_dimension_numbers<[1], [0], [0], [1], [0, 0, 1, 1], [], []>} : vector<128x256xf32>, vector<256x128xf32>, vector<128x128xf32> -> vector<128x128xf32>
    %96 = arith.addf %49, %95 : vector<128x128xf32>
    %c0_8 = arith.constant 0 : index
    %c0_9 = arith.constant 0 : index
    %97 = vector.load %arg3[%c0_8, %c0_9] : memref<128x512xf32, #tpu.memory_space<vmem>>, vector<128x512xf32>
    %cst_10 = arith.constant dense<0.000000e+00> : vector<128x512xf32>
    %98 = tpu.matmul %96, %97, %cst_10 {dimension_numbers = #tpu.dot_dimension_numbers<[1], [0], [0], [1], [0, 0, 1, 1], [], []>} : vector<128x128xf32>, vector<128x512xf32>, vector<128x512xf32> -> vector<128x512xf32>
    %c0_11 = arith.constant 0 : index
    %c0_12 = arith.constant 0 : index
    %99 = vector.load %arg4[%c0_11, %c0_12] : memref<1x512xf32, #tpu.memory_space<vmem>>, vector<1x512xf32>
    %100 = vector.broadcast %99 : vector<1x512xf32> to vector<128x512xf32>
    %101 = arith.addf %98, %100 : vector<128x512xf32>
    %cst_13 = arith.constant dense<0xFF800000> : vector<128xf32>
    %102 = vector.multi_reduction <maximumf>, %101, %cst_13 [1] : vector<128x512xf32> to vector<128xf32>
    %103 = vector.shape_cast %102 : vector<128xf32> to vector<128x1xf32>
    %104 = vector.broadcast %103 : vector<128x1xf32> to vector<128x512xf32>
    %105 = arith.subf %101, %104 : vector<128x512xf32>
    %106 = math.exp %105 : vector<128x512xf32>
    %cst_14 = arith.constant dense<0.000000e+00> : vector<128xf32>
    %107 = vector.multi_reduction <add>, %106, %cst_14 [1] : vector<128x512xf32> to vector<128xf32>
    %108 = vector.shape_cast %107 : vector<128xf32> to vector<128x1xf32>
    %109 = math.log %108 : vector<128x1xf32>
    %110 = arith.addf %103, %109 : vector<128x1xf32>
    %111 = vector.broadcast %110 : vector<128x1xf32> to vector<128x512xf32>
    %112 = arith.subf %101, %111 : vector<128x512xf32>
    %c0_15 = arith.constant 0 : index
    %c0_16 = arith.constant 0 : index
    %113 = vector.load %arg5[%c0_15, %c0_16] : memref<128x512xf32, #tpu.memory_space<vmem>>, vector<128x512xf32>
    tpu.vector_store %arg5[%c0_15, %c0_16], %112 {strides = array<i32>} : memref<128x512xf32, #tpu.memory_space<vmem>>, vector<128x512xf32>,
    return
  }
  func.func @transform_0(%arg0: i32) -> (i32, i32) {
    %c0_i32 = arith.constant 0 : i32
    %c0_i32_0 = arith.constant 0 : i32
    return %arg0, %c0_i32 : i32, i32
  }
  func.func @transform_1(%arg0: i32) -> (i32, i32) {
    %c0_i32 = arith.constant 0 : i32
    %c0_i32_0 = arith.constant 0 : i32
    %c0_i32_1 = arith.constant 0 : i32
    return %c0_i32, %c0_i32_0 : i32, i32
  }
  func.func @transform_2(%arg0: i32) -> (i32, i32) {
    %c0_i32 = arith.constant 0 : i32
    %c0_i32_0 = arith.constant 0 : i32
    %c0_i32_1 = arith.constant 0 : i32
    return %c0_i32, %c0_i32_0 : i32, i32
  }
  func.func @transform_3(%arg0: i32) -> (i32, i32) {
    %c0_i32 = arith.constant 0 : i32
    %c0_i32_0 = arith.constant 0 : i32
    %c0_i32_1 = arith.constant 0 : i32
    return %c0_i32, %c0_i32_0 : i32, i32
  }
  func.func @transform_4(%arg0: i32) -> (i32, i32) {
    %c0_i32 = arith.constant 0 : i32
    %c0_i32_0 = arith.constant 0 : i32
    return %arg0, %c0_i32 : i32, i32
  }
}

</mosaic_0001>

<bundles_post_ra>
// kernel: tpu_custom_call.1
= control target key start
LH: loop header
LB: loop body
LE: loop exit
PB: predicated region body
PF: predicated region fallthrough
CT: control target
= control target key end

     0   :  { %9 = vsyncpa [#allocation3], 0  ;;  %s8575_s0 = inlined_call_operand.vmem [shape: s32[256,8], index: 0, kind: input, shape index: {}]   ;;  %s8576_s1 = inlined_call_operand.hbm [shape: f32[512,128], index: 1, kind: input, shape index: {}]   ;;  %s8577_s2 = inlined_call_operand.hbm [shape: f32[128,512], index: 2, kind: input, shape index: {}]   ;;  %s8578_s3 = inlined_call_operand.vmem [shape: f32[1,512], index: 3, kind: input, shape index: {}]   ;;  %s8579_s4 = inlined_call_operand.hbm [shape: f32[256,512], index: 4, kind: output, shape index: {}]  }
   0x1   :  { %10 = vsyncpa [#allocation6], 0 }
   0x2   :  { %11 = vsyncpa [#allocation4], 0 }
   0x3   :  { %13 = vsyncpa [#allocation4 + $0x1], 0  ;;  %s4826_s15 = smov 0   ;;  %s4828_s16 = smov 0  }
   0x4   :  { %s4830_s17 = smov 0   ;;  %s4832_s18 = smov 0  }
   0x5 LB: > { %s4847_s19 = sadd.s32 4294967295, %s4781_s18   ;;  %s3957_s20 = sadd.s32 4294967294, %s4781_s18   ;;  %s4781_s18 = sphi %s4832_s18, %s9089_s18   ;;  %s4777_s17 = sphi %s4830_s17, %s9088_s17   ;;  %s4773_s16 = sphi %s4828_s16, %s9087_s16   ;;  %s4769_s15 = sphi %s4826_s15, %s9086_s15  }
   0x6   : > { %s4851_s21 = sadd.s32 1, %s4781_s18   ;;  %s115_s22 = sadd.s32 1, %s4777_s17 }
   0x7   : > { %s112_s23 = ssub.s32 %s4781_s18, %s4851_s21  ;;  %p125_p0 = scmp.ne.s32.totalorder %s4777_s17, %s4773_s16 }
   0x8   : > { %p113_p1 = scmp.eq.s32.totalorder %s112_s23, 0  ;;  %p126_p2 = scmp.eq.s32.totalorder %s4847_s19, 1 }
   0x9   : > { %p131_p3 = scmp.ne.s32.totalorder %s4773_s16, %s4769_s15  ;;  %p132_p4 = scmp.eq.s32.totalorder %s3957_s20, 1 }
   0xa   : > { %s4862_s24 = scalar_select %p113_p1, %s4777_s17, %s115_s22  }
   0xb   : > { %p4864_p5 = por %p126_p2, %p125_p0  ;;  %p4868_p6 = por %p132_p4, %p131_p3 }
   0xc   : > { %p3958_p7 = scmp.ge.s32.totalorder %s4781_s18, 1  ;;  %p139_p8 = scmp.lt.s32.totalorder %s4781_s18, 3 }
   0xd   : > { %s8765_s25 = scalar_select %p4864_p5, 1, 0 }
   0xe   : > { %s8766_s26 = scalar_select %p4868_p6, 1, 0 }
   0xf   : > { %p8580_p9 = scmp.eq.s32.totalorder %s4847_s19, 0  ;;  %p4875_p10 = pnand %p3958_p7, %p139_p8 }
  0x10   : > { %s4783_s28 = smov [#allocation2]   ;;  %s4784_s5 = smov [#allocation5]  }
  0x11   : > { %s8767_s27 = scalar_select %p4875_p10, 1, 0 }
  0x12   : > { %s151_s29 = sshll.u32 %s4783_s28, 4  ;;  %p4290_p11 = pneg %p4875_p10  ;;  %s152_s29 = int_to_ptr.vmem [resolvable:$true] %s151_s29 }
  0x13   : > { %s164_s6 = sshll.u32 %s4784_s5, 4  ;;  %s4655_s9 = scalar_lea.hbm %s8576_s1, 8192  ;;  %s4887_s6 = int_to_ptr.vmem [resolvable:$true] %s164_s6 }
  0x14   : > { %p4883_p12 = pnand %p8580_p9, %p4290_p11  ;;  %p4656_p13 = scmp.ne.s32.totalorder %s8576_s1, %s4655_s9 }
  0x15   : > { %p4662_p3 = scmp.lt.u32.totalorder %s4655_s9, %s8576_s1 }
  0x16   : > { %p4657_p0 = pneg %p4883_p12 }
  0x18   : > { %p4658_p1 = pnand %p4657_p0, %p4656_p13 }
  0x1a   : > { %p4659_p2 = pneg %p4658_p1 }
  0x1c   : > { %p4664_p4 = pnand %p4662_p3, %p4659_p2 }
  0x1e   : > { %4667 = shalt.err (!%p4664_p4)
}
  0x1f   : > { %s4668_s14 = scalar_lea.vmem %s152_s29, 8192  ;;  %p4676_p9 = scmp.lt.s32.totalorder %s152_s29, %s152_s29 }
  0x20   : > { %p4669_p7 = scmp.ne.s32.totalorder %s152_s29, %s4668_s14  ;;  %p4677_p6 = scmp.lt.s32.totalorder %s4668_s14, %s4668_s14 }
  0x22   : > { %p4671_p8 = pnand %p4669_p7, %p4657_p0  ;;  %p4678_p5 = por %p4677_p6, %p4676_p9 }
  0x24   : > { %p4672_p11 = pneg %p4671_p8 }
  0x26   : > { %p4679_p10 = pnand %p4678_p5, %p4672_p11 }
  0x28   : > { %4682 = shalt.err (!%p4679_p10)
}
  0x29   : > { %s4785_s20 = smov 128   ;;  %s4786_s22 = smov 8  }
  0x2a   : > { %4293 = dma.hbm_to_vmem [thread:$0]  (!%p4883_p12), %s8576_s1, 8192, %s152_s29, [#allocation3], %s4785_s20, %s4785_s20, %s4786_s22  }
  0x2b   : > { %s4683_s8 = scalar_lea.hbm %s8577_s2, 8192 }
  0x2c   : > { %p4684_p13 = scmp.ne.s32.totalorder %s8577_s2, %s4683_s8  ;;  %p4690_p9 = scmp.lt.u32.totalorder %s4683_s8, %s8577_s2 }
  0x2e   : > { %p4686_p5 = pnand %p4684_p13, %p4657_p0 }
  0x30   : > { %p4687_p6 = pneg %p4686_p5 }
  0x32   : > { %p4692_p10 = pnand %p4690_p9, %p4687_p6 }
  0x34   : > { %4695 = shalt.err (!%p4692_p10)
}
  0x35   : > { %s4696_s29 = scalar_lea.vmem %s4887_s6, 8192  ;;  %p4704_p4 = scmp.lt.s32.totalorder %s4887_s6, %s4887_s6 }
  0x36   : > { %p4697_p1 = scmp.ne.s32.totalorder %s4887_s6, %s4696_s29  ;;  %p4705_p7 = scmp.lt.s32.totalorder %s4696_s29, %s4696_s29 }
  0x38   : > { %p4699_p2 = pnand %p4697_p1, %p4657_p0  ;;  %p4706_p8 = por %p4705_p7, %p4704_p4 }
  0x3a   : > { %p4700_p3 = pneg %p4699_p2 }
  0x3c   : > { %p4707_p11 = pnand %p4706_p8, %p4700_p3 }
  0x3e   : > { %4710 = shalt.err (!%p4707_p11)
}
  0x3f   : > { %s4787_s13 = smov 512   ;;  %s4788_s14 = smov 32  }
  0x40   : > { %4296 = dma.hbm_to_vmem [thread:$0]  (!%p4883_p12), %s8577_s2, 8192, %s4887_s6, [#allocation6], %s4787_s13, %s4787_s13, %s4788_s14  }
  0x41   : > { %p8769_p13 = scmp.ne.s32.totalorder %s8767_s27, 0 }
  0x43   : > { %192 = sbr.rel (%p8769_p13) target bundleno = 1723 (0x6bb), region = 36 }
  0x4a   : > { %p8770_p0 = scmp.eq.s32.totalorder %s4847_s19, 0 }
  0x4c   : > { %4756 = dma.done.wait (%p8770_p0), [#allocation3], 8192   ;;  %p8771_p5 = pmov %p8770_p0 }
  0x4d   : > { %p8772_p6 = pmov %p8770_p0 }
  0x4e   : > { %4758 = vsyncadd (%p8771_p5), [#allocation3], 4294959104 }
  0x4f   : > { %4760 = dma.done.wait (%p8772_p6), [#allocation6], 8192   ;;  %p8773_p9 = pmov %p8770_p0 }
  0x50   : > { %s3966_s30 = sshll.u32 %s4847_s19, 4  ;;  %v8592_v0 = vmov 1   ;;  %v8585_v1 = vmov 0   ;;  %v8598_v19 = vmov 2   ;;  %v8583_v24 = vmov 5   ;;  %s219_s8 = sand.u32 1, %s4773_s16  }
  0x51   : > { %4762 = vsyncadd (%p8773_p9), [#allocation6], 4294959104  ;;  %4356 = vset.pattern.permute.xlu0 %v8592_v0  ;;  %4355 = vset.pattern.permute.xlu1 %v8585_v1  ;;  %p223_p12 = scmp.lt.s32.totalorder %s3966_s30, 31  ;;  %v8587_v25 = vmov 3   ;;  %v8589_v31 = vmov 4   ;;  %s3965_s9 = sshll.u32 %s219_s8, 9 }
  0x52   : > { %s8387_s10 = scalar_lea.vmem [#allocation7], %s3965_s9  ;;  %s3991_s11 = sshll.u32 %s4847_s19, 13 }
  0x53   : > { %s9091_s30 = smov (!%p223_p12, %s3966_s30), 31  ;;  %s3873_s12 = sshll.u32 %s8387_s10, 4  ;;  %s8522_s12 = int_to_ptr.vmem [resolvable:$true] %s3873_s12 }
  0x54   : > { %s3967_s27 = sshll.u32 %s9091_s30, 3  ;;  %s8520_s14 = scalar_lea.hbm %s8579_s4, %s3991_s11 }
  0x55   : > { %s4952_s28 = scalar_lea.vmem %s8575_s0, %s3967_s27  ;;  %s8534_s19 = scalar_lea.sflag [#allocation4], %s219_s8 }
  0x56   : > { %v4955_v2 = vld [vmem:[%s4952_s28 + $0x10] sm:$0xff]  ;;  %v4958_v3 = vld [vmem:[%s4952_s28] sm:$0xff]  ;;  %v4963_v4 = vld [vmem:[%s4952_s28 + $0x18] sm:$0xff]  ;;  %s4711_s20 = scalar_lea.vmem %s8522_s12, 8192  ;;  %p9084_p1 = scmp.ne.s32.totalorder %s8765_s25, 0 }
  0x57   : > { %255 = vperm.xlu1 %4355, %v4955_v2   ;;  %361 = vperm.xlu0 %4356, %v4958_v3   ;;  %v4968_v5 = vld [vmem:[%s4952_s28 + $0x28] sm:$0xff]  ;;  %v4973_v6 = vld [vmem:[%s4952_s28 + $0x38] sm:$0xff]  ;;  %v5007_v12 = vld [vmem:[%s4952_s28 + $0x20] sm:$0xff]  ;;  %v5037_v18 = vadd.s32 4294967040, %v4958_v3  ;;  %v5047_v21 = vadd.s32 4294967040, %v4955_v2  ;;  %v5052_v22 = vadd.s32 4294967040, %v4963_v4  ;;  %p4712_p10 = scmp.ne.s32.totalorder %s8522_s12, %s4711_s20 }
  0x58   : > { %v4978_v7 = vld [vmem:[%s4952_s28 + $0x48] sm:$0xff]  ;;  %v4983_v8 = vld [vmem:[%s4952_s28 + $0x58] sm:$0xff]  ;;  %v5012_v13 = vld [vmem:[%s4952_s28 + $0x30] sm:$0xff]  ;;  %v5057_v23 = vadd.s32 4294967040, %v4968_v5  ;;  %v5188_v60 = vadd.s32 4294967040, %v4973_v6  ;;  %s4798_s22 = smov [#allocation7]  }
  0x59   : > { %v4988_v9 = vld [vmem:[%s4952_s28 + $0x68] sm:$0xff]  ;;  %v4993_v10 = vld [vmem:[%s4952_s28 + $0x78] sm:$0xff]  ;;  %v5017_v14 = vld [vmem:[%s4952_s28 + $0x40] sm:$0xff]  ;;  %v5178_v57 = vadd.s32 4294967040, %v5012_v13  ;;  %p4713_p2 = pnand %p4712_p10, %p9084_p1  ;;  %s4715_s30 = sshll.u32 %s4798_s22, 4  ;;  %s4716_s30 = int_to_ptr.vmem [resolvable:$false] %s4715_s30 }
  0x5a   : > { %v4998_v11 = vld [vmem:[%s4952_s28 + $0x8] sm:$0xff]  ;;  %v5022_v15 = vld [vmem:[%s4952_s28 + $0x50] sm:$0xff]  ;;  %v5027_v16 = vld [vmem:[%s4952_s28 + $0x60] sm:$0xff]  ;;  %v5198_v63 = vadd.s32 4294967040, %v5017_v14  ;;  %s4717_s27 = scalar_lea.vmem %s4716_s30, 16384  ;;  %p4718_p4 = scmp.lt.s32.totalorder %s8522_s12, %s4716_s30 }
  0x5b   : > { %258 = vperm.xlu1 %4355, %v4963_v4   ;;  %370 = vperm.xlu0 %4356, %v4963_v4   ;;  %v5032_v17 = vld [vmem:[%s4952_s28 + $0x70] sm:$0xff]  ;;  %v5042_v20 = vadd.s32 4294967040, %v4998_v11  ;;  %p4714_p3 = pneg %p4713_p2  ;;  %p4719_p7 = scmp.lt.s32.totalorder %s4717_s27, %s4711_s20 }
  0x5d   : > { %p4720_p8 = por %p4719_p7, %p4718_p4 }
  0x5f   : > { %264 = vperm.xlu1 %4355, %v4968_v5   ;;  %376 = vperm.xlu0 %4356, %v4968_v5   ;;  %p4721_p11 = pnand %p4720_p8, %p4714_p3 }
  0x63   : > { %270 = vperm.xlu1 %4355, %v4973_v6   ;;  %382 = vperm.xlu0 %4356, %v4973_v6  }
  0x67   : > { %276 = vperm.xlu1 %4355, %v4978_v7   ;;  %388 = vperm.xlu0 %4356, %v4978_v7  }
  0x6b   : > { %282 = vperm.xlu1 %4355, %v4983_v8   ;;  %394 = vperm.xlu0 %4356, %v4983_v8  }
  0x6f   : > { %288 = vperm.xlu1 %4355, %v4988_v9   ;;  %400 = vperm.xlu0 %4356, %v4988_v9  }
  0x73   : > { %294 = vperm.xlu1 %4355, %v4993_v10   ;;  %406 = vperm.xlu0 %4356, %v4993_v10  }
  0x77   : > { %4357 = vset.pattern.permute.xlu1 %v8592_v0  ;;  %4358 = vset.pattern.permute.xlu0 %v8585_v1 }
  0x78   : > { %364 = vperm.xlu1 %4357, %v4998_v11   ;;  %249 = vperm.xlu0 %4358, %v4958_v3  }
  0x7c   : > { %367 = vperm.xlu1 %4357, %v4955_v2   ;;  %252 = vperm.xlu0 %4358, %v4998_v11  }
  0x80   : > { %373 = vperm.xlu1 %4357, %v5007_v12   ;;  %261 = vperm.xlu0 %4358, %v5007_v12  }
  0x84   : > { %379 = vperm.xlu1 %4357, %v5012_v13   ;;  %267 = vperm.xlu0 %4358, %v5012_v13  }
  0x88   : > { %385 = vperm.xlu1 %4357, %v5017_v14   ;;  %273 = vperm.xlu0 %4358, %v5017_v14  }
  0x8c   : > { %391 = vperm.xlu1 %4357, %v5022_v15   ;;  %279 = vperm.xlu0 %4358, %v5022_v15  }
  0x90   : > { %397 = vperm.xlu1 %4357, %v5027_v16   ;;  %285 = vperm.xlu0 %4358, %v5027_v16  }
  0x94   : > { %403 = vperm.xlu1 %4357, %v5032_v17   ;;  %291 = vperm.xlu0 %4358, %v5032_v17  }
  0x98   : > { %4359 = vset.pattern.permute.xlu1 %v8598_v19  ;;  %1449 = vperm.xlu0 %4358, %v5037_v18  }
  0x99   : > { %505 = vperm.xlu1 %4359, %v4958_v3  }
  0x9c   : > { %1452 = vperm.xlu0 %4358, %v5042_v20  }
  0x9d   : > { %511 = vperm.xlu1 %4359, %v4955_v2  }
  0xa0   : > { %1455 = vperm.xlu0 %4358, %v5047_v21  }
  0xa1   : > { %514 = vperm.xlu1 %4359, %v4963_v4  }
  0xa4   : > { %1458 = vperm.xlu0 %4358, %v5052_v22  }
  0xa5   : > { %520 = vperm.xlu1 %4359, %v4968_v5  }
  0xa8   : > { %1464 = vperm.xlu0 %4358, %v5057_v23  }
  0xa9   : > { %526 = vperm.xlu1 %4359, %v4973_v6  }
  0xac   : > { %4387 = vset.pattern.permute.xlu0 %v8583_v24 }
  0xad   : > { %532 = vperm.xlu1 %4359, %v4978_v7   ;;  %937 = vperm.xlu0 %4387, %v4958_v3  }
  0xb1   : > { %538 = vperm.xlu1 %4359, %v4983_v8   ;;  %946 = vperm.xlu0 %4387, %v4963_v4  }
  0xb5   : > { %544 = vperm.xlu1 %4359, %v4988_v9   ;;  %2137 = vperm.xlu0 %4387, %v5037_v18  }
  0xb9   : > { %550 = vperm.xlu1 %4359, %v4993_v10   ;;  %2140 = vperm.xlu0 %4387, %v5042_v20  }
  0xbd   : > { %4360 = vset.pattern.permute.xlu1 %v8587_v25  ;;  %2146 = vperm.xlu0 %4387, %v5052_v22  }
  0xbe   : > { %652 = vperm.xlu1 %4360, %v4998_v11  }
  0xc1   : > { %4390 = vset.pattern.permute.xlu0 %v8598_v19 }
  0xc2   : > { %655 = vperm.xlu1 %4360, %v4955_v2   ;;  %508 = vperm.xlu0 %4390, %v4998_v11  }
  0xc6   : > { %661 = vperm.xlu1 %4360, %v5007_v12   ;;  %517 = vperm.xlu0 %4390, %v5007_v12  }
  0xca   : > { %667 = vperm.xlu1 %4360, %v5012_v13   ;;  %523 = vperm.xlu0 %4390, %v5012_v13  }
  0xce   : > { %673 = vperm.xlu1 %4360, %v5017_v14   ;;  %529 = vperm.xlu0 %4390, %v5017_v14  }
  0xd2   : > { %679 = vperm.xlu1 %4360, %v5022_v15   ;;  %535 = vperm.xlu0 %4390, %v5022_v15  }
  0xd6   : > { %v5085_v26 = vpop.permute.xlu1 %255  ;;  %685 = vperm.xlu1 %4360, %v5027_v16   ;;  %v5088_v27 = vpop.permute.xlu0 %361  ;;  %541 = vperm.xlu0 %4390, %v5027_v16  }
  0xd7   : > { %8774 = vst [vmem:[#allocation11_spill] sm:$0xff] %v5085_v26  ;;  %v1426_v26 = vld [vmem:[#allocation2 + $0xd0] sm:$0xff] }
  0xda   : > { %v5091_v28 = vpop.permute.xlu1 %258  ;;  %691 = vperm.xlu1 %4360, %v5032_v17   ;;  %v5094_v29 = vpop.permute.xlu0 %370  ;;  %547 = vperm.xlu0 %4390, %v5032_v17  }
  0xdb   : > { %8775 = vst [vmem:[#allocation12_spill] sm:$0xff] %v5094_v29  ;;  %v8825_v29 = vmov 6  }
  0xde   : > { %v5097_v30 = vpop.permute.xlu1 %264  ;;  %4361 = vset.pattern.permute.xlu1 %v8589_v31  ;;  %v5100_v32 = vpop.permute.xlu0 %376  ;;  %1714 = vperm.xlu0 %4390, %v5052_v22  }
  0xdf   : > { %8776 = vst [vmem:[#allocation13_spill] sm:$0xff] %v5097_v30  ;;  %8777 = vst [vmem:[#allocation14_spill] sm:$0xff] %v5100_v32  ;;  %793 = vperm.xlu1 %4361, %v4958_v3   ;;  %v2602_v30 = vld [vmem:[#allocation2 + $0x110] sm:$0xff] }
  0xe2   : > { %v5104_v33 = vpop.permute.xlu1 %270  ;;  %v5106_v34 = vpop.permute.xlu0 %382  ;;  %1720 = vperm.xlu0 %4390, %v5057_v23  }
  0xe3   : > { %8778 = vst [vmem:[#allocation15_spill] sm:$0xff] %v5104_v33  ;;  %8779 = vst [vmem:[#allocation16_spill] sm:$0xff] %v5106_v34  ;;  %799 = vperm.xlu1 %4361, %v4955_v2   ;;  %v1418_v34 = vld [vmem:[#allocation2 + $0x90] sm:$0xff]  ;;  %v1419_v33 = vld [vmem:[#allocation2 + $0x98] sm:$0xff] }
  0xe6   : > { %v5110_v35 = vpop.permute.xlu1 %276  ;;  %v5112_v36 = vpop.permute.xlu0 %388  ;;  %4393 = vset.pattern.permute.xlu0 %v8587_v25  ;;  %v5208_v25 = vadd.s32 4294967040, %v4978_v7 }
  0xe7   : > { %8780 = vst [vmem:[#allocation17_spill] sm:$0xff] %v5110_v35  ;;  %8781 = vst [vmem:[#allocation18_spill] sm:$0xff] %v5112_v36  ;;  %802 = vperm.xlu1 %4361, %v4963_v4   ;;  %649 = vperm.xlu0 %4393, %v4958_v3   ;;  %v1401_v36 = vld [vmem:[#allocation2 + $0x8] sm:$0xff] }
  0xea   : > { %v5117_v37 = vpop.permute.xlu1 %282  ;;  %v5119_v38 = vpop.permute.xlu0 %394 }
  0xeb   : > { %8782 = vst [vmem:[#allocation19_spill] sm:$0xff] %v5117_v37  ;;  %8783 = vst [vmem:[#allocation20_spill] sm:$0xff] %v5119_v38  ;;  %808 = vperm.xlu1 %4361, %v4968_v5   ;;  %658 = vperm.xlu0 %4393, %v4963_v4   ;;  %v1417_v38 = vld [vmem:[#allocation2 + $0x88] sm:$0xff]  ;;  %v8814_v37 = vmov 1  }
  0xee   : > { %v5123_v39 = vpop.permute.xlu1 %288  ;;  %v5125_v40 = vpop.permute.xlu0 %400 }
  0xef   : > { %8784 = vst [vmem:[#allocation21_spill] sm:$0xff] %v5123_v39  ;;  %8785 = vst [vmem:[#allocation22_spill] sm:$0xff] %v5125_v40  ;;  %814 = vperm.xlu1 %4361, %v4973_v6   ;;  %664 = vperm.xlu0 %4393, %v4968_v5   ;;  %v8810_v40 = vmov 4  }
  0xf2   : > { %v5129_v41 = vpop.permute.xlu1 %294  ;;  %v5131_v42 = vpop.permute.xlu0 %406 }
  0xf3   : > { %8786 = vst [vmem:[#allocation23_spill] sm:$0xff] %v5129_v41  ;;  %8787 = vst [vmem:[#allocation24_spill] sm:$0xff] %v5131_v42  ;;  %820 = vperm.xlu1 %4361, %v4978_v7   ;;  %670 = vperm.xlu0 %4393, %v4973_v6  }
  0xf7   : > { %v5135_v43 = vpop.permute.xlu1 %364  ;;  %826 = vperm.xlu1 %4361, %v4983_v8   ;;  %v5138_v44 = vpop.permute.xlu0 %249  ;;  %676 = vperm.xlu0 %4393, %v4978_v7  }
  0xf8   : > { %8788 = vst [vmem:[#allocation25_spill] sm:$0xff] %v5135_v43  ;;  %v2619_v43 = vld [vmem:[#allocation2 + $0x198] sm:$0xff] }
  0xfb   : > { %v5141_v45 = vpop.permute.xlu1 %367  ;;  %832 = vperm.xlu1 %4361, %v4988_v9   ;;  %v5144_v46 = vpop.permute.xlu0 %252  ;;  %682 = vperm.xlu0 %4393, %v4983_v8  }
  0xfc   : > { %8789 = vst [vmem:[#allocation26_spill] sm:$0xff] %v5141_v45  ;;  %8790 = vst [vmem:[#allocation27_spill] sm:$0xff] %v5144_v46  ;;  %v2618_v46 = vld [vmem:[#allocation2 + $0x190] sm:$0xff] }
  0xfd   : > { %v4156_v32 = vpack.c.bf16 %v2619_v43, %v2618_v46 }
  0xff   : > { %v5147_v47 = vpop.permute.xlu1 %373  ;;  %838 = vperm.xlu1 %4361, %v4993_v10   ;;  %v5150_v48 = vpop.permute.xlu0 %261  ;;  %688 = vperm.xlu0 %4393, %v4988_v9  }
 0x100   : > { %8791 = vst [vmem:[#allocation28_spill] sm:$0xff] %v5147_v47  ;;  %8792 = vst [vmem:[#allocation29_spill] sm:$0xff] %v5150_v48 }
 0x103   : > { %v5153_v49 = vpop.permute.xlu1 %379  ;;  %4362 = vset.pattern.permute.xlu1 %v8583_v24  ;;  %v5156_v50 = vpop.permute.xlu0 %267  ;;  %694 = vperm.xlu0 %4393, %v4993_v10  }
 0x104   : > { %8793 = vst [vmem:[#allocation30_spill] sm:$0xff] %v5153_v49  ;;  %8794 = vst [vmem:[#allocation31_spill] sm:$0xff] %v5156_v50  ;;  %940 = vperm.xlu1 %4362, %v4998_v11   ;;  %v4188_v50 = vpack.c.bf16 %v1419_v33, %v1418_v34 }
 0x107   : > { %v5160_v51 = vpop.permute.xlu1 %385  ;;  %v5162_v52 = vpop.permute.xlu0 %273  ;;  %1849 = vperm.xlu0 %4393, %v5037_v18  }
 0x108   : > { %8795 = vst [vmem:[#allocation32_spill] sm:$0xff] %v5160_v51  ;;  %8796 = vst [vmem:[#allocation33_spill] sm:$0xff] %v5162_v52  ;;  %943 = vperm.xlu1 %4362, %v4955_v2  }
 0x10b   : > { %v5166_v53 = vpop.permute.xlu1 %391  ;;  %v5168_v54 = vpop.permute.xlu0 %279  ;;  %1858 = vperm.xlu0 %4393, %v5052_v22  }
 0x10c   : > { %8797 = vst [vmem:[#allocation34_spill] sm:$0xff] %v5166_v53  ;;  %8798 = vst [vmem:[#allocation35_spill] sm:$0xff] %v5168_v54  ;;  %949 = vperm.xlu1 %4362, %v5007_v12   ;;  %v1400_v53 = vld [vmem:[#allocation2] sm:$0xff] }
 0x10d   : > { %v4186_v35 = vpack.c.bf16 %v1401_v36, %v1400_v53 }
 0x10f   : > { %v5172_v55 = vpop.permute.xlu1 %397  ;;  %v5174_v56 = vpop.permute.xlu0 %285  ;;  %1864 = vperm.xlu0 %4393, %v5057_v23  }
 0x110   : > { %8799 = vst [vmem:[#allocation36_spill] sm:$0xff] %v5172_v55  ;;  %8800 = vst [vmem:[#allocation37_spill] sm:$0xff] %v5174_v56  ;;  %4363 = vset.pattern.permute.xlu1 %v8592_v0  ;;  %v5236_v56 = vadd.s32 4294967040, %v5027_v16  ;;  %v1416_v55 = vld [vmem:[#allocation2 + $0x80] sm:$0xff] }
 0x111   : > { %1561 = vperm.xlu1 %4363, %v5037_v18   ;;  %v4184_v54 = vpack.c.bf16 %v1417_v38, %v1416_v55  ;;  %v1403_v38 = vld [vmem:[#allocation2 + $0x18] sm:$0xff]  ;;  %v8817_v55 = vmov 3  }
 0x112   : > { %8813 = vst [vmem:[#allocation49_spill] sm:$0xff] %v5236_v56 }
 0x113   : > { %v5182_v58 = vpop.permute.xlu1 %403  ;;  %v5184_v59 = vpop.permute.xlu0 %291  ;;  %1867 = vperm.xlu0 %4393, %v5178_v57   ;;  %4185 = vmatprep.subr.bf16.mxu1 %v4184_v54  ;;  %v1421_v54 = vld [vmem:[#allocation2 + $0xa8] sm:$0xff] }
 0x114   : > { %8801 = vst [vmem:[#allocation38_spill] sm:$0xff] %v5182_v58  ;;  %8802 = vst [vmem:[#allocation39_spill] sm:$0xff] %v5184_v59  ;;  %v5226_v58 = vadd.s32 4294967040, %v4983_v8  ;;  %4187 = vmatpush3.bf16.msra.mxu1 %v4186_v35  ;;  %v1420_v35 = vld [vmem:[#allocation2 + $0xa0] sm:$0xff] }
 0x115   : > { %4364 = vset.pattern.permute.xlu1 %v8598_v19  ;;  %4189 = vmatprep.subr.bf16.mxu1 %v4188_v50  ;;  %v1423_v50 = vld [vmem:[#allocation2 + $0xb8] sm:$0xff] }
 0x116   : > { %1705 = vperm.xlu1 %4364, %v5037_v18   ;;  %8809 = vst [vmem:[#allocation46_spill] sm:$0xff] %v5226_v58 }
 0x117   : > { %v5192_v61 = vpop.permute.xlu0 %1449  ;;  %1870 = vperm.xlu0 %4393, %v5188_v60  }
 0x118   : > { %v5195_v62 = vpop.permute.xlu1 %505 }
 0x11a   : > { %4365 = vset.pattern.permute.xlu1 %v8592_v0  ;;  %v5217_v0 = vadd.s32 4294967040, %v5022_v15 }
 0x11b   : > { %v5201_v24 = vpop.permute.xlu0 %1452  ;;  %1564 = vperm.xlu1 %4365, %v5042_v20   ;;  %1873 = vperm.xlu0 %4393, %v5198_v63  }
 0x11c   : > { %v5205_v1 = vpop.permute.xlu1 %511  ;;  %8806 = vst [vmem:[#allocation43_spill] sm:$0xff] %v5217_v0 }
 0x11d   : > { %8803 = vst [vmem:[#allocation40_spill] sm:$0xff] %v5205_v1 }
 0x11f   : > { %v5210_v31 = vpop.permute.xlu0 %1455  ;;  %4366 = vset.pattern.permute.xlu1 %v8598_v19  ;;  %1876 = vperm.xlu0 %4393, %v5208_v25  }
 0x120   : > { %8804 = vst [vmem:[#allocation41_spill] sm:$0xff] %v5210_v31  ;;  %v5214_v42 = vpop.permute.xlu1 %514  ;;  %1708 = vperm.xlu1 %4366, %v5042_v20   ;;  %v2601_v31 = vld [vmem:[#allocation2 + $0x108] sm:$0xff] }
 0x121   : > { %8805 = vst [vmem:[#allocation42_spill] sm:$0xff] %v5214_v42  ;;  %v4192_v42 = vpack.c.bf16 %v1421_v54, %v1420_v35  ;;  %v2616_v54 = vld [vmem:[#allocation2 + $0x180] sm:$0xff] }
 0x123   : > { %v5220_v41 = vpop.permute.xlu0 %1458  ;;  %1879 = vperm.xlu0 %4393, %v5217_v0  }
 0x124   : > { %8807 = vst [vmem:[#allocation44_spill] sm:$0xff] %v5220_v41  ;;  %v5223_v59 = vpop.permute.xlu1 %520  ;;  %4367 = vset.pattern.permute.xlu1 %v8810_v40  ;;  %v1404_v41 = vld [vmem:[#allocation2 + $0x20] sm:$0xff] }
 0x125   : > { %8808 = vst [vmem:[#allocation45_spill] sm:$0xff] %v5223_v59  ;;  %1993 = vperm.xlu1 %4367, %v5037_v18   ;;  %v1405_v59 = vld [vmem:[#allocation2 + $0x28] sm:$0xff] }
 0x126   : > { %v4194_v33 = vpack.c.bf16 %v1405_v59, %v1404_v41 }
 0x127   : > { %v5230_v19 = vpop.permute.xlu0 %1464  ;;  %1882 = vperm.xlu0 %4393, %v5226_v58  }
 0x128   : > { %8811 = vst [vmem:[#allocation47_spill] sm:$0xff] %v5230_v19  ;;  %v5233_v39 = vpop.permute.xlu1 %526  ;;  %v1402_v19 = vld [vmem:[#allocation2 + $0x10] sm:$0xff] }
 0x129   : > { %8812 = vst [vmem:[#allocation48_spill] sm:$0xff] %v5233_v39  ;;  %4368 = vset.pattern.permute.xlu1 %v8814_v37  ;;  %v5246_v39 = vadd.s32 4294967040, %v4988_v9  ;;  %v4190_v49 = vpack.c.bf16 %v1403_v38, %v1402_v19  ;;  %v8624_v19 = vmov 6  }
 0x12a   : > { %1567 = vperm.xlu1 %4368, %v5047_v21  }
 0x12b   : > { %1885 = vperm.xlu0 %4393, %v5236_v56   ;;  %8816 = vst [vmem:[#allocation51_spill] sm:$0xff] %v5246_v39  ;;  %4191 = vmatpush3.bf16.msra.mxu1 %v4190_v49  ;;  %v1407_v49 = vld [vmem:[#allocation2 + $0x38] sm:$0xff] }
 0x12c   : > { %v5241_v52 = vpop.permute.xlu1 %532  ;;  %v5243_v51 = vpop.permute.xlu0 %937  ;;  %4193 = vmatprep.subr.bf16.mxu1 %v4192_v42  ;;  %v1424_v42 = vld [vmem:[#allocation2 + $0xc0] sm:$0xff] }
 0x12d   : > { %8815 = vst [vmem:[#allocation50_spill] sm:$0xff] %v5241_v52  ;;  %v5256_v52 = vadd.s32 4294967040, %v5032_v17 }
 0x12e   : > { %4369 = vset.pattern.permute.xlu1 %v8817_v55 }
 0x12f   : > { %1852 = vperm.xlu1 %4369, %v5042_v20   ;;  %1888 = vperm.xlu0 %4393, %v5246_v39   ;;  %8820 = vst [vmem:[#allocation54_spill] sm:$0xff] %v5256_v52 }
 0x130   : > { %v5251_v36 = vpop.permute.xlu1 %538  ;;  %v5253_v53 = vpop.permute.xlu0 %946  ;;  %4195 = vmatpush3.bf16.msra.mxu1 %v4194_v33  ;;  %v1409_v33 = vld [vmem:[#allocation2 + $0x48] sm:$0xff] }
 0x131   : > { %8818 = vst [vmem:[#allocation52_spill] sm:$0xff] %v5251_v36  ;;  %8819 = vst [vmem:[#allocation53_spill] sm:$0xff] %v5253_v53  ;;  %v1422_v36 = vld [vmem:[#allocation2 + $0xb0] sm:$0xff] }
 0x132   : > { %v1406_v53 = vld [vmem:[#allocation2 + $0x30] sm:$0xff]  ;;  %v4196_v1 = vpack.c.bf16 %v1423_v50, %v1422_v36  ;;  %v1425_v36 = vld [vmem:[#allocation2 + $0xc8] sm:$0xff] }
 0x133   : > { %4370 = vset.pattern.permute.xlu1 %v8624_v19  ;;  %1891 = vperm.xlu0 %4393, %v5256_v52   ;;  %v4198_v35 = vpack.c.bf16 %v1407_v49, %v1406_v53  ;;  %v2617_v19 = vld [vmem:[#allocation2 + $0x188] sm:$0xff]  ;;  %v2600_v52 = vld [vmem:[#allocation2 + $0x100] sm:$0xff]  ;;  %v4200_v48 = vpack.c.bf16 %v1425_v36, %v1424_v42 }
 0x134   : > { %v5260_v34 = vpop.permute.xlu1 %544  ;;  %v5262_v38 = vpop.permute.xlu0 %2137  ;;  %1081 = vperm.xlu1 %4370, %v4958_v3   ;;  %4197 = vmatprep.subr.bf16.mxu1 %v4196_v1  ;;  %v1408_v53 = vld [vmem:[#allocation2 + $0x40] sm:$0xff]  ;;  %v4152_v50 = vpack.c.bf16 %v2617_v19, %v2616_v54  ;;  %v2603_v1 = vld [vmem:[#allocation2 + $0x118] sm:$0xff]  ;;  %v2621_v36 = vld [vmem:[#allocation2 + $0x1a8] sm:$0xff] }
 0x135   : > { %8821 = vst [vmem:[#allocation55_spill] sm:$0xff] %v5260_v34  ;;  %v8823_v34 = vmov 2   ;;  %4199 = vmatpush3.bf16.msra.mxu1 %v4198_v35  ;;  %v4202_v47 = vpack.c.bf16 %v1409_v33, %v1408_v53  ;;  %v1427_v19 = vld [vmem:[#allocation2 + $0xd8] sm:$0xff]  ;;  %v1410_v35 = vld [vmem:[#allocation2 + $0x50] sm:$0xff]  ;;  %v2620_v42 = vld [vmem:[#allocation2 + $0x1a0] sm:$0xff] }
 0x136   : > { %4153 = vmatprep.subr.bf16.mxu0 %v4152_v50  ;;  %v1411_v54 = vld [vmem:[#allocation2 + $0x58] sm:$0xff]  ;;  %4201 = vmatprep.subr.bf16.mxu1 %v4200_v48  ;;  %v4160_v53 = vpack.c.bf16 %v2621_v36, %v2620_v42  ;;  %v2604_v33 = vld [vmem:[#allocation2 + $0x120] sm:$0xff]  ;;  %v2605_v50 = vld [vmem:[#allocation2 + $0x128] sm:$0xff] }
 0x137   : > { %4461 = vset.pattern.permute.xlu0 %v8810_v40  ;;  %v1429_v48 = vld [vmem:[#allocation2 + $0xe8] sm:$0xff]  ;;  %v2607_v36 = vld [vmem:[#allocation2 + $0x138] sm:$0xff] }
 0x138   : > { %v5266_v41 = vpop.permute.xlu1 %550  ;;  %v5268_v59 = vpop.permute.xlu0 %2140  ;;  %4371 = vset.pattern.permute.xlu1 %v8823_v34  ;;  %796 = vperm.xlu0 %4461, %v4998_v11  }
 0x139   : > { %8822 = vst [vmem:[#allocation56_spill] sm:$0xff] %v5266_v41  ;;  %1711 = vperm.xlu1 %4371, %v5047_v21   ;;  %v4154_v41 = vpack.c.bf16 %v2601_v31, %v2600_v52  ;;  %v4158_v31 = vpack.c.bf16 %v2603_v1, %v2602_v30  ;;  %v4204_v52 = vpack.c.bf16 %v1427_v19, %v1426_v26  ;;  %v8641_v30 = vmov 7   ;;  %v1412_v26 = vld [vmem:[#allocation2 + $0x60] sm:$0xff] }
 0x13a   : > { %4203 = vmatpush3.bf16.msra.mxu1 %v4202_v47  ;;  %v4162_v19 = vpack.c.bf16 %v2605_v50, %v2604_v33 }
 0x13b   : > { %4155 = vmatpush3.bf16.msra.mxu0 %v4154_v41  ;;  %4205 = vmatprep.subr.bf16.mxu1 %v4204_v52  ;;  %v4206_v41 = vpack.c.bf16 %v1411_v54, %v1410_v35  ;;  %v2622_v54 = vld [vmem:[#allocation2 + $0x1b0] sm:$0xff] }
 0x13c   : > { %v5273_v49 = vpop.permute.xlu0 %2146  ;;  %805 = vperm.xlu0 %4461, %v5007_v12   ;;  %4157 = vmatprep.subr.bf16.mxu0 %v4156_v32  ;;  %v1413_v32 = vld [vmem:[#allocation2 + $0x68] sm:$0xff]  ;;  %v2606_v52 = vld [vmem:[#allocation2 + $0x130] sm:$0xff] }
 0x13d   : > { %v5276_v45 = vpop.permute.xlu1 %652  ;;  %4372 = vset.pattern.permute.xlu1 %v8825_v29  ;;  %v4210_v42 = vpack.c.bf16 %v1413_v32, %v1412_v26  ;;  %v4166_v33 = vpack.c.bf16 %v2607_v36, %v2606_v52  ;;  %v1415_v26 = vld [vmem:[#allocation2 + $0x78] sm:$0xff]  ;;  %v2624_v32 = vld [vmem:[#allocation2 + $0x1c0] sm:$0xff]  ;;  %v2626_v52 = vld [vmem:[#allocation2 + $0x1d0] sm:$0xff] }
 0x13e   : > { %8824 = vst [vmem:[#allocation57_spill] sm:$0xff] %v5276_v45  ;;  %2281 = vperm.xlu1 %4372, %v5037_v18   ;;  %v1428_v45 = vld [vmem:[#allocation2 + $0xe0] sm:$0xff]  ;;  %4207 = vmatpush3.bf16.msra.mxu1 %v4206_v41  ;;  %v2610_v36 = vld [vmem:[#allocation2 + $0x150] sm:$0xff] }
 0x13f   : > { %4159 = vmatpush3.bf16.msra.mxu0 %v4158_v31  ;;  %v4208_v35 = vpack.c.bf16 %v1429_v48, %v1428_v45  ;;  %v2623_v31 = vld [vmem:[#allocation2 + $0x1b8] sm:$0xff]  ;;  %v1414_v48 = vld [vmem:[#allocation2 + $0x70] sm:$0xff] }
 0x140   : > { %811 = vperm.xlu0 %4461, %v5012_v13   ;;  %4161 = vmatprep.subr.bf16.mxu0 %v4160_v53  ;;  %v1431_v53 = vld [vmem:[#allocation2 + $0xf8] sm:$0xff]  ;;  %v4164_v45 = vpack.c.bf16 %v2623_v31, %v2622_v54  ;;  %v4214_v54 = vpack.c.bf16 %v1415_v26, %v1414_v48 }
 0x141   : > { %v5281_v43 = vpop.permute.xlu1 %655  ;;  %v5283_v46 = vpop.permute.xlu0 %508  ;;  %4209 = vmatprep.subr.bf16.mxu1 %v4208_v35  ;;  %v2609_v35 = vld [vmem:[#allocation2 + $0x148] sm:$0xff] }
 0x142   : > { %4373 = vset.pattern.permute.xlu1 %v8641_v30  ;;  %v1430_v30 = vld [vmem:[#allocation2 + $0xf0] sm:$0xff]  ;;  %4211 = vmatpush3.bf16.msra.mxu1 %v4210_v42  ;;  %v2627_v42 = vld [vmem:[#allocation2 + $0x1d8] sm:$0xff] }
 0x143   : > { %1225 = vperm.xlu1 %4373, %v4958_v3   ;;  %4163 = vmatpush3.bf16.msra.mxu0 %v4162_v19  ;;  %v4212_v50 = vpack.c.bf16 %v1431_v53, %v1430_v30  ;;  %v2608_v19 = vld [vmem:[#allocation2 + $0x140] sm:$0xff]  ;;  %v2611_v53 = vld [vmem:[#allocation2 + $0x158] sm:$0xff]  ;;  %v4172_v48 = vpack.c.bf16 %v2627_v42, %v2626_v52  ;;  %v5319_v52 = vadd.s32 4294967040, %v4993_v10 }
 0x144   : > { %817 = vperm.xlu0 %4461, %v5017_v14   ;;  %4165 = vmatprep.subr.bf16.mxu0 %v4164_v45  ;;  %v4170_v31 = vpack.c.bf16 %v2609_v35, %v2608_v19  ;;  %v2628_v45 = vld [vmem:[#allocation2 + $0x1e0] sm:$0xff]  ;;  %v2613_v35 = vld [vmem:[#allocation2 + $0x168] sm:$0xff] }
 0x145   : > { %v5288_v47 = vpop.permute.xlu1 %661  ;;  %v5290_v1 = vpop.permute.xlu0 %517  ;;  %4213 = vmatprep.subr.bf16.mxu1 %v4212_v50  ;;  %v2612_v19 = vld [vmem:[#allocation2 + $0x160] sm:$0xff]  ;;  %8836 = vst [vmem:[#allocation67_spill] sm:$0xff] %v5319_v52 }
 0x146   : > { %8826 = vst [vmem:[#allocation58_spill] sm:$0xff] %v5288_v47  ;;  %v2625_v47 = vld [vmem:[#allocation2 + $0x1c8] sm:$0xff]  ;;  %4215 = vmatpush3.bf16.msra.mxu1 %v4214_v54  ;;  %v2630_v54 = vld [vmem:[#allocation2 + $0x1f0] sm:$0xff]  ;;  %v4178_v42 = vpack.c.bf16 %v2613_v35, %v2612_v19 }
 0x147   : > { %4374 = vset.pattern.permute.xlu1 %v8814_v37  ;;  %4167 = vmatpush3.bf16.msra.mxu0 %v4166_v33  ;;  %v4168_v30 = vpack.c.bf16 %v2625_v47, %v2624_v32  ;;  %v2629_v33 = vld [vmem:[#allocation2 + $0x1e8] sm:$0xff]  ;;  %v4174_v47 = vpack.c.bf16 %v2611_v53, %v2610_v36  ;;  %v8833_v32 = vmov 7   ;;  %v2615_v53 = vld [vmem:[#allocation2 + $0x178] sm:$0xff] }
 0x148   : > { %1570 = vperm.xlu1 %4374, %v5052_v22   ;;  %823 = vperm.xlu0 %4461, %v5022_v15   ;;  %v4176_v26 = vpack.c.bf16 %v2629_v33, %v2628_v45 }
 0x149   : > { %v5295_v3 = vpop.permute.xlu1 %667  ;;  %v5297_v41 = vpop.permute.xlu0 %523  ;;  %4169 = vmatprep.subr.bf16.mxu0 %v4168_v30  ;;  %v2631_v30 = vld [vmem:[#allocation2 + $0x1f8] sm:$0xff] }
 0x14a   : > { %8827 = vst [vmem:[#allocation59_spill] sm:$0xff] %v5295_v3  ;;  %8828 = vst [vmem:[#allocation60_spill] sm:$0xff] %v5297_v41  ;;  %v4180_v36 = vpack.c.bf16 %v2631_v30, %v2630_v54  ;;  %v5344_v54 = vadd.s32 4294967040, %v5007_v12  ;;  %v8840_v30 = vmov 0  }
 0x14b   : > { %4171 = vmatpush3.bf16.msra.mxu0 %v4170_v31 }
 0x14c   : > { %4375 = vset.pattern.permute.xlu1 %v8817_v55  ;;  %829 = vperm.xlu0 %4461, %v5027_v16  }
 0x14d   : > { %v5301_v3 = vpop.permute.xlu1 %673  ;;  %v5303_v41 = vpop.permute.xlu0 %529  ;;  %1855 = vperm.xlu1 %4375, %v5047_v21   ;;  %4173 = vmatprep.subr.bf16.mxu0 %v4172_v48 }
 0x14e   : > { %8829 = vst [vmem:[#allocation61_spill] sm:$0xff] %v5301_v3  ;;  %8830 = vst [vmem:[#allocation62_spill] sm:$0xff] %v5303_v41 }
 0x14f   : > { %4175 = vmatpush3.bf16.msra.mxu0 %v4174_v47 }
 0x150   : > { %835 = vperm.xlu0 %4461, %v5032_v17   ;;  %4177 = vmatprep.subr.bf16.mxu0 %v4176_v26 }
 0x151   : > { %v5307_v50 = vpop.permute.xlu1 %679  ;;  %v5309_v3 = vpop.permute.xlu0 %535  ;;  %4376 = vset.pattern.permute.xlu1 %v8833_v32 }
 0x152   : > { %8831 = vst [vmem:[#allocation63_spill] sm:$0xff] %v5307_v50  ;;  %8832 = vst [vmem:[#allocation64_spill] sm:$0xff] %v5309_v3  ;;  %2425 = vperm.xlu1 %4376, %v5037_v18   ;;  %v2614_v18 = vld [vmem:[#allocation2 + $0x170] sm:$0xff] }
 0x153   : > { %4179 = vmatpush3.bf16.msra.mxu0 %v4178_v42  ;;  %v4182_v48 = vpack.c.bf16 %v2615_v53, %v2614_v18 }
 0x154   : > { %1996 = vperm.xlu0 %4461, %v5042_v20   ;;  %4181 = vmatprep.subr.bf16.mxu0 %v4180_v36 }
 0x155   : > { %v5314_v17 = vpop.permute.xlu1 %685  ;;  %v5316_v31 = vpop.permute.xlu0 %541 }
 0x156   : > { %8834 = vst [vmem:[#allocation65_spill] sm:$0xff] %v5314_v17  ;;  %8835 = vst [vmem:[#allocation66_spill] sm:$0xff] %v5316_v31  ;;  %4377 = vset.pattern.permute.xlu1 %v8825_v29 }
 0x157   : > { %1084 = vperm.xlu1 %4377, %v4998_v11   ;;  %4183 = vmatpush3.bf16.msra.mxu0 %v4182_v48 }
 0x158   : > { %2038 = vperm.xlu0 %4461, %v5319_v52  }
 0x159   : > { %v5324_v45 = vpop.permute.xlu1 %691  ;;  %v5326_v33 = vpop.permute.xlu0 %547 }
 0x15a   : > { %8837 = vst [vmem:[#allocation68_spill] sm:$0xff] %v5324_v45  ;;  %8838 = vst [vmem:[#allocation69_spill] sm:$0xff] %v5326_v33  ;;  %v8842_v45 = vmov 5  }
 0x15b   : > { %4378 = vset.pattern.permute.xlu1 %v8810_v40 }
 0x15c   : > { %1999 = vperm.xlu1 %4378, %v5047_v21   ;;  %4470 = vset.pattern.permute.xlu0 %v8825_v29 }
 0x15d   : > { %v5331_v47 = vpop.permute.xlu0 %1714  ;;  %1087 = vperm.xlu0 %4470, %v4955_v2  }
 0x15e   : > { %v5334_v26 = vpop.permute.xlu1 %793 }
 0x160   : > { %4379 = vset.pattern.permute.xlu1 %v8825_v29 }
 0x161   : > { %v5337_v19 = vpop.permute.xlu0 %1720  ;;  %2284 = vperm.xlu1 %4379, %v5042_v20   ;;  %2287 = vperm.xlu0 %4470, %v5047_v21  }
 0x162   : > { %8839 = vst [vmem:[#allocation70_spill] sm:$0xff] %v5337_v19  ;;  %v5341_v35 = vpop.permute.xlu1 %799 }
 0x165   : > { %4380 = vset.pattern.permute.xlu1 %v8840_v30  ;;  %1093 = vperm.xlu0 %4470, %v5007_v12  }
 0x166   : > { %v5348_v42 = vpop.permute.xlu1 %802  ;;  %1461 = vperm.xlu1 %4380, %v5344_v54   ;;  %v5351_v36 = vpop.permute.xlu0 %649 }
 0x169   : > { %2293 = vperm.xlu0 %4470, %v5344_v54  }
 0x16a   : > { %v5354_v18 = vpop.permute.xlu1 %808  ;;  %4381 = vset.pattern.permute.xlu1 %v8814_v37  ;;  %v5357_v53 = vpop.permute.xlu0 %658 }
 0x16b   : > { %1573 = vperm.xlu1 %4381, %v5344_v54  }
 0x16d   : > { %1096 = vperm.xlu0 %4470, %v4968_v5  }
 0x16e   : > { %v5361_v48 = vpop.permute.xlu1 %814  ;;  %v5363_v12 = vpop.permute.xlu0 %664 }
 0x16f   : > { %8841 = vst [vmem:[#allocation71_spill] sm:$0xff] %v5361_v48  ;;  %4382 = vset.pattern.permute.xlu1 %v8842_v45 }
 0x170   : > { %2143 = vperm.xlu1 %4382, %v5047_v21  }
 0x171   : > { %2296 = vperm.xlu0 %4470, %v5057_v23  }
 0x172   : > { %v5368_v33 = vpop.permute.xlu1 %820  ;;  %v5370_v17 = vpop.permute.xlu0 %670 }
 0x173   : > { %8843 = vst [vmem:[#allocation72_spill] sm:$0xff] %v5368_v33  ;;  %8844 = vst [vmem:[#allocation73_spill] sm:$0xff] %v5370_v17 }
 0x174   : > { %4383 = vset.pattern.permute.xlu1 %v8833_v32 }
 0x175   : > { %2428 = vperm.xlu1 %4383, %v5042_v20   ;;  %1099 = vperm.xlu0 %4470, %v5012_v13  }
 0x176   : > { %v5375_v5 = vpop.permute.xlu1 %826  ;;  %v5377_v31 = vpop.permute.xlu0 %676 }
 0x177   : > { %8845 = vst [vmem:[#allocation74_spill] sm:$0xff] %v5375_v5  ;;  %8846 = vst [vmem:[#allocation75_spill] sm:$0xff] %v5377_v31 }
 0x179   : > { %4384 = vset.pattern.permute.xlu1 %v8823_v34  ;;  %2299 = vperm.xlu0 %4470, %v5178_v57  }
 0x17a   : > { %v5381_v50 = vpop.permute.xlu1 %832  ;;  %1717 = vperm.xlu1 %4384, %v5344_v54   ;;  %v5384_v3 = vpop.permute.xlu0 %682 }
 0x17b   : > { %8847 = vst [vmem:[#allocation76_spill] sm:$0xff] %v5381_v50  ;;  %8848 = vst [vmem:[#allocation77_spill] sm:$0xff] %v5384_v3 }
 0x17d   : > { %1102 = vperm.xlu0 %4470, %v4973_v6  }
 0x17e   : > { %v5387_v33 = vpop.permute.xlu1 %838  ;;  %4385 = vset.pattern.permute.xlu1 %v8810_v40  ;;  %v5390_v13 = vpop.permute.xlu0 %688 }
 0x17f   : > { %8849 = vst [vmem:[#allocation78_spill] sm:$0xff] %v5387_v33  ;;  %8850 = vst [vmem:[#allocation79_spill] sm:$0xff] %v5390_v13  ;;  %2002 = vperm.xlu1 %4385, %v5052_v22  }
 0x181   : > { %2302 = vperm.xlu0 %4470, %v5188_v60  }
 0x182   : > { %v5394_v20 = vpop.permute.xlu0 %694 }
 0x183   : > { %8851 = vst [vmem:[#allocation80_spill] sm:$0xff] %v5394_v20  ;;  %v5396_v5 = vpop.permute.xlu1 %940  ;;  %4386 = vset.pattern.permute.xlu1 %v8833_v32 }
 0x184   : > { %1231 = vperm.xlu1 %4386, %v4955_v2  }
 0x185   : > { %1105 = vperm.xlu0 %4470, %v5017_v14  }
 0x186   : > { %v5401_v6 = vpop.permute.xlu0 %1849 }
 0x187   : > { %v5403_v33 = vpop.permute.xlu1 %943 }
 0x188   : > { %4388 = vset.pattern.permute.xlu1 %v8814_v37 }
 0x189   : > { %1576 = vperm.xlu1 %4388, %v5057_v23   ;;  %2305 = vperm.xlu0 %4470, %v5198_v63  }
 0x18a   : > { %v5408_v50 = vpop.permute.xlu0 %1858 }
 0x18b   : > { %v5410_v20 = vpop.permute.xlu1 %949 }
 0x18c   : > { %8852 = vst [vmem:[#allocation81_spill] sm:$0xff] %v5410_v20 }
 0x18d   : > { %4389 = vset.pattern.permute.xlu1 %v8817_v55  ;;  %1108 = vperm.xlu0 %4470, %v4978_v7  }
 0x18e   : > { %1861 = vperm.xlu1 %4389, %v5344_v54   ;;  %v5415_v2 = vpop.permute.xlu0 %1864 }
 0x18f   : > { %8853 = vst [vmem:[#allocation82_spill] sm:$0xff] %v5415_v2 }
 0x190   : > { %v5417_v14 = vpop.permute.xlu1 %1561 }
 0x191   : > { %2308 = vperm.xlu0 %4470, %v5208_v25  }
 0x192   : > { %4391 = vset.pattern.permute.xlu1 %v8833_v32  ;;  %v5421_v13 = vpop.permute.xlu0 %1867 }
 0x193   : > { %8854 = vst [vmem:[#allocation83_spill] sm:$0xff] %v5421_v13  ;;  %2431 = vperm.xlu1 %4391, %v5047_v21  }
 0x195   : > { %v5424_v3 = vpop.permute.xlu1 %1705  ;;  %1111 = vperm.xlu0 %4470, %v5022_v15  }
 0x196   : > { %v5427_v55 = vpop.permute.xlu0 %1870 }
 0x197   : > { %8855 = vst [vmem:[#allocation84_spill] sm:$0xff] %v5427_v55  ;;  %4392 = vset.pattern.permute.xlu1 %v8825_v29  ;;  %v8668_v55 = vlaneseq }
 0x198   : > { %1090 = vperm.xlu1 %4392, %v4963_v4  }
 0x199   : > { %2311 = vperm.xlu0 %4470, %v5217_v0   ;;  %v4638_v0 = vld [vmem:[%s4952_s28 + $0x28] sm:$0xff] }
 0x19a   : > { %v5432_v7 = vpop.permute.xlu1 %1564  ;;  %v5434_v31 = vpop.permute.xlu0 %1873 }
 0x19b   : > { %8856 = vst [vmem:[#allocation85_spill] sm:$0xff] %v5434_v31 }
 0x19c   : > { %4394 = vset.pattern.permute.xlu1 %v8810_v40 }
 0x19d   : > { %2005 = vperm.xlu1 %4394, %v5344_v54   ;;  %1114 = vperm.xlu0 %4470, %v4983_v8  }
 0x19e   : > { %v5439_v21 = vpop.permute.xlu0 %1876 }
 0x19f   : > { %8857 = vst [vmem:[#allocation86_spill] sm:$0xff] %v5439_v21  ;;  %v5441_v15 = vpop.permute.xlu1 %1708  ;;  %v5455_v21 = vand.u32 127, %v8668_v55 }
 0x1a1   : > { %4395 = vset.pattern.permute.xlu1 %v8825_v29  ;;  %2314 = vperm.xlu0 %4470, %v5226_v58   ;;  %vm408_vm0 = vcmp.eq.s32.totalorder %v5455_v21, %v5088_v27  ;;  %vm296_vm2 = vcmp.eq.s32.totalorder %v5455_v21, %v5138_v44  ;;  %vm552_vm4 = vcmp.eq.s32.totalorder %v5455_v21, %v5195_v62 }
 0x1a2   : > { %2290 = vperm.xlu1 %4395, %v5052_v22   ;;  %v5446_v4 = vpop.permute.xlu0 %1879  ;;  %v328_v13 = vsel %vm296_vm2, 1, %v8840_v30  ;;  %vm696_vm6 = vcmp.eq.s32.totalorder %v5455_v21, %v5351_v36  ;;  %v584_v17 = vsel %vm552_vm4, 1, %v8840_v30  ;;  %vm840_vm8 = vcmp.eq.s32.totalorder %v5455_v21, %v5334_v26 }
 0x1a3   : > { %8858 = vst [vmem:[#allocation87_spill] sm:$0xff] %v5446_v4  ;;  %v5464_v4 = vadd.s32 128, %v5455_v21  ;;  %vm984_vm10 = vcmp.eq.s32.totalorder %v5455_v21, %v5243_v51  ;;  %vm1496_vm12 = vcmp.eq.s32.totalorder %v5455_v21, %v5192_v61  ;;  %vm1752_vm2 = vcmp.eq.s32.totalorder %v5455_v21, %v5424_v3 }
 0x1a4   : > { %v5448_v31 = vpop.permute.xlu1 %1993  ;;  %vm1896_vm4 = vcmp.eq.s32.totalorder %v5455_v21, %v5401_v6 }
 0x1a5   : > { %1117 = vperm.xlu0 %4470, %v5027_v16   ;;  %vm409_vm1 = vcmp.eq.s32.totalorder %v5464_v4, %v5088_v27  ;;  %vm297_vm3 = vcmp.eq.s32.totalorder %v5464_v4, %v5138_v44  ;;  %vm553_vm5 = vcmp.eq.s32.totalorder %v5464_v4, %v5195_v62  ;;  %vm697_vm7 = vcmp.eq.s32.totalorder %v5464_v4, %v5351_v36 }
 0x1a6   : > { %4396 = vset.pattern.permute.xlu1 %v8840_v30  ;;  %v5452_v8 = vpop.permute.xlu0 %1882  ;;  %v329_v27 = vsel %vm297_vm3, 1, %v8840_v30  ;;  %v728_v62 = vsel %vm696_vm6, 1, %v8840_v30  ;;  %vm841_vm9 = vcmp.eq.s32.totalorder %v5464_v4, %v5334_v26  ;;  %vm985_vm11 = vcmp.eq.s32.totalorder %v5464_v4, %v5243_v51 }
 0x1a7   : > { %8859 = vst [vmem:[#allocation88_spill] sm:$0xff] %v5452_v8  ;;  %1467 = vperm.xlu1 %4396, %v5178_v57   ;;  %v441_v8 = vsel %vm409_vm1, 1, %v8840_v30  ;;  %vm1497_vm13 = vcmp.eq.s32.totalorder %v5464_v4, %v5192_v61  ;;  %v1016_v26 = vsel %vm984_vm10, 1, %v8840_v30  ;;  %vm1609_vm1 = vcmp.eq.s32.totalorder %v5464_v4, %v5417_v14 }
 0x1a8   : > { %vm1753_vm3 = vcmp.eq.s32.totalorder %v5464_v4, %v5424_v3  ;;  %v1784_v61 = vsel %vm1752_vm2, 1, %v8840_v30  ;;  %vm2184_vm10 = vcmp.eq.s32.totalorder %v5455_v21, %v5262_v38  ;;  %vm1610_vm2 = vcmp.eq.s32.totalorder %v5455_v21, %v5432_v7 }
 0x1a9   : > { %v5458_v29 = vpop.permute.xlu1 %1567  ;;  %2317 = vperm.xlu0 %4470, %v5236_v56   ;;  %v585_v56 = vsel %vm553_vm5, 1, %v8840_v30  ;;  %vm1897_vm5 = vcmp.eq.s32.totalorder %v5464_v4, %v5401_v6 }
 0x1aa   : > { %v5461_v41 = vpop.permute.xlu0 %1885 }
 0x1ab   : > { %8860 = vst [vmem:[#allocation89_spill] sm:$0xff] %v5461_v41  ;;  %4397 = vset.pattern.permute.xlu1 %v8814_v37  ;;  %v440_v41 = vsel %vm408_vm0, 1, %v8840_v30  ;;  %vm1608_vm0 = vcmp.eq.s32.totalorder %v5455_v21, %v5417_v14  ;;  %v1529_v14 = vsel %vm1497_vm13, 1, %v8840_v30 }
 0x1ac   : > { %1579 = vperm.xlu1 %4397, %v5178_v57   ;;  %v472_v44 = vadd.s32 %v440_v41, %v328_v13  ;;  %v729_v41 = vsel %vm697_vm7, 1, %v8840_v30 }
 0x1ad   : > { %1120 = vperm.xlu0 %4470, %v4988_v9  }
 0x1ae   : > { %v5477_v16 = vpop.permute.xlu1 %1852  ;;  %v5479_v55 = vpop.permute.xlu0 %1888  ;;  %v616_v13 = vadd.s32 %v584_v17, %v472_v44  ;;  %v1017_v44 = vsel %vm985_vm11, 1, %v8840_v30  ;;  %vm2185_vm11 = vcmp.eq.s32.totalorder %v5464_v4, %v5262_v38 }
 0x1af   : > { %8861 = vst [vmem:[#allocation90_spill] sm:$0xff] %v5479_v55  ;;  %v473_v55 = vadd.s32 %v441_v8, %v329_v27 }
 0x1b0   : > { %4398 = vset.pattern.permute.xlu1 %v8842_v45 }
 0x1b1   : > { %2149 = vperm.xlu1 %4398, %v5344_v54   ;;  %2320 = vperm.xlu0 %4470, %v5246_v39   ;;  %v617_v8 = vadd.s32 %v585_v56, %v473_v55  ;;  %v872_v56 = vsel %vm840_vm8, 1, %v8840_v30  ;;  %vm2040_vm8 = vcmp.eq.s32.totalorder %v5455_v21, %v5448_v31 }
 0x1b2   : > { %v5492_v9 = vpop.permute.xlu0 %1891 }
 0x1b3   : > { %8862 = vst [vmem:[#allocation91_spill] sm:$0xff] %v5492_v9  ;;  %v1082_v48 = vpop.permute.xlu1 %1081  ;;  %v760_v9 = vadd.s32 %v728_v62, %v616_v13  ;;  %v4636_v62 = vld [vmem:[%s4952_s28 + $0x18] sm:$0xff] }
 0x1b4   : > { %vm1128_vm14 = vcmp.eq.s32.totalorder %v5455_v21, %v1082_v48  ;;  %vm1129_vm15 = vcmp.eq.s32.totalorder %v5464_v4, %v1082_v48  ;;  %v4637_v48 = vld [vmem:[%s4952_s28 + $0x20] sm:$0xff] }
 0x1b5   : > { %4399 = vset.pattern.permute.xlu1 %v8833_v32  ;;  %1126 = vperm.xlu0 %4470, %v4993_v10   ;;  %v761_v10 = vadd.s32 %v729_v41, %v617_v8  ;;  %v904_v55 = vadd.s32 %v872_v56, %v760_v9  ;;  %v1528_v41 = vsel %vm1496_vm12, 1, %v8840_v30  ;;  %v1160_v13 = vsel %vm1128_vm14, 1, %v8840_v30 }
 0x1b6   : > { %2434 = vperm.xlu1 %4399, %v5052_v22   ;;  %v1161_v3 = vsel %vm1129_vm15, 1, %v8840_v30  ;;  %v1640_v8 = vsel %vm1608_vm0, 1, %v8840_v30  ;;  %vm1498_vm0 = vcmp.eq.s32.totalorder %v5455_v21, %v5201_v24 }
 0x1b7   : > { %v5505_v27 = vpop.permute.xlu0 %796  ;;  %v1048_v56 = vadd.s32 %v1016_v26, %v904_v55 }
 0x1b8   : > { %v5507_v36 = vpop.permute.xlu1 %1711 }
 0x1b9   : > { %4473 = vset.pattern.permute.xlu0 %v8833_v32  ;;  %v1192_v19 = vadd.s32 %v1160_v13, %v1048_v56 }
 0x1ba   : > { %4400 = vset.pattern.permute.xlu1 %v8823_v34  ;;  %1228 = vperm.xlu0 %4473, %v4998_v11   ;;  %v873_v11 = vsel %vm841_vm9, 1, %v8840_v30  ;;  %vm2041_vm9 = vcmp.eq.s32.totalorder %v5464_v4, %v5448_v31  ;;  %v2072_v31 = vsel %vm2040_vm8, 1, %v8840_v30 }
 0x1bb   : > { %1723 = vperm.xlu1 %4400, %v5178_v57   ;;  %v5521_v22 = vpop.permute.xlu0 %805  ;;  %v905_v17 = vadd.s32 %v873_v11, %v761_v10  ;;  %v1641_v10 = vsel %vm1609_vm1, 1, %v8840_v30  ;;  %vm1499_vm1 = vcmp.eq.s32.totalorder %v5464_v4, %v5201_v24  ;;  %v1530_v24 = vsel %vm1498_vm0, 1, %v8840_v30 }
 0x1bc   : > { %v1673_v26 = vadd.s32 %v1641_v10, %v1529_v14  ;;  %v5606_v10 = vld [vmem:[%s4952_s28 + $0x30] sm:$0xff] }
 0x1bd   : > { %v5531_v51 = vpop.permute.xlu1 %2281  ;;  %v1049_v11 = vadd.s32 %v1017_v44, %v905_v17  ;;  %v1672_v17 = vadd.s32 %v1640_v8, %v1528_v41 }
 0x1be   : > { %1234 = vperm.xlu0 %4473, %v4636_v62   ;;  %v1785_v62 = vsel %vm1753_vm3, 1, %v8840_v30  ;;  %vm2328_vm12 = vcmp.eq.s32.totalorder %v5455_v21, %v5531_v51  ;;  %vm2329_vm13 = vcmp.eq.s32.totalorder %v5464_v4, %v5531_v51  ;;  %v5624_v51 = vld [vmem:[%s4952_s28 + $0x38] sm:$0xff]  ;;  %vm1611_vm3 = vcmp.eq.s32.totalorder %v5464_v4, %v5432_v7 }
 0x1bf   : > { %4401 = vset.pattern.permute.xlu1 %v8810_v40  ;;  %v5545_v9 = vpop.permute.xlu0 %811  ;;  %v1193_v55 = vadd.s32 %v1161_v3, %v1049_v11  ;;  %v1816_v13 = vadd.s32 %v1784_v61, %v1672_v17  ;;  %v1817_v56 = vadd.s32 %v1785_v62, %v1673_v26  ;;  %v2216_v62 = vsel %vm2184_vm10, 1, %v8840_v30 }
 0x1c0   : > { %8863 = vst [vmem:[#allocation92_spill] sm:$0xff] %v5545_v9  ;;  %2008 = vperm.xlu1 %4401, %v5057_v23   ;;  %v2360_v17 = vsel %vm2328_vm12, 1, %v8840_v30  ;;  %v1643_v7 = vsel %vm1611_vm3, 1, %v8840_v30  ;;  %vm2186_vm10 = vcmp.eq.s32.totalorder %v5455_v21, %v5268_v59 }
 0x1c2   : > { %v1226_v2 = vpop.permute.xlu1 %1225  ;;  %1237 = vperm.xlu0 %4473, %v4637_v48  }
 0x1c3   : > { %vm1272_vm6 = vcmp.eq.s32.totalorder %v5455_v21, %v1226_v2  ;;  %v5572_v9 = vpop.permute.xlu0 %817  ;;  %vm1273_vm7 = vcmp.eq.s32.totalorder %v5464_v4, %v1226_v2  ;;  %v1928_v2 = vsel %vm1896_vm4, 1, %v8840_v30  ;;  %vm1754_vm4 = vcmp.eq.s32.totalorder %v5455_v21, %v5441_v15 }
 0x1c4   : > { %8864 = vst [vmem:[#allocation93_spill] sm:$0xff] %v5572_v9  ;;  %v1304_v44 = vsel %vm1272_vm6, 1, %v8840_v30  ;;  %4402 = vset.pattern.permute.xlu1 %v8842_v45  ;;  %v1305_v58 = vsel %vm1273_vm7, 1, %v8840_v30  ;;  %v1960_v6 = vadd.s32 %v1928_v2, %v1816_v13  ;;  %vm1898_vm6 = vcmp.eq.s32.totalorder %v5455_v21, %v5477_v16 }
 0x1c5   : > { %952 = vperm.xlu1 %4402, %v4638_v0   ;;  %v1337_v20 = vadd.s32 %v1305_v58, %v1193_v55  ;;  %v1336_v48 = vadd.s32 %v1304_v44, %v1192_v19  ;;  %v1929_v58 = vsel %vm1897_vm5, 1, %v8840_v30  ;;  %v2217_v55 = vsel %vm2185_vm11, 1, %v8840_v30 }
 0x1c6   : > { %1240 = vperm.xlu0 %4473, %v4638_v0   ;;  %v2073_v0 = vsel %vm2041_vm9, 1, %v8840_v30  ;;  %v1961_v8 = vadd.s32 %v1929_v58, %v1817_v56  ;;  %v2104_v11 = vadd.s32 %v2072_v31, %v1960_v6  ;;  %v2361_v44 = vsel %vm2329_vm13, 1, %v8840_v30 }
 0x1c7   : > { %v5591_v19 = vpop.permute.xlu1 %1570  ;;  %v5593_v41 = vpop.permute.xlu0 %823  ;;  %v1369_v14 = vcvt.s32.f32 %v1337_v20  ;;  %v1368_v3 = vcvt.s32.f32 %v1336_v48  ;;  %vm1755_vm5 = vcmp.eq.s32.totalorder %v5464_v4, %v5441_v15  ;;  %vm1899_vm7 = vcmp.eq.s32.totalorder %v5464_v4, %v5477_v16 }
 0x1c8   : > { %8865 = vst [vmem:[#allocation94_spill] sm:$0xff] %v5593_v41  ;;  %v2105_v61 = vadd.s32 %v2073_v0, %v1961_v8  ;;  %v2248_v48 = vadd.s32 %v2216_v62, %v2104_v11  ;;  %v5636_v8 = vld [vmem:[%s4952_s28 + $0x40] sm:$0xff]  ;;  %v1786_v15 = vsel %vm1754_vm4, 1, %v8840_v30  ;;  %v1930_v16 = vsel %vm1898_vm6, 1, %v8840_v30 }
 0x1c9   : > { %4403 = vset.pattern.permute.xlu1 %v8840_v30  ;;  %2841 = vmatprep.mubr.f32.mxu1 %v1369_v14  ;;  %vm2187_vm11 = vcmp.eq.s32.totalorder %v5464_v4, %v5268_v59 }
 0x1ca   : > { %1470 = vperm.xlu1 %4403, %v5188_v60   ;;  %2842 = vmatmul.mubr.f32.vlgmr.msra.gmra.mrb[0].mxu1 %v1368_v3  ;;  %v2249_v13 = vadd.s32 %v2217_v55, %v2105_v61  ;;  %v2392_v2 = vadd.s32 %v2360_v17, %v2248_v48  ;;  %v4642_v17 = vld [vmem:[%s4952_s28 + $0x48] sm:$0xff] }
 0x1cb   : > { %v5603_v20 = vpop.permute.xlu0 %829  ;;  %1243 = vperm.xlu0 %4473, %v5606_v10  }
 0x1cc   : > { %8866 = vst [vmem:[#allocation95_spill] sm:$0xff] %v5603_v20  ;;  %v5613_v38 = vpop.permute.xlu1 %1855  ;;  %v2393_v58 = vadd.s32 %v2361_v44, %v2249_v13  ;;  %v4643_v13 = vld [vmem:[%s4952_s28 + $0x50] sm:$0xff] }
 0x1ce   : > { %4404 = vset.pattern.permute.xlu1 %v8814_v37 }
 0x1cf   : > { %1582 = vperm.xlu1 %4404, %v5188_v60   ;;  %v5620_v26 = vpop.permute.xlu0 %835  ;;  %1246 = vperm.xlu0 %4473, %v5624_v51  }
 0x1d0   : > { %8867 = vst [vmem:[#allocation96_spill] sm:$0xff] %v5620_v26 }
 0x1d1   : > { %v2426_v56 = vpop.permute.xlu1 %2425 }
 0x1d2   : > { %vm2472_vm14 = vcmp.eq.s32.totalorder %v5455_v21, %v2426_v56  ;;  %vm2473_vm15 = vcmp.eq.s32.totalorder %v5464_v4, %v2426_v56 }
 0x1d3   : > { %v2504_v14 = vsel %vm2472_vm14, 1, %v8840_v30  ;;  %4405 = vset.pattern.permute.xlu1 %v8842_v45  ;;  %v5631_v3 = vpop.permute.xlu0 %1996  ;;  %v2505_v31 = vsel %vm2473_vm15, 1, %v8840_v30  ;;  %1249 = vperm.xlu0 %4473, %v5636_v8   ;;  %vm302_vm14 = vcmp.eq.s32.totalorder %v5455_v21, %v5091_v28  ;;  %vm303_vm15 = vcmp.eq.s32.totalorder %v5464_v4, %v5091_v28 }
 0x1d4   : > { %2152 = vperm.xlu1 %4405, %v5057_v23   ;;  %v2537_v0 = vadd.s32 %v2505_v31, %v2393_v58  ;;  %v2536_v6 = vadd.s32 %v2504_v14, %v2392_v2  ;;  %v1531_v31 = vsel %vm1499_vm1, 1, %v8840_v30  ;;  %vm2042_vm8 = vcmp.eq.s32.totalorder %v5455_v21, %v5631_v3 }
 0x1d5   : > { %vm2043_vm9 = vcmp.eq.s32.totalorder %v5464_v4, %v5631_v3  ;;  %v2074_v20 = vsel %vm2042_vm8, 1, %v8840_v30  ;;  %v334_v28 = vsel %vm302_vm14, 1, %v8840_v30 }
 0x1d6   : > { %v5639_v11 = vpop.permute.xlu1 %1084  ;;  %v2569_v61 = vcvt.s32.f32 %v2537_v0  ;;  %v2568_v62 = vcvt.s32.f32 %v2536_v6  ;;  %v1642_v0 = vsel %vm1610_vm2, 1, %v8840_v30  ;;  %v4645_v6 = vld [vmem:[%s4952_s28 + $0x60] sm:$0xff] }
 0x1d7   : > { %v5641_v55 = vpop.permute.xlu0 %2038  ;;  %1252 = vperm.xlu0 %4473, %v4642_v17   ;;  %v1674_v17 = vadd.s32 %v1642_v0, %v1530_v24  ;;  %v2075_v24 = vsel %vm2043_vm9, 1, %v8840_v30 }
 0x1d8   : > { %8868 = vst [vmem:[#allocation97_spill] sm:$0xff] %v5641_v55  ;;  %4406 = vset.pattern.permute.xlu1 %v8833_v32  ;;  %2696 = vmatprep.mubr.f32.mxu0 %v2569_v61  ;;  %v1787_v61 = vsel %vm1755_vm5, 1, %v8840_v30  ;;  %v4646_v55 = vld [vmem:[%s4952_s28 + $0x68] sm:$0xff] }
 0x1d9   : > { %2437 = vperm.xlu1 %4406, %v5344_v54   ;;  %2697 = vmatmul.mubr.f32.vlgmr.msra.gmra.mrb[0].mxu0 %v2568_v62  ;;  %v4644_v54 = vld [vmem:[%s4952_s28 + $0x58] sm:$0xff]  ;;  %v1818_v26 = vadd.s32 %v1786_v15, %v1674_v17  ;;  %v2219_v17 = vsel %vm2187_vm11, 1, %v8840_v30 }
 0x1db   : > { %v5646_v44 = vpop.permute.xlu1 %1999  ;;  %1255 = vperm.xlu0 %4473, %v4643_v13   ;;  %v1675_v13 = vadd.s32 %v1643_v7, %v1531_v31  ;;  %v1962_v3 = vadd.s32 %v1930_v16, %v1818_v26 }
 0x1dc   : > { %v5648_v48 = vpop.permute.xlu0 %1087 }
 0x1dd   : > { %4407 = vset.pattern.permute.xlu1 %v8823_v34 }
 0x1de   : > { %1726 = vperm.xlu1 %4407, %v5188_v60  }
 0x1df   : > { %1258 = vperm.xlu0 %4473, %v4644_v54   ;;  %v1931_v54 = vsel %vm1899_vm7, 1, %v8840_v30 }
 0x1e0   : > { %v2285_v56 = vpop.permute.xlu1 %2284  ;;  %v5653_v2 = vpop.permute.xlu0 %2287 }
 0x1e1   : > { %vm2330_vm12 = vcmp.eq.s32.totalorder %v5455_v21, %v2285_v56  ;;  %vm2331_vm13 = vcmp.eq.s32.totalorder %v5464_v4, %v2285_v56  ;;  %v4647_v56 = vld [vmem:[%s4952_s28 + $0x70] sm:$0xff] }
 0x1e2   : > { %4408 = vset.pattern.permute.xlu1 %v8810_v40  ;;  %v2363_v26 = vsel %vm2331_vm13, 1, %v8840_v30 }
 0x1e3   : > { %2011 = vperm.xlu1 %4408, %v5178_v57   ;;  %1261 = vperm.xlu0 %4473, %v4645_v6  }
 0x1e4   : > { %v5666_v58 = vpop.permute.xlu0 %1093 }
 0x1e5   : > { %8869 = vst [vmem:[#allocation98_spill] sm:$0xff] %v5666_v58  ;;  %v5672_v14 = vpop.permute.xlu1 %1461 }
 0x1e6   : > { %8870 = vst [vmem:[#allocation99_spill] sm:$0xff] %v5672_v14 }
 0x1e7   : > { %4409 = vset.pattern.permute.xlu1 %v8842_v45  ;;  %1264 = vperm.xlu0 %4473, %v4646_v55   ;;  %v2106_v55 = vadd.s32 %v2074_v20, %v1962_v3  ;;  %v2362_v20 = vsel %vm2330_vm12, 1, %v8840_v30 }
 0x1e8   : > { %955 = vperm.xlu1 %4409, %v5606_v10   ;;  %v5687_v62 = vpop.permute.xlu0 %2293  ;;  %v1819_v10 = vadd.s32 %v1787_v61, %v1675_v13  ;;  %v2218_v61 = vsel %vm2186_vm10, 1, %v8840_v30  ;;  %v8875_v13 = vld [vmem:[#allocation12_spill] sm:$0xff] }
 0x1e9   : > { %8871 = vst [vmem:[#allocation100_spill] sm:$0xff] %v5687_v62  ;;  %vm414_vm0 = vcmp.eq.s32.totalorder %v5455_v21, %v8875_v13  ;;  %vm415_vm1 = vcmp.eq.s32.totalorder %v5464_v4, %v8875_v13  ;;  %v2250_v16 = vadd.s32 %v2218_v61, %v2106_v55  ;;  %v8878_v13 = vld [vmem:[#allocation13_spill] sm:$0xff] }
 0x1ea   : > { %v5695_v6 = vpop.permute.xlu1 %1573  ;;  %v1963_v0 = vadd.s32 %v1931_v54, %v1819_v10  ;;  %v8876_v10 = vld [vmem:[#allocation11_spill] sm:$0xff]  ;;  %v446_v55 = vsel %vm414_vm0, 1, %v8840_v30  ;;  %vm306_vm6 = vcmp.eq.s32.totalorder %v5455_v21, %v8878_v13  ;;  %vm307_vm7 = vcmp.eq.s32.totalorder %v5464_v4, %v8878_v13  ;;  %v8886_v13 = vld [vmem:[#allocation28_spill] sm:$0xff] }
 0x1eb   : > { %8872 = vst [vmem:[#allocation101_spill] sm:$0xff] %v5695_v6  ;;  %2464 = vperm.xlu0 %4473, %v5246_v39   ;;  %vm300_vm2 = vcmp.eq.s32.totalorder %v5455_v21, %v8876_v10  ;;  %vm301_vm3 = vcmp.eq.s32.totalorder %v5464_v4, %v8876_v10  ;;  %v5771_v10 = vadd.s32 %v446_v55, %v334_v28  ;;  %v339_v39 = vsel %vm307_vm7, 1, %v8840_v30  ;;  %v8884_v55 = vld [vmem:[#allocation27_spill] sm:$0xff] }
 0x1ec   : > { %4410 = vset.pattern.permute.xlu1 %v8840_v30  ;;  %v5701_v31 = vpop.permute.xlu0 %1096  ;;  %v2107_v7 = vadd.s32 %v2075_v24, %v1963_v0  ;;  %v335_v24 = vsel %vm303_vm15, 1, %v8840_v30  ;;  %vm298_vm14 = vcmp.eq.s32.totalorder %v5455_v21, %v8884_v55  ;;  %vm299_vm15 = vcmp.eq.s32.totalorder %v5464_v4, %v8884_v55 }
 0x1ed   : > { %8873 = vst [vmem:[#allocation102_spill] sm:$0xff] %v5701_v31  ;;  %1473 = vperm.xlu1 %4410, %v5198_v63   ;;  %vm416_vm0 = vcmp.eq.s32.totalorder %v5455_v21, %v8886_v13  ;;  %vm1613_vm7 = vcmp.eq.s32.totalorder %v5464_v4, %v5458_v29 }
 0x1ee   : > { %v2251_v54 = vadd.s32 %v2219_v17, %v2107_v7  ;;  %v447_v7 = vsel %vm415_vm1, 1, %v8840_v30  ;;  %vm417_vm1 = vcmp.eq.s32.totalorder %v5464_v4, %v8886_v13 }
 0x1ef   : > { %v5711_v15 = vpop.permute.xlu1 %2143  ;;  %1267 = vperm.xlu0 %4473, %v4647_v56   ;;  %v2394_v56 = vadd.s32 %v2362_v20, %v2250_v16  ;;  %v332_v16 = vsel %vm300_vm2, 1, %v8840_v30  ;;  %v5773_v9 = vadd.s32 %v447_v7, %v335_v24 }
 0x1f0   : > { %v5715_v59 = vpop.permute.xlu0 %2296  ;;  %v2395_v41 = vadd.s32 %v2363_v26, %v2251_v54  ;;  %v333_v54 = vsel %vm301_vm3, 1, %v8840_v30 }
 0x1f1   : > { %8874 = vst [vmem:[#allocation103_spill] sm:$0xff] %v5715_v59  ;;  %4411 = vset.pattern.permute.xlu1 %v8814_v37 }
 0x1f2   : > { %1585 = vperm.xlu1 %4411, %v5198_v63  }
 0x1f3   : > { %2470 = vperm.xlu0 %4473, %v5319_v52  }
 0x1f4   : > { %v2429_v3 = vpop.permute.xlu1 %2428  ;;  %v5736_v0 = vpop.permute.xlu0 %1099 }
 0x1f5   : > { %8877 = vst [vmem:[#allocation12_spill] sm:$0xff] %v5736_v0  ;;  %vm2474_vm4 = vcmp.eq.s32.totalorder %v5455_v21, %v2429_v3  ;;  %vm2475_vm5 = vcmp.eq.s32.totalorder %v5464_v4, %v2429_v3  ;;  %v8879_v3 = vld [vmem:[#allocation14_spill] sm:$0xff] }
 0x1f6   : > { %v2506_v61 = vsel %vm2474_vm4, 1, %v8840_v30  ;;  %v2507_v17 = vsel %vm2475_vm5, 1, %v8840_v30  ;;  %4412 = vset.pattern.permute.xlu1 %v8842_v45  ;;  %vm418_vm8 = vcmp.eq.s32.totalorder %v5455_v21, %v8879_v3  ;;  %vm419_vm9 = vcmp.eq.s32.totalorder %v5464_v4, %v8879_v3 }
 0x1f7   : > { %2155 = vperm.xlu1 %4412, %v5178_v57   ;;  %v2539_v20 = vadd.s32 %v2507_v17, %v2395_v41  ;;  %v2538_v26 = vadd.s32 %v2506_v61, %v2394_v56  ;;  %v8881_v41 = vld [vmem:[#allocation26_spill] sm:$0xff]  ;;  %v338_v3 = vsel %vm306_vm6, 1, %v8840_v30  ;;  %vm1612_vm6 = vcmp.eq.s32.totalorder %v5455_v21, %v5458_v29 }
 0x1f8   : > { %v5763_v52 = vpop.permute.xlu0 %2299  ;;  %vm412_vm10 = vcmp.eq.s32.totalorder %v5455_v21, %v8881_v41  ;;  %vm413_vm11 = vcmp.eq.s32.totalorder %v5464_v4, %v8881_v41  ;;  %v450_v41 = vsel %vm418_vm8, 1, %v8840_v30 }
 0x1f9   : > { %8880 = vst [vmem:[#allocation11_spill] sm:$0xff] %v5763_v52  ;;  %v5769_v56 = vpop.permute.xlu1 %1717  ;;  %v2571_v61 = vcvt.s32.f32 %v2539_v20  ;;  %v2570_v17 = vcvt.s32.f32 %v2538_v26  ;;  %v451_v52 = vsel %vm419_vm9, 1, %v8840_v30  ;;  %v8883_v20 = vld [vmem:[#allocation25_spill] sm:$0xff]  ;;  %v444_v28 = vsel %vm412_vm10, 1, %v8840_v30 }
 0x1fa   : > { %8882 = vst [vmem:[#allocation13_spill] sm:$0xff] %v5769_v56  ;;  %vm410_vm12 = vcmp.eq.s32.totalorder %v5455_v21, %v8883_v20  ;;  %vm411_vm13 = vcmp.eq.s32.totalorder %v5464_v4, %v8883_v20  ;;  %v445_v24 = vsel %vm413_vm11, 1, %v8840_v30  ;;  %v8887_v26 = vld [vmem:[#allocation29_spill] sm:$0xff]  ;;  %v5809_v59 = vadd.s32 %v451_v52, %v339_v39 }
 0x1fb   : > { %4413 = vset.pattern.permute.xlu1 %v8833_v32  ;;  %2701 = vmatprep.mubr.f32.mxu0 %v2571_v61  ;;  %vm304_vm2 = vcmp.eq.s32.totalorder %v5455_v21, %v8887_v26  ;;  %vm305_vm3 = vcmp.eq.s32.totalorder %v5464_v4, %v8887_v26  ;;  %v5807_v61 = vadd.s32 %v450_v41, %v338_v3  ;;  %v330_v39 = vsel %vm298_vm14, 1, %v8840_v30  ;;  %v8890_v26 = vld [vmem:[#allocation40_spill] sm:$0xff]  ;;  %v8893_v56 = vld [vmem:[#allocation45_spill] sm:$0xff] }
 0x1fc   : > { %2440 = vperm.xlu1 %4413, %v5057_v23   ;;  %2702 = vmatmul.mubr.f32.gmra.mrb[2].mxu0 %v2570_v17  ;;  %v5797_v7 = vpop.permute.xlu0 %1102  ;;  %v442_v23 = vsel %vm410_vm12, 1, %v8840_v30  ;;  %v443_v17 = vsel %vm411_vm13, 1, %v8840_v30  ;;  %v5821_v0 = vadd.s32 %v445_v24, %v333_v54  ;;  %v331_v52 = vsel %vm299_vm15, 1, %v8840_v30 }
 0x1fd   : > { %8885 = vst [vmem:[#allocation14_spill] sm:$0xff] %v5797_v7  ;;  %v476_v7 = vadd.s32 %v444_v28, %v332_v16  ;;  %v448_v3 = vsel %vm416_vm0, 1, %v8840_v30  ;;  %v449_v41 = vsel %vm417_vm1, 1, %v8840_v30  ;;  %v336_v20 = vsel %vm304_vm2, 1, %v8840_v30  ;;  %v8889_v28 = vld [vmem:[#allocation41_spill] sm:$0xff] }
 0x1fe   : > { %v5819_v13 = vpop.permute.xlu1 %2002  ;;  %v337_v16 = vsel %vm305_vm3, 1, %v8840_v30  ;;  %vm1500_vm4 = vcmp.eq.s32.totalorder %v5455_v21, %v8889_v28  ;;  %vm1501_vm5 = vcmp.eq.s32.totalorder %v5464_v4, %v8889_v28  ;;  %v5847_v24 = vadd.s32 %v442_v23, %v330_v39 }
 0x1ff   : > { %v5849_v55 = vadd.s32 %v443_v17, %v331_v52  ;;  %vm556_vm8 = vcmp.eq.s32.totalorder %v5455_v21, %v8890_v26  ;;  %vm557_vm9 = vcmp.eq.s32.totalorder %v5464_v4, %v8890_v26  ;;  %v5857_v28 = vadd.s32 %v449_v41, %v337_v16 }
 0x200   : > { %4414 = vset.pattern.permute.xlu1 %v8823_v34  ;;  %v5836_v54 = vpop.permute.xlu0 %2302  ;;  %vm1756_vm10 = vcmp.eq.s32.totalorder %v5455_v21, %v5507_v36  ;;  %vm1757_vm11 = vcmp.eq.s32.totalorder %v5464_v4, %v5507_v36  ;;  %v1532_v23 = vsel %vm1500_vm4, 1, %v8840_v30  ;;  %v1533_v17 = vsel %vm1501_vm5, 1, %v8840_v30  ;;  %v8892_v36 = vld [vmem:[#allocation42_spill] sm:$0xff] }
 0x201   : > { %8888 = vst [vmem:[#allocation26_spill] sm:$0xff] %v5836_v54  ;;  %1729 = vperm.xlu1 %4414, %v5198_v63   ;;  %v5855_v54 = vadd.s32 %v448_v3, %v336_v20  ;;  %v1644_v39 = vsel %vm1612_vm6, 1, %v8840_v30  ;;  %v1645_v52 = vsel %vm1613_vm7, 1, %v8840_v30  ;;  %v588_v41 = vsel %vm556_vm8, 1, %v8840_v30 }
 0x202   : > { %v589_v20 = vsel %vm557_vm9, 1, %v8840_v30  ;;  %vm1900_vm12 = vcmp.eq.s32.totalorder %v5455_v21, %v5613_v38  ;;  %vm1901_vm13 = vcmp.eq.s32.totalorder %v5464_v4, %v5613_v38  ;;  %vm558_vm14 = vcmp.eq.s32.totalorder %v5455_v21, %v8892_v36 }
 0x203   : > { %v5863_v29 = vpop.permute.xlu1 %1231  ;;  %vm559_vm15 = vcmp.eq.s32.totalorder %v5464_v4, %v8892_v36  ;;  %v1788_v16 = vsel %vm1756_vm10, 1, %v8840_v30  ;;  %v1789_v26 = vsel %vm1757_vm11, 1, %v8840_v30  ;;  %v1677_v62 = vadd.s32 %v1645_v52, %v1533_v17 }
 0x204   : > { %v5869_v3 = vpop.permute.xlu0 %1105  ;;  %vm2044_vm0 = vcmp.eq.s32.totalorder %v5455_v21, %v5646_v44  ;;  %vm2045_vm1 = vcmp.eq.s32.totalorder %v5464_v4, %v5646_v44  ;;  %v5889_v38 = vadd.s32 %v588_v41, %v476_v7  ;;  %vm562_vm2 = vcmp.eq.s32.totalorder %v5455_v21, %v8893_v56 }
 0x205   : > { %8891 = vst [vmem:[#allocation25_spill] sm:$0xff] %v5869_v3  ;;  %4415 = vset.pattern.permute.xlu1 %v8810_v40  ;;  %v1676_v3 = vadd.s32 %v1644_v39, %v1532_v23  ;;  %v1932_v6 = vsel %vm1900_vm12, 1, %v8840_v30  ;;  %v1933_v31 = vsel %vm1901_vm13, 1, %v8840_v30  ;;  %v1821_v17 = vadd.s32 %v1789_v26, %v1677_v62 }
 0x206   : > { %2014 = vperm.xlu1 %4415, %v5188_v60   ;;  %vm2188_vm3 = vcmp.eq.s32.totalorder %v5455_v21, %v5711_v15  ;;  %vm2189_vm4 = vcmp.eq.s32.totalorder %v5464_v4, %v5711_v15  ;;  %v590_v44 = vsel %vm558_vm14, 1, %v8840_v30  ;;  %v591_v7 = vsel %vm559_vm15, 1, %v8840_v30  ;;  %v8896_v15 = vld [vmem:[#allocation44_spill] sm:$0xff] }
 0x207   : > { %v1820_v23 = vadd.s32 %v1788_v16, %v1676_v3  ;;  %v2076_v39 = vsel %vm2044_vm0, 1, %v8840_v30  ;;  %v2077_v62 = vsel %vm2045_vm1, 1, %v8840_v30  ;;  %vm563_vm5 = vcmp.eq.s32.totalorder %v5464_v4, %v8893_v56 }
 0x208   : > { %v5895_v14 = vpop.permute.xlu1 %1576  ;;  %v5897_v58 = vpop.permute.xlu0 %2305  ;;  %vm1502_vm6 = vcmp.eq.s32.totalorder %v5455_v21, %v8896_v15  ;;  %v1965_v3 = vadd.s32 %v1933_v31, %v1821_v17  ;;  %v594_v41 = vsel %vm562_vm2, 1, %v8840_v30  ;;  %vm1503_vm7 = vcmp.eq.s32.totalorder %v5464_v4, %v8896_v15  ;;  %v8897_v17 = vld [vmem:[#allocation53_spill] sm:$0xff] }
 0x209   : > { %8894 = vst [vmem:[#allocation27_spill] sm:$0xff] %v5895_v14  ;;  %8895 = vst [vmem:[#allocation28_spill] sm:$0xff] %v5897_v58  ;;  %v1964_v52 = vadd.s32 %v1932_v6, %v1820_v23  ;;  %v2220_v36 = vsel %vm2188_vm3, 1, %v8840_v30  ;;  %v2221_v16 = vsel %vm2189_vm4, 1, %v8840_v30  ;;  %vm2332_vm8 = vcmp.eq.s32.totalorder %v5455_v21, %v5653_v2 }
 0x20a   : > { %4416 = vset.pattern.permute.xlu1 %v8842_v45  ;;  %v2109_v14 = vadd.s32 %v2077_v62, %v1965_v3  ;;  %vm2333_vm9 = vcmp.eq.s32.totalorder %v5464_v4, %v5653_v2  ;;  %v5936_v6 = vadd.s32 %v589_v20, %v5821_v0  ;;  %v5939_v31 = vadd.s32 %v590_v44, %v5771_v10 }
 0x20b   : > { %958 = vperm.xlu1 %4416, %v5624_v51   ;;  %v2108_v58 = vadd.s32 %v2076_v39, %v1964_v52  ;;  %v595_v23 = vsel %vm563_vm5, 1, %v8840_v30  ;;  %vm990_vm10 = vcmp.eq.s32.totalorder %v5455_v21, %v8897_v17  ;;  %v5948_v39 = vadd.s32 %v591_v7, %v5773_v9 }
 0x20c   : > { %v5927_v26 = vpop.permute.xlu0 %1108  ;;  %v5954_v2 = vsel %vm1502_vm6, 1, %v8840_v30  ;;  %v2253_v10 = vadd.s32 %v2221_v16, %v2109_v14  ;;  %v5958_v20 = vadd.s32 %v594_v41, %v5807_v61  ;;  %v5964_v56 = vsel %vm1503_vm7, 1, %v8840_v30 }
 0x20d   : > { %v5933_v51 = vpop.permute.xlu1 %1861  ;;  %v2252_v0 = vadd.s32 %v2220_v36, %v2108_v58  ;;  %v2364_v9 = vsel %vm2332_vm8, 1, %v8840_v30  ;;  %v2365_v44 = vsel %vm2333_vm9, 1, %v8840_v30  ;;  %v5972_v58 = vadd.s32 %v595_v23, %v5809_v59  ;;  %v8898_v23 = vld [vmem:[#allocation57_spill] sm:$0xff] }
 0x20e   : > { %vm991_vm11 = vcmp.eq.s32.totalorder %v5464_v4, %v8897_v17  ;;  %v5977_v14 = vsel %vm990_vm10, 1, %v8840_v30  ;;  %vm554_vm12 = vcmp.eq.s32.totalorder %v5455_v21, %v5283_v46  ;;  %vm2190_vm13 = vcmp.eq.s32.totalorder %v5455_v21, %v5273_v49 }
 0x20f   : > { %4417 = vset.pattern.permute.xlu1 %v8840_v30  ;;  %vm2191_vm14 = vcmp.eq.s32.totalorder %v5464_v4, %v5273_v49  ;;  %vm555_vm15 = vcmp.eq.s32.totalorder %v5464_v4, %v5283_v46  ;;  %vm560_vm0 = vcmp.eq.s32.totalorder %v5455_v21, %v5290_v1  ;;  %v2397_v61 = vadd.s32 %v2365_v44, %v2253_v10 }
 0x210   : > { %1476 = vperm.xlu1 %4417, %v5208_v25   ;;  %v5969_v7 = vpop.permute.xlu0 %2308  ;;  %v2396_v62 = vadd.s32 %v2364_v9, %v2252_v0  ;;  %vm700_vm3 = vcmp.eq.s32.totalorder %v5455_v21, %v5281_v43  ;;  %v586_v15 = vsel %vm554_vm12, 1, %v8840_v30  ;;  %v587_v41 = vsel %vm555_vm15, 1, %v8840_v30 }
 0x211   : > { %vm561_vm4 = vcmp.eq.s32.totalorder %v5464_v4, %v5290_v1  ;;  %vm698_vm5 = vcmp.eq.s32.totalorder %v5455_v21, %v8898_v23  ;;  %vm699_vm6 = vcmp.eq.s32.totalorder %v5464_v4, %v8898_v23  ;;  %vm701_vm7 = vcmp.eq.s32.totalorder %v5464_v4, %v5281_v43 }
 0x212   : > { %v2432_v59 = vpop.permute.xlu1 %2431  ;;  %v592_v0 = vsel %vm560_vm0, 1, %v8840_v30  ;;  %v732_v10 = vsel %vm700_vm3, 1, %v8840_v30  ;;  %v618_v9 = vadd.s32 %v586_v15, %v5847_v24  ;;  %v593_v43 = vsel %vm561_vm4, 1, %v8840_v30 }
 0x213   : > { %vm2476_vm1 = vcmp.eq.s32.totalorder %v5455_v21, %v2432_v59  ;;  %vm2477_vm2 = vcmp.eq.s32.totalorder %v5464_v4, %v2432_v59  ;;  %vm702_vm9 = vcmp.eq.s32.totalorder %v5455_v21, %v5357_v53  ;;  %v624_v24 = vadd.s32 %v592_v0, %v5855_v54 }
 0x214   : > { %v2508_v52 = vsel %vm2476_vm1, 1, %v8840_v30  ;;  %v2509_v3 = vsel %vm2477_vm2, 1, %v8840_v30  ;;  %4418 = vset.pattern.permute.xlu1 %v8814_v37  ;;  %v5997_v46 = vpop.permute.xlu0 %1111  ;;  %vm703_vm12 = vcmp.eq.s32.totalorder %v5464_v4, %v5357_v53  ;;  %v730_v15 = vsel %vm698_vm5, 1, %v8840_v30 }
 0x215   : > { %1588 = vperm.xlu1 %4418, %v5208_v25   ;;  %v2541_v36 = vadd.s32 %v2509_v3, %v2397_v61  ;;  %v2540_v16 = vadd.s32 %v2508_v52, %v2396_v62  ;;  %v619_v62 = vadd.s32 %v587_v41, %v5849_v55  ;;  %v8899_v52 = vld [vmem:[#allocation58_spill] sm:$0xff]  ;;  %v733_v3 = vsel %vm701_vm7, 1, %v8840_v30 }
 0x216   : > { %vm704_vm8 = vcmp.eq.s32.totalorder %v5455_v21, %v8899_v52  ;;  %vm705_vm10 = vcmp.eq.s32.totalorder %v5464_v4, %v8899_v52  ;;  %v6036_v55 = vsel %vm991_vm11, 1, %v8840_v30  ;;  %v6046_v54 = vsel %vm2190_vm13, 1, %v8840_v30 }
 0x217   : > { %v6015_v44 = vpop.permute.xlu1 %1090  ;;  %v2573_v59 = vcvt.s32.f32 %v2541_v36  ;;  %v2572_v61 = vcvt.s32.f32 %v2540_v16  ;;  %v6052_v41 = vsel %vm2191_vm14, 1, %v8840_v30  ;;  %v731_v17 = vsel %vm699_vm6, 1, %v8840_v30 }
 0x218   : > { %v6023_v1 = vpop.permute.xlu0 %2311  ;;  %v764_v36 = vadd.s32 %v732_v10, %v5889_v38  ;;  %v625_v16 = vadd.s32 %v593_v43, %v5857_v28  ;;  %v734_v0 = vsel %vm702_vm9, 1, %v8840_v30  ;;  %v765_v49 = vadd.s32 %v733_v3, %v5936_v6 }
 0x219   : > { %4419 = vset.pattern.permute.xlu1 %v8842_v45  ;;  %2706 = vmatprep.mubr.f32.mxu0 %v2573_v59  ;;  %v736_v59 = vsel %vm704_vm8, 1, %v8840_v30  ;;  %v737_v23 = vsel %vm705_vm10, 1, %v8840_v30  ;;  %v735_v28 = vsel %vm703_vm12, 1, %v8840_v30  ;;  %vm706_vm11 = vcmp.eq.s32.totalorder %v5455_v21, %v5363_v12 }
 0x21a   : > { %2158 = vperm.xlu1 %4419, %v5188_v60   ;;  %2707 = vmatmul.mubr.f32.gmra.mrb[4].mxu0 %v2572_v61  ;;  %v6084_v6 = vadd.s32 %v730_v15, %v618_v9  ;;  %v6086_v61 = vadd.s32 %v731_v17, %v619_v62  ;;  %v6088_v43 = vadd.s32 %v736_v59, %v624_v24 }
 0x21b   : > { %vm844_vm13 = vcmp.eq.s32.totalorder %v5455_v21, %v5341_v35  ;;  %vm845_vm14 = vcmp.eq.s32.totalorder %v5464_v4, %v5341_v35  ;;  %vm846_vm15 = vcmp.eq.s32.totalorder %v5455_v21, %v5348_v42  ;;  %v766_v53 = vadd.s32 %v734_v0, %v5939_v31 }
 0x21c   : > { %v6078_v38 = vpop.permute.xlu1 %2005  ;;  %v6080_v10 = vpop.permute.xlu0 %1114  ;;  %vm1758_vm0 = vcmp.eq.s32.totalorder %v5455_v21, %v5331_v47  ;;  %vm847_vm1 = vcmp.eq.s32.totalorder %v5464_v4, %v5348_v42  ;;  %v767_v9 = vadd.s32 %v735_v28, %v5948_v39  ;;  %v6103_v62 = vadd.s32 %v737_v23, %v625_v16 }
 0x21d   : > { %vm1759_vm2 = vcmp.eq.s32.totalorder %v5464_v4, %v5331_v47  ;;  %v738_v35 = vsel %vm706_vm11, 1, %v8840_v30  ;;  %vm1614_vm3 = vcmp.eq.s32.totalorder %v5455_v21, %v5591_v19  ;;  %vm1615_vm4 = vcmp.eq.s32.totalorder %v5464_v4, %v5591_v19 }
 0x21e   : > { %4420 = vset.pattern.permute.xlu1 %v8833_v32  ;;  %v876_v42 = vsel %vm844_vm13, 1, %v8840_v30  ;;  %v877_v39 = vsel %vm845_vm14, 1, %v8840_v30  ;;  %v878_v52 = vsel %vm846_vm15, 1, %v8840_v30  ;;  %vm707_vm5 = vcmp.eq.s32.totalorder %v5464_v4, %v5363_v12 }
 0x21f   : > { %2443 = vperm.xlu1 %4420, %v5178_v57   ;;  %v879_v3 = vsel %vm847_vm1, 1, %v8840_v30  ;;  %vm850_vm6 = vcmp.eq.s32.totalorder %v5455_v21, %v5354_v18  ;;  %vm851_vm7 = vcmp.eq.s32.totalorder %v5464_v4, %v5354_v18  ;;  %v910_v19 = vadd.s32 %v878_v52, %v766_v53 }
 0x220   : > { %v6113_v31 = vpop.permute.xlu0 %2314  ;;  %v911_v24 = vadd.s32 %v879_v3, %v767_v9  ;;  %v770_v15 = vadd.s32 %v738_v35, %v5958_v20  ;;  %v1646_v17 = vsel %vm1614_vm3, 1, %v8840_v30  ;;  %v1647_v16 = vsel %vm1615_vm4, 1, %v8840_v30 }
 0x221   : > { %v6120_v57 = vpop.permute.xlu1 %2290  ;;  %v1790_v12 = vsel %vm1758_vm0, 1, %v8840_v30  ;;  %v1791_v0 = vsel %vm1759_vm2, 1, %v8840_v30  ;;  %v739_v59 = vsel %vm707_vm5, 1, %v8840_v30  ;;  %vm986_vm8 = vcmp.eq.s32.totalorder %v5455_v21, %v5396_v5 }
 0x222   : > { %v908_v23 = vadd.s32 %v876_v42, %v764_v36  ;;  %v909_v28 = vadd.s32 %v877_v39, %v765_v49  ;;  %v882_v53 = vsel %vm850_vm6, 1, %v8840_v30  ;;  %v6153_v47 = vsel %vm851_vm7, 1, %v8840_v30 }
 0x223   : > { %4421 = vset.pattern.permute.xlu1 %v8823_v34  ;;  %vm987_vm9 = vcmp.eq.s32.totalorder %v5464_v4, %v5396_v5  ;;  %v1678_v9 = vadd.s32 %v1646_v17, %v5954_v2  ;;  %v1679_v35 = vadd.s32 %v1647_v16, %v5964_v56  ;;  %v6160_v36 = vadd.s32 %v5977_v14, %v910_v19 }
 0x224   : > { %1732 = vperm.xlu1 %4421, %v5208_v25   ;;  %v6143_v20 = vpop.permute.xlu0 %1117  ;;  %v6165_v42 = vadd.s32 %v739_v59, %v5972_v58  ;;  %v1018_v39 = vsel %vm986_vm8, 1, %v8840_v30  ;;  %v6169_v18 = vadd.s32 %v6036_v55, %v911_v24  ;;  %v6171_v52 = vadd.s32 %v882_v53, %v770_v15  ;;  %v8901_v15 = vld [vmem:[#allocation81_spill] sm:$0xff] }
 0x225   : > { %vm1902_vm10 = vcmp.eq.s32.totalorder %v5455_v21, %v5408_v50  ;;  %vm1903_vm12 = vcmp.eq.s32.totalorder %v5464_v4, %v5408_v50  ;;  %vm842_vm11 = vcmp.eq.s32.totalorder %v5455_v21, %v5505_v27  ;;  %vm843_vm13 = vcmp.eq.s32.totalorder %v5464_v4, %v5505_v27 }
 0x226   : > { %v6162_v49 = vpop.permute.xlu1 %1467  ;;  %v1019_v2 = vsel %vm987_vm9, 1, %v8840_v30  ;;  %vm988_vm14 = vcmp.eq.s32.totalorder %v5455_v21, %v5403_v33  ;;  %vm989_vm15 = vcmp.eq.s32.totalorder %v5464_v4, %v5403_v33  ;;  %vm848_vm0 = vcmp.eq.s32.totalorder %v5455_v21, %v5521_v22 }
 0x227   : > { %v1822_v50 = vadd.s32 %v1790_v12, %v1678_v9  ;;  %v1823_v56 = vadd.s32 %v1791_v0, %v1679_v35  ;;  %vm2046_vm1 = vcmp.eq.s32.totalorder %v5455_v21, %v5819_v13  ;;  %vm2047_vm2 = vcmp.eq.s32.totalorder %v5464_v4, %v5819_v13 }
 0x228   : > { %4422 = vset.pattern.permute.xlu1 %v8810_v40  ;;  %v6182_v5 = vpop.permute.xlu0 %2317  ;;  %v1934_v27 = vsel %vm1902_vm10, 1, %v8840_v30  ;;  %v1935_v58 = vsel %vm1903_vm12, 1, %v8840_v30  ;;  %v874_v14 = vsel %vm842_vm11, 1, %v8840_v30  ;;  %v875_v33 = vsel %vm843_vm13, 1, %v8840_v30 }
 0x229   : > { %2017 = vperm.xlu1 %4422, %v5198_v63   ;;  %v1020_v3 = vsel %vm988_vm14, 1, %v8840_v30  ;;  %v1021_v19 = vsel %vm989_vm15, 1, %v8840_v30  ;;  %vm849_vm3 = vcmp.eq.s32.totalorder %v5464_v4, %v5521_v22  ;;  %v880_v24 = vsel %vm848_vm0, 1, %v8840_v30 }
 0x22a   : > { %vm992_vm4 = vcmp.eq.s32.totalorder %v5455_v21, %v8901_v15  ;;  %vm993_vm5 = vcmp.eq.s32.totalorder %v5464_v4, %v8901_v15  ;;  %v2078_v17 = vsel %vm2046_vm1, 1, %v8840_v30  ;;  %v2079_v16 = vsel %vm2047_vm2, 1, %v8840_v30 }
 0x22b   : > { %v6200_v55 = vpop.permute.xlu1 %1579  ;;  %v906_v12 = vadd.s32 %v874_v14, %v6084_v6  ;;  %v907_v22 = vadd.s32 %v875_v33, %v6086_v61  ;;  %v1966_v0 = vadd.s32 %v1934_v27, %v1822_v50  ;;  %v1967_v59 = vadd.s32 %v1935_v58, %v1823_v56 }
 0x22c   : > { %v6207_v13 = vpop.permute.xlu0 %1120  ;;  %v881_v53 = vsel %vm849_vm3, 1, %v8840_v30  ;;  %v912_v9 = vadd.s32 %v880_v24, %v6088_v43  ;;  %vm1130_vm6 = vcmp.eq.s32.totalorder %v5455_v21, %v5639_v11  ;;  %vm1131_vm7 = vcmp.eq.s32.totalorder %v5464_v4, %v5639_v11 }
 0x22d   : > { %8900 = vst [vmem:[#allocation29_spill] sm:$0xff] %v6207_v13  ;;  %4423 = vset.pattern.permute.xlu1 %v8842_v45  ;;  %v2110_v35 = vadd.s32 %v2078_v17, %v1966_v0  ;;  %v2111_v13 = vadd.s32 %v2079_v16, %v1967_v59  ;;  %vm2334_vm8 = vcmp.eq.s32.totalorder %v5455_v21, %v6120_v57  ;;  %v1024_v50 = vsel %vm992_vm4, 1, %v8840_v30 }
 0x22e   : > { %961 = vperm.xlu1 %4423, %v5636_v8   ;;  %vm2335_vm9 = vcmp.eq.s32.totalorder %v5464_v4, %v6120_v57  ;;  %v1052_v61 = vadd.s32 %v1020_v3, %v908_v23  ;;  %v1053_v43 = vadd.s32 %v1021_v19, %v909_v28  ;;  %v6241_v11 = vsel %vm993_vm5, 1, %v8840_v30  ;;  %v8902_v3 = vld [vmem:[#allocation43_spill] sm:$0xff] }
 0x22f   : > { %v1050_v56 = vadd.s32 %v1018_v39, %v906_v12  ;;  %v1051_v27 = vadd.s32 %v1019_v2, %v907_v22  ;;  %v1162_v57 = vsel %vm1130_vm6, 1, %v8840_v30  ;;  %v1163_v58 = vsel %vm1131_vm7, 1, %v8840_v30  ;;  %v8903_v12 = vld [vmem:[#allocation98_spill] sm:$0xff] }
 0x230   : > { %v6229_v6 = vpop.permute.xlu1 %2149  ;;  %v6231_v8 = vpop.permute.xlu0 %2320  ;;  %v913_v23 = vadd.s32 %v881_v53, %v6103_v62  ;;  %v6247_v28 = vadd.s32 %v1024_v50, %v912_v9  ;;  %v2366_v14 = vsel %vm2334_vm8, 1, %v8840_v30  ;;  %v2367_v33 = vsel %vm2335_vm9, 1, %v8840_v30 }
 0x231   : > { %vm1132_vm10 = vcmp.eq.s32.totalorder %v5455_v21, %v5648_v48  ;;  %vm1133_vm12 = vcmp.eq.s32.totalorder %v5464_v4, %v5648_v48  ;;  %v2254_v39 = vadd.s32 %v6046_v54, %v2110_v35  ;;  %v2255_v2 = vadd.s32 %v6052_v41, %v2111_v13 }
 0x232   : > { %4424 = vset.pattern.permute.xlu1 %v8840_v30  ;;  %v1194_v62 = vadd.s32 %v1162_v57, %v1050_v56  ;;  %v1195_v24 = vadd.s32 %v1163_v58, %v1051_v27  ;;  %vm1277_vm11 = vcmp.eq.s32.totalorder %v5464_v4, %v5863_v29  ;;  %vm1135_vm13 = vcmp.eq.s32.totalorder %v5464_v4, %v6015_v44 }
 0x233   : > { %1479 = vperm.xlu1 %4424, %v8902_v3   ;;  %v2398_v17 = vadd.s32 %v2366_v14, %v2254_v39  ;;  %v2399_v16 = vadd.s32 %v2367_v33, %v2255_v2  ;;  %v1164_v48 = vsel %vm1132_vm10, 1, %v8840_v30  ;;  %v1165_v54 = vsel %vm1133_vm12, 1, %v8840_v30 }
 0x234   : > { %v6258_v19 = vpop.permute.xlu0 %1126  ;;  %vm1136_vm0 = vcmp.eq.s32.totalorder %v5455_v21, %v8903_v12  ;;  %vm1137_vm1 = vcmp.eq.s32.totalorder %v5464_v4, %v8903_v12  ;;  %vm1276_vm2 = vcmp.eq.s32.totalorder %v5455_v21, %v5863_v29  ;;  %v1309_v59 = vsel %vm1277_vm11, 1, %v8840_v30  ;;  %v8904_v12 = vld [vmem:[#allocation99_spill] sm:$0xff] }
 0x235   : > { %v2435_v15 = vpop.permute.xlu1 %2434  ;;  %vm1134_vm3 = vcmp.eq.s32.totalorder %v5455_v21, %v6015_v44  ;;  %v1167_v53 = vsel %vm1135_vm13, 1, %v8840_v30  ;;  %v1196_v27 = vadd.s32 %v1164_v48, %v1052_v61  ;;  %v1197_v29 = vadd.s32 %v1165_v54, %v1053_v43 }
 0x236   : > { %vm2478_vm14 = vcmp.eq.s32.totalorder %v5455_v21, %v2435_v15  ;;  %vm2479_vm15 = vcmp.eq.s32.totalorder %v5464_v4, %v2435_v15  ;;  %v1168_v14 = vsel %vm1136_vm0, 1, %v8840_v30  ;;  %v1308_v33 = vsel %vm1276_vm2, 1, %v8840_v30 }
 0x237   : > { %v2510_v41 = vsel %vm2478_vm14, 1, %v8840_v30  ;;  %v2511_v13 = vsel %vm2479_vm15, 1, %v8840_v30  ;;  %4425 = vset.pattern.permute.xlu1 %v8814_v37  ;;  %v1169_v61 = vsel %vm1137_vm1, 1, %v8840_v30  ;;  %v1166_v43 = vsel %vm1134_vm3, 1, %v8840_v30 }
 0x238   : > { %1591 = vperm.xlu1 %4425, %v8902_v3   ;;  %v2543_v22 = vadd.s32 %v2511_v13, %v2399_v16  ;;  %v2542_v0 = vadd.s32 %v2510_v41, %v2398_v17  ;;  %v1199_v15 = vadd.s32 %v1167_v53, %v6169_v18  ;;  %v1057_v48 = vadd.s32 %v6241_v11, %v913_v23  ;;  %v8905_v53 = vld [vmem:[#allocation102_spill] sm:$0xff]  ;;  %v8906_v23 = vld [vmem:[#allocation101_spill] sm:$0xff] }
 0x239   : > { %v1229_v9 = vpop.permute.xlu0 %1228  ;;  %v915_v44 = vadd.s32 %v6153_v47, %v6165_v42  ;;  %v1340_v18 = vadd.s32 %v1308_v33, %v1196_v27  ;;  %v1200_v13 = vadd.s32 %v1168_v14, %v6247_v28  ;;  %vm1504_vm8 = vcmp.eq.s32.totalorder %v5455_v21, %v8904_v12 }
 0x23a   : > { %vm1274_vm4 = vcmp.eq.s32.totalorder %v5455_v21, %v1229_v9  ;;  %vm1275_vm5 = vcmp.eq.s32.totalorder %v5464_v4, %v1229_v9  ;;  %v6290_v35 = vpop.permute.xlu1 %1723  ;;  %v2575_v50 = vcvt.s32.f32 %v2543_v22  ;;  %v2574_v56 = vcvt.s32.f32 %v2542_v0 }
 0x23b   : > { %v1306_v57 = vsel %vm1274_vm4, 1, %v8840_v30  ;;  %v1307_v58 = vsel %vm1275_vm5, 1, %v8840_v30  ;;  %vm1138_vm9 = vcmp.eq.s32.totalorder %v5455_v21, %v8905_v53  ;;  %v1198_v11 = vadd.s32 %v1166_v43, %v6160_v36 }
 0x23c   : > { %v1338_v39 = vadd.s32 %v1306_v57, %v1194_v62  ;;  %v1339_v2 = vadd.s32 %v1307_v58, %v1195_v24  ;;  %4426 = vset.pattern.permute.xlu1 %v8842_v45  ;;  %2711 = vmatprep.mubr.f32.mxu0 %v2575_v50  ;;  %v1341_v24 = vadd.s32 %v1309_v59, %v1197_v29  ;;  %v1372_v9 = vcvt.s32.f32 %v1340_v18  ;;  %v8907_v58 = vld [vmem:[#allocation13_spill] sm:$0xff] }
 0x23d   : > { %2161 = vperm.xlu1 %4426, %v5198_v63   ;;  %2712 = vmatmul.mubr.f32.gmra.mrb[6].mxu0 %v2574_v56  ;;  %v1235_v62 = vpop.permute.xlu0 %1234  ;;  %v1201_v59 = vadd.s32 %v1169_v61, %v1057_v48  ;;  %vm1616_vm10 = vcmp.eq.s32.totalorder %v5455_v21, %v8906_v23  ;;  %vm1139_vm12 = vcmp.eq.s32.totalorder %v5464_v4, %v8905_v53  ;;  %v1170_v50 = vsel %vm1138_vm9, 1, %v8840_v30 }
 0x23e   : > { %vm1278_vm6 = vcmp.eq.s32.totalorder %v5455_v21, %v1235_v62  ;;  %vm1279_vm7 = vcmp.eq.s32.totalorder %v5464_v4, %v1235_v62  ;;  %v1371_v17 = vcvt.s32.f32 %v1339_v2  ;;  %v1370_v16 = vcvt.s32.f32 %v1338_v39 }
 0x23f   : > { %v1311_v54 = vsel %vm1279_vm7, 1, %v8840_v30  ;;  %v6314_v41 = vpop.permute.xlu1 %2008  ;;  %v1310_v22 = vsel %vm1278_vm6, 1, %v8840_v30  ;;  %v1373_v42 = vcvt.s32.f32 %v1341_v24  ;;  %vm1617_vm14 = vcmp.eq.s32.totalorder %v5464_v4, %v8906_v23 }
 0x240   : > { %v1343_v0 = vadd.s32 %v1311_v54, %v1199_v15  ;;  %2846 = vmatprep.mubr.f32.mxu1 %v1371_v17  ;;  %v1342_v36 = vadd.s32 %v1310_v22, %v1198_v11  ;;  %vm1760_vm15 = vcmp.eq.s32.totalorder %v5455_v21, %v8907_v58  ;;  %vm1505_vm4 = vcmp.eq.s32.totalorder %v5464_v4, %v8904_v12 }
 0x241   : > { %4427 = vset.pattern.permute.xlu1 %v8833_v32  ;;  %2847 = vmatmul.mubr.f32.gmra.mrb[2].mxu1 %v1370_v16  ;;  %v1238_v47 = vpop.permute.xlu0 %1237  ;;  %v1648_v16 = vsel %vm1616_vm10, 1, %v8840_v30  ;;  %vm1761_vm5 = vcmp.eq.s32.totalorder %v5464_v4, %v8907_v58  ;;  %v1649_v18 = vsel %vm1617_vm14, 1, %v8840_v30  ;;  %vm1904_vm6 = vcmp.eq.s32.totalorder %v5455_v21, %v5933_v51 }
 0x242   : > { %vm1280_vm11 = vcmp.eq.s32.totalorder %v5455_v21, %v1238_v47  ;;  %vm1281_vm13 = vcmp.eq.s32.totalorder %v5464_v4, %v1238_v47  ;;  %2446 = vperm.xlu1 %4427, %v5188_v60   ;;  %2851 = vmatprep.mubr.f32.mxu1 %v1373_v42  ;;  %v1375_v57 = vcvt.s32.f32 %v1343_v0  ;;  %v1171_v60 = vsel %vm1139_vm12, 1, %v8840_v30 }
 0x243   : > { %v1313_v28 = vsel %vm1281_vm13, 1, %v8840_v30  ;;  %v1312_v56 = vsel %vm1280_vm11, 1, %v8840_v30  ;;  %v1374_v15 = vcvt.s32.f32 %v1342_v36  ;;  %vm1905_vm7 = vcmp.eq.s32.totalorder %v5464_v4, %v5933_v51 }
 0x244   : > { %v1345_v27 = vadd.s32 %v1313_v28, %v1201_v59  ;;  %v953_v29 = vpop.permute.xlu1 %952  ;;  %v1344_v2 = vadd.s32 %v1312_v56, %v1200_v13  ;;  %v1792_v13 = vsel %vm1760_vm15, 1, %v8840_v30  ;;  %v1537_v53 = vsel %vm1505_vm4, 1, %v8840_v30 }
 0x245   : > { %vm994_vm0 = vcmp.eq.s32.totalorder %v5455_v21, %v953_v29  ;;  %vm995_vm1 = vcmp.eq.s32.totalorder %v5464_v4, %v953_v29  ;;  %2852 = vmatmul.mubr.f32.gmra.mrb[4].mxu1 %v1372_v9  ;;  %v1241_v14 = vpop.permute.xlu0 %1240  ;;  %v1793_v47 = vsel %vm1761_vm5, 1, %v8840_v30  ;;  %v1681_v42 = vadd.s32 %v1649_v18, %v1537_v53 }
 0x246   : > { %v1026_v33 = vsel %vm994_vm0, 1, %v8840_v30  ;;  %v1027_v39 = vsel %vm995_vm1, 1, %v8840_v30  ;;  %4428 = vset.pattern.permute.xlu1 %v8823_v34  ;;  %2856 = vmatprep.mubr.f32.mxu1 %v1375_v57  ;;  %vm1282_vm2 = vcmp.eq.s32.totalorder %v5455_v21, %v1241_v14  ;;  %vm1283_vm3 = vcmp.eq.s32.totalorder %v5464_v4, %v1241_v14  ;;  %v4648_v57 = vld [vmem:[%s4952_s28 + $0x48] sm:$0xff] }
 0x247   : > { %v1058_v61 = vadd.s32 %v1026_v33, %v6171_v52  ;;  %v1059_v43 = vadd.s32 %v1027_v39, %v915_v44  ;;  %1735 = vperm.xlu1 %4428, %v8902_v3   ;;  %v1314_v62 = vsel %vm1282_vm2, 1, %v8840_v30  ;;  %v1315_v24 = vsel %vm1283_vm3, 1, %v8840_v30  ;;  %v8908_v14 = vld [vmem:[#allocation100_spill] sm:$0xff] }
 0x248   : > { %v1377_v17 = vcvt.s32.f32 %v1345_v27  ;;  %v1536_v44 = vsel %vm1504_vm8, 1, %v8840_v30  ;;  %v1376_v59 = vcvt.s32.f32 %v1344_v2  ;;  %vm2048_vm8 = vcmp.eq.s32.totalorder %v5455_v21, %v6078_v38 }
 0x249   : > { %v1202_v52 = vadd.s32 %v1170_v50, %v1058_v61  ;;  %v1203_v48 = vadd.s32 %v1171_v60, %v1059_v43  ;;  %v6363_v54 = vpop.permute.xlu1 %1470  ;;  %2857 = vmatmul.mubr.f32.gmra.mrb[6].mxu1 %v1374_v15  ;;  %v1680_v11 = vadd.s32 %v1648_v16, %v1536_v44  ;;  %vm2049_vm9 = vcmp.eq.s32.totalorder %v5464_v4, %v6078_v38 }
 0x24a   : > { %2861 = vmatprep.mubr.f32.mxu1 %v1377_v17  ;;  %v1936_v36 = vsel %vm1904_vm6, 1, %v8840_v30  ;;  %v1937_v28 = vsel %vm1905_vm7, 1, %v8840_v30  ;;  %v1825_v50 = vadd.s32 %v1793_v47, %v1681_v42  ;;  %vm2192_vm10 = vcmp.eq.s32.totalorder %v5455_v21, %v6229_v6  ;;  %v8911_v17 = vld [vmem:[#allocation31_spill] sm:$0xff] }
 0x24b   : > { %v1346_v22 = vadd.s32 %v1314_v62, %v1202_v52  ;;  %v1347_v0 = vadd.s32 %v1315_v24, %v1203_v48  ;;  %4429 = vset.pattern.permute.xlu1 %v8810_v40  ;;  %v1824_v12 = vadd.s32 %v1792_v13, %v1680_v11  ;;  %vm2193_vm12 = vcmp.eq.s32.totalorder %v5464_v4, %v6229_v6  ;;  %v8909_v62 = vld [vmem:[#allocation46_spill] sm:$0xff]  ;;  %v8912_v13 = vld [vmem:[#allocation60_spill] sm:$0xff] }
 0x24c   : > { %2020 = vperm.xlu1 %4429, %v5208_v25   ;;  %v2080_v56 = vsel %vm2048_vm8, 1, %v8840_v30  ;;  %v2081_v27 = vsel %vm2049_vm9, 1, %v8840_v30  ;;  %v1969_v51 = vadd.s32 %v1937_v28, %v1825_v50  ;;  %v2224_v60 = vsel %vm2192_vm10, 1, %v8840_v30  ;;  %v8910_v24 = vld [vmem:[#allocation30_spill] sm:$0xff] }
 0x24d   : > { %2862 = vmatmul.mubr.f32.gmra.mrb[8].mxu1 %v1376_v59  ;;  %v1379_v23 = vcvt.s32.f32 %v1347_v0  ;;  %v1378_v38 = vcvt.s32.f32 %v1346_v22  ;;  %v1968_v29 = vadd.s32 %v1936_v36, %v1824_v12  ;;  %v2225_v58 = vsel %vm2193_vm12, 1, %v8840_v30 }
 0x24e   : > { %v6403_v9 = vpop.permute.xlu1 %1582  ;;  %vm2336_vm11 = vcmp.eq.s32.totalorder %v5455_v21, %v8908_v14  ;;  %vm2337_vm13 = vcmp.eq.s32.totalorder %v5464_v4, %v8908_v14  ;;  %v2113_v33 = vadd.s32 %v2081_v27, %v1969_v51  ;;  %vm420_vm14 = vcmp.eq.s32.totalorder %v5455_v21, %v8910_v24  ;;  %v8914_v51 = vld [vmem:[#allocation92_spill] sm:$0xff] }
 0x24f   : > { %2866 = vmatprep.mubr.f32.mxu1 %v1379_v23  ;;  %v2112_v6 = vadd.s32 %v2080_v56, %v1968_v29  ;;  %v2368_v43 = vsel %vm2336_vm11, 1, %v8840_v30  ;;  %v2369_v15 = vsel %vm2337_vm13, 1, %v8840_v30  ;;  %vm421_vm15 = vcmp.eq.s32.totalorder %v5464_v4, %v8910_v24  ;;  %v8913_v56 = vld [vmem:[#allocation59_spill] sm:$0xff] }
 0x250   : > { %4430 = vset.pattern.permute.xlu1 %v8842_v45  ;;  %v2257_v61 = vadd.s32 %v2225_v58, %v2113_v33  ;;  %vm308_vm0 = vcmp.eq.s32.totalorder %v5455_v21, %v8911_v17  ;;  %vm309_vm1 = vcmp.eq.s32.totalorder %v5464_v4, %v8911_v17  ;;  %vm564_vm4 = vcmp.eq.s32.totalorder %v5455_v21, %v8912_v13  ;;  %v1244_v17 = vpop.permute.xlu0 %1243 }
 0x251   : > { %964 = vperm.xlu1 %4430, %v4648_v57   ;;  %2867 = vmatmul.mubr.f32.gmra.mrb[10].mxu1 %v1378_v38  ;;  %v2256_v2 = vadd.s32 %v2224_v60, %v2112_v6  ;;  %vm565_vm5 = vcmp.eq.s32.totalorder %v5464_v4, %v8912_v13  ;;  %v452_v59 = vsel %vm420_vm14, 1, %v8840_v30  ;;  %v453_v53 = vsel %vm421_vm15, 1, %v8840_v30  ;;  %v8915_v57 = vld [vmem:[#allocation47_spill] sm:$0xff] }
 0x252   : > { %v2401_v52 = vadd.s32 %v2369_v15, %v2257_v61  ;;  %v340_v11 = vsel %vm308_vm0, 1, %v8840_v30  ;;  %v341_v47 = vsel %vm309_vm1, 1, %v8840_v30  ;;  %v596_v36 = vsel %vm564_vm4, 1, %v8840_v30 }
 0x253   : > { %v6419_v39 = vpop.permute.xlu1 %2152  ;;  %v2400_v48 = vadd.s32 %v2368_v43, %v2256_v2  ;;  %v597_v28 = vsel %vm565_vm5, 1, %v8840_v30  ;;  %v484_v50 = vadd.s32 %v452_v59, %v340_v11  ;;  %v485_v38 = vadd.s32 %v453_v53, %v341_v47  ;;  %v8916_v2 = vld [vmem:[#allocation27_spill] sm:$0xff] }
 0x254   : > { %vm708_vm6 = vcmp.eq.s32.totalorder %v5455_v21, %v8913_v56  ;;  %vm709_vm7 = vcmp.eq.s32.totalorder %v5464_v4, %v8913_v56  ;;  %vm852_vm8 = vcmp.eq.s32.totalorder %v5455_v21, %v8914_v51  ;;  %vm853_vm9 = vcmp.eq.s32.totalorder %v5464_v4, %v8914_v51  ;;  %v8919_v51 = vld [vmem:[#allocation82_spill] sm:$0xff] }
 0x255   : > { %4431 = vset.pattern.permute.xlu1 %v8840_v30  ;;  %v628_v27 = vadd.s32 %v596_v36, %v484_v50  ;;  %v629_v29 = vadd.s32 %v597_v28, %v485_v38  ;;  %vm1506_vm10 = vcmp.eq.s32.totalorder %v5455_v21, %v8915_v57  ;;  %vm1507_vm12 = vcmp.eq.s32.totalorder %v5464_v4, %v8915_v57 }
 0x256   : > { %1482 = vperm.xlu1 %4431, %v8909_v62   ;;  %v740_v58 = vsel %vm708_vm6, 1, %v8840_v30  ;;  %v741_v14 = vsel %vm709_vm7, 1, %v8840_v30  ;;  %v884_v6 = vsel %vm852_vm8, 1, %v8840_v30  ;;  %v885_v33 = vsel %vm853_vm9, 1, %v8840_v30 }
 0x257   : > { %vm1618_vm11 = vcmp.eq.s32.totalorder %v5455_v21, %v8916_v2  ;;  %vm1619_vm13 = vcmp.eq.s32.totalorder %v5464_v4, %v8916_v2  ;;  %v1538_v61 = vsel %vm1506_vm10, 1, %v8840_v30  ;;  %v1539_v43 = vsel %vm1507_vm12, 1, %v8840_v30 }
 0x258   : > { %v2438_v16 = vpop.permute.xlu1 %2437  ;;  %v772_v15 = vadd.s32 %v740_v58, %v628_v27  ;;  %v773_v24 = vadd.s32 %v741_v14, %v629_v29  ;;  %v1651_v13 = vsel %vm1619_vm13, 1, %v8840_v30  ;;  %vm1284_vm4 = vcmp.eq.s32.totalorder %v5455_v21, %v1244_v17 }
 0x259   : > { %vm2480_vm2 = vcmp.eq.s32.totalorder %v5455_v21, %v2438_v16  ;;  %vm2481_vm3 = vcmp.eq.s32.totalorder %v5464_v4, %v2438_v16  ;;  %v8917_v16 = vld [vmem:[#allocation70_spill] sm:$0xff]  ;;  %vm1285_vm5 = vcmp.eq.s32.totalorder %v5464_v4, %v1244_v17  ;;  %v1316_v36 = vsel %vm1284_vm4, 1, %v8840_v30 }
 0x25a   : > { %v2512_v44 = vsel %vm2480_vm2, 1, %v8840_v30  ;;  %v2513_v18 = vsel %vm2481_vm3, 1, %v8840_v30  ;;  %4432 = vset.pattern.permute.xlu1 %v8814_v37  ;;  %vm1762_vm14 = vcmp.eq.s32.totalorder %v5455_v21, %v8917_v16  ;;  %vm1763_vm15 = vcmp.eq.s32.totalorder %v5464_v4, %v8917_v16 }
 0x25b   : > { %1594 = vperm.xlu1 %4432, %v8909_v62   ;;  %v2545_v22 = vadd.s32 %v2513_v18, %v2401_v52  ;;  %v2544_v0 = vadd.s32 %v2512_v44, %v2400_v48  ;;  %v8918_v52 = vld [vmem:[#allocation12_spill] sm:$0xff]  ;;  %v916_v48 = vadd.s32 %v884_v6, %v772_v15  ;;  %v917_v44 = vadd.s32 %v885_v33, %v773_v24 }
 0x25c   : > { %vm1140_vm0 = vcmp.eq.s32.totalorder %v5455_v21, %v8918_v52  ;;  %vm1141_vm1 = vcmp.eq.s32.totalorder %v5464_v4, %v8918_v52  ;;  %v1650_v18 = vsel %vm1618_vm11, 1, %v8840_v30  ;;  %v1317_v28 = vsel %vm1285_vm5, 1, %v8840_v30  ;;  %v4649_v52 = vld [vmem:[%s4952_s28 + $0x50] sm:$0xff] }
 0x25d   : > { %v6459_v42 = vpop.permute.xlu1 %1726  ;;  %v2577_v23 = vcvt.s32.f32 %v2545_v22  ;;  %v2576_v12 = vcvt.s32.f32 %v2544_v0  ;;  %v1172_v22 = vsel %vm1140_vm0, 1, %v8840_v30  ;;  %v1173_v0 = vsel %vm1141_vm1, 1, %v8840_v30 }
 0x25e   : > { %v1794_v50 = vsel %vm1762_vm14, 1, %v8840_v30  ;;  %v1795_v38 = vsel %vm1763_vm15, 1, %v8840_v30  ;;  %vm1906_vm6 = vcmp.eq.s32.totalorder %v5455_v21, %v8919_v51  ;;  %vm1907_vm7 = vcmp.eq.s32.totalorder %v5464_v4, %v8919_v51 }
 0x25f   : > { %4433 = vset.pattern.permute.xlu1 %v8842_v45  ;;  %2716 = vmatprep.mubr.f32.mxu0 %v2577_v23  ;;  %v1682_v23 = vadd.s32 %v1650_v18, %v1538_v61  ;;  %vm2050_vm8 = vcmp.eq.s32.totalorder %v5455_v21, %v6314_v41  ;;  %vm2051_vm9 = vcmp.eq.s32.totalorder %v5464_v4, %v6314_v41  ;;  %v1938_v61 = vsel %vm1906_vm6, 1, %v8840_v30  ;;  %v8920_v18 = vld [vmem:[#allocation103_spill] sm:$0xff] }
 0x260   : > { %2164 = vperm.xlu1 %4433, %v5208_v25   ;;  %2717 = vmatmul.mubr.f32.gmra.mrb[8].mxu0 %v2576_v12  ;;  %v1683_v12 = vadd.s32 %v1651_v13, %v1539_v43  ;;  %v1939_v43 = vsel %vm1907_vm7, 1, %v8840_v30  ;;  %vm2194_vm10 = vcmp.eq.s32.totalorder %v5455_v21, %v6419_v39  ;;  %vm2195_vm12 = vcmp.eq.s32.totalorder %v5464_v4, %v6419_v39 }
 0x261   : > { %v1826_v14 = vadd.s32 %v1794_v50, %v1682_v23  ;;  %v2082_v24 = vsel %vm2050_vm8, 1, %v8840_v30  ;;  %v2083_v17 = vsel %vm2051_vm9, 1, %v8840_v30  ;;  %vm2338_vm11 = vcmp.eq.s32.totalorder %v5455_v21, %v8920_v18 }
 0x262   : > { %v6477_v60 = vpop.permute.xlu1 %2011  ;;  %v1827_v6 = vadd.s32 %v1795_v38, %v1683_v12  ;;  %vm2339_vm13 = vcmp.eq.s32.totalorder %v5464_v4, %v8920_v18 }
 0x263   : > { %v1970_v41 = vadd.s32 %v1938_v61, %v1826_v14 }
 0x264   : > { %4434 = vset.pattern.permute.xlu1 %v8833_v32  ;;  %v1971_v16 = vadd.s32 %v1939_v43, %v1827_v6 }
 0x265   : > { %2449 = vperm.xlu1 %4434, %v5198_v63   ;;  %v2114_v39 = vadd.s32 %v2082_v24, %v1970_v41 }
 0x266   : > { %v2115_v13 = vadd.s32 %v2083_v17, %v1971_v16 }
 0x267   : > { %v956_v63 = vpop.permute.xlu1 %955 }
 0x268   : > { %vm996_vm2 = vcmp.eq.s32.totalorder %v5455_v21, %v956_v63  ;;  %vm997_vm3 = vcmp.eq.s32.totalorder %v5464_v4, %v956_v63 }
 0x269   : > { %v1028_v59 = vsel %vm996_vm2, 1, %v8840_v30  ;;  %v1029_v53 = vsel %vm997_vm3, 1, %v8840_v30  ;;  %4435 = vset.pattern.permute.xlu1 %v8823_v34 }
 0x26a   : > { %v1060_v11 = vadd.s32 %v1028_v59, %v916_v48  ;;  %v1061_v47 = vadd.s32 %v1029_v53, %v917_v44  ;;  %1738 = vperm.xlu1 %4435, %v8909_v62   ;;  %v2226_v48 = vsel %vm2194_vm10, 1, %v8840_v30  ;;  %v2227_v44 = vsel %vm2195_vm12, 1, %v8840_v30 }
 0x26b   : > { %v2259_v59 = vadd.s32 %v2227_v44, %v2115_v13  ;;  %v2370_v53 = vsel %vm2338_vm11, 1, %v8840_v30  ;;  %vm1508_vm11 = vcmp.eq.s32.totalorder %v5455_v21, %v6162_v49 }
 0x26c   : > { %v1204_v56 = vadd.s32 %v1172_v22, %v1060_v11  ;;  %v1205_v27 = vadd.s32 %v1173_v0, %v1061_v47  ;;  %v6521_v29 = vpop.permute.xlu1 %1473  ;;  %v8921_v22 = vld [vmem:[#allocation15_spill] sm:$0xff]  ;;  %v2258_v0 = vadd.s32 %v2226_v48, %v2114_v39  ;;  %v2371_v11 = vsel %vm2339_vm13, 1, %v8840_v30  ;;  %v8922_v47 = vld [vmem:[#allocation49_spill] sm:$0xff] }
 0x26d   : > { %vm310_vm14 = vcmp.eq.s32.totalorder %v5455_v21, %v8921_v22  ;;  %vm311_vm15 = vcmp.eq.s32.totalorder %v5464_v4, %v8921_v22  ;;  %v2403_v50 = vadd.s32 %v2371_v11, %v2259_v59  ;;  %v8926_v39 = vld [vmem:[#allocation71_spill] sm:$0xff]  ;;  %v8927_v59 = vld [vmem:[#allocation14_spill] sm:$0xff]  ;;  %vm1509_vm13 = vcmp.eq.s32.totalorder %v5464_v4, %v6162_v49 }
 0x26e   : > { %v1348_v57 = vadd.s32 %v1316_v36, %v1204_v56  ;;  %v1349_v58 = vadd.s32 %v1317_v28, %v1205_v27  ;;  %4436 = vset.pattern.permute.xlu1 %v8810_v40  ;;  %v342_v23 = vsel %vm310_vm14, 1, %v8840_v30  ;;  %v343_v12 = vsel %vm311_vm15, 1, %v8840_v30  ;;  %v8923_v36 = vld [vmem:[#allocation16_spill] sm:$0xff] }
 0x26f   : > { %2023 = vperm.xlu1 %4436, %v8902_v3   ;;  %vm422_vm0 = vcmp.eq.s32.totalorder %v5455_v21, %v8923_v36  ;;  %vm423_vm1 = vcmp.eq.s32.totalorder %v5464_v4, %v8923_v36  ;;  %v2402_v38 = vadd.s32 %v2370_v53, %v2258_v0  ;;  %v8924_v56 = vld [vmem:[#allocation48_spill] sm:$0xff]  ;;  %vm854_vm8 = vcmp.eq.s32.totalorder %v5455_v21, %v8926_v39 }
 0x270   : > { %v1381_v33 = vcvt.s32.f32 %v1349_v58  ;;  %v1380_v2 = vcvt.s32.f32 %v1348_v57  ;;  %vm566_vm4 = vcmp.eq.s32.totalorder %v5455_v21, %v8924_v56  ;;  %vm567_vm5 = vcmp.eq.s32.totalorder %v5464_v4, %v8924_v56 }
 0x271   : > { %v6535_v15 = vpop.permute.xlu1 %1585  ;;  %v454_v57 = vsel %vm422_vm0, 1, %v8840_v30  ;;  %v455_v58 = vsel %vm423_vm1, 1, %v8840_v30  ;;  %v599_v61 = vsel %vm567_vm5, 1, %v8840_v30  ;;  %vm855_vm9 = vcmp.eq.s32.totalorder %v5464_v4, %v8926_v39 }
 0x272   : > { %2871 = vmatprep.mubr.f32.mxu1 %v1381_v33  ;;  %v8925_v33 = vld [vmem:[#allocation73_spill] sm:$0xff]  ;;  %v486_v41 = vadd.s32 %v454_v57, %v342_v23  ;;  %v487_v16 = vadd.s32 %v455_v58, %v343_v12  ;;  %vm1142_vm10 = vcmp.eq.s32.totalorder %v5455_v21, %v8927_v59  ;;  %vm1143_vm12 = vcmp.eq.s32.totalorder %v5464_v4, %v8927_v59  ;;  %v1247_v23 = vpop.permute.xlu0 %1246 }
 0x273   : > { %4437 = vset.pattern.permute.xlu1 %v8842_v45  ;;  %2872 = vmatmul.mubr.f32.gmra.mrb[12].mxu1 %v1380_v2  ;;  %vm710_vm6 = vcmp.eq.s32.totalorder %v5455_v21, %v8925_v33  ;;  %vm711_vm7 = vcmp.eq.s32.totalorder %v5464_v4, %v8925_v33  ;;  %v598_v2 = vsel %vm566_vm4, 1, %v8840_v30  ;;  %v886_v53 = vsel %vm854_vm8, 1, %v8840_v30 }
 0x274   : > { %967 = vperm.xlu1 %4437, %v4649_v52   ;;  %v742_v52 = vsel %vm710_vm6, 1, %v8840_v30  ;;  %v743_v48 = vsel %vm711_vm7, 1, %v8840_v30  ;;  %v630_v44 = vadd.s32 %v598_v2, %v486_v41  ;;  %v631_v18 = vadd.s32 %v599_v61, %v487_v16 }
 0x275   : > { %v887_v11 = vsel %vm855_vm9, 1, %v8840_v30  ;;  %v1174_v12 = vsel %vm1142_vm10, 1, %v8840_v30  ;;  %v1175_v36 = vsel %vm1143_vm12, 1, %v8840_v30  ;;  %vm1620_vm14 = vcmp.eq.s32.totalorder %v5455_v21, %v6200_v55 }
 0x276   : > { %v6551_v63 = vpop.permute.xlu1 %2155  ;;  %v774_v13 = vadd.s32 %v742_v52, %v630_v44  ;;  %v775_v22 = vadd.s32 %v743_v48, %v631_v18  ;;  %vm1621_vm15 = vcmp.eq.s32.totalorder %v5464_v4, %v6200_v55  ;;  %vm1764_vm4 = vcmp.eq.s32.totalorder %v5455_v21, %v6290_v35  ;;  %v8928_v52 = vld [vmem:[#allocation83_spill] sm:$0xff] }
 0x277   : > { %vm1765_vm5 = vcmp.eq.s32.totalorder %v5464_v4, %v6290_v35  ;;  %v1652_v55 = vsel %vm1620_vm14, 1, %v8840_v30  ;;  %v1540_v58 = vsel %vm1508_vm11, 1, %v8840_v30  ;;  %v1541_v35 = vsel %vm1509_vm13, 1, %v8840_v30 }
 0x278   : > { %4438 = vset.pattern.permute.xlu1 %v8840_v30  ;;  %v1796_v33 = vsel %vm1764_vm4, 1, %v8840_v30  ;;  %v1797_v2 = vsel %vm1765_vm5, 1, %v8840_v30  ;;  %v1684_v41 = vadd.s32 %v1652_v55, %v1540_v58  ;;  %vm1908_vm6 = vcmp.eq.s32.totalorder %v5455_v21, %v8928_v52  ;;  %v8930_v55 = vld [vmem:[#allocation32_spill] sm:$0xff] }
 0x279   : > { %1485 = vperm.xlu1 %4438, %v8922_v47   ;;  %vm1909_vm7 = vcmp.eq.s32.totalorder %v5464_v4, %v8928_v52  ;;  %vm2052_vm8 = vcmp.eq.s32.totalorder %v5455_v21, %v6477_v60  ;;  %vm2053_vm9 = vcmp.eq.s32.totalorder %v5464_v4, %v6477_v60  ;;  %vm2196_vm10 = vcmp.eq.s32.totalorder %v5455_v21, %v6551_v63 }
 0x27a   : > { %v1828_v44 = vadd.s32 %v1796_v33, %v1684_v41  ;;  %v1941_v59 = vsel %vm1909_vm7, 1, %v8840_v30  ;;  %vm2197_vm12 = vcmp.eq.s32.totalorder %v5464_v4, %v6551_v63  ;;  %vm424_vm14 = vcmp.eq.s32.totalorder %v5455_v21, %v8930_v55 }
 0x27b   : > { %v2441_v28 = vpop.permute.xlu1 %2440 }
 0x27c   : > { %vm2482_vm2 = vcmp.eq.s32.totalorder %v5455_v21, %v2441_v28  ;;  %vm2483_vm3 = vcmp.eq.s32.totalorder %v5464_v4, %v2441_v28  ;;  %v918_v28 = vadd.s32 %v886_v53, %v774_v13 }
 0x27d   : > { %v2514_v27 = vsel %vm2482_vm2, 1, %v8840_v30  ;;  %v2515_v51 = vsel %vm2483_vm3, 1, %v8840_v30  ;;  %4439 = vset.pattern.permute.xlu1 %v8814_v37  ;;  %vm1286_vm2 = vcmp.eq.s32.totalorder %v5455_v21, %v1247_v23  ;;  %vm1287_vm3 = vcmp.eq.s32.totalorder %v5464_v4, %v1247_v23 }
 0x27e   : > { %1597 = vperm.xlu1 %4439, %v8922_v47   ;;  %v2547_v14 = vadd.s32 %v2515_v51, %v2403_v50  ;;  %v2546_v6 = vadd.s32 %v2514_v27, %v2402_v38  ;;  %v919_v50 = vadd.s32 %v887_v11, %v775_v22  ;;  %v1653_v27 = vsel %vm1621_vm15, 1, %v8840_v30 }
 0x27f   : > { %v1685_v16 = vadd.s32 %v1653_v27, %v1541_v35  ;;  %v1940_v22 = vsel %vm1908_vm6, 1, %v8840_v30  ;;  %v2084_v11 = vsel %vm2052_vm8, 1, %v8840_v30  ;;  %v2085_v23 = vsel %vm2053_vm9, 1, %v8840_v30  ;;  %v8931_v27 = vld [vmem:[#allocation33_spill] sm:$0xff] }
 0x280   : > { %v6585_v43 = vpop.permute.xlu1 %1729  ;;  %v2579_v24 = vcvt.s32.f32 %v2547_v14  ;;  %v2578_v17 = vcvt.s32.f32 %v2546_v6  ;;  %v1318_v14 = vsel %vm1286_vm2, 1, %v8840_v30  ;;  %v1319_v6 = vsel %vm1287_vm3, 1, %v8840_v30 }
 0x281   : > { %v1829_v18 = vadd.s32 %v1797_v2, %v1685_v16  ;;  %v1972_v60 = vadd.s32 %v1940_v22, %v1828_v44  ;;  %vm312_vm15 = vcmp.eq.s32.totalorder %v5455_v21, %v8931_v27  ;;  %v8933_v2 = vld [vmem:[#allocation62_spill] sm:$0xff] }
 0x282   : > { %4440 = vset.pattern.permute.xlu1 %v8842_v45  ;;  %2721 = vmatprep.mubr.f32.mxu0 %v2579_v24  ;;  %v344_v33 = vsel %vm312_vm15, 1, %v8840_v30  ;;  %vm568_vm2 = vcmp.eq.s32.totalorder %v5455_v21, %v8933_v2  ;;  %vm569_vm5 = vcmp.eq.s32.totalorder %v5464_v4, %v8933_v2  ;;  %v1250_v2 = vpop.permute.xlu0 %1249  ;;  %vm1623_vm15 = vcmp.eq.s32.totalorder %v5464_v4, %v6403_v9 }
 0x283   : > { %2167 = vperm.xlu1 %4440, %v8902_v3   ;;  %2722 = vmatmul.mubr.f32.gmra.mrb[10].mxu0 %v2578_v17  ;;  %v2116_v63 = vadd.s32 %v2084_v11, %v1972_v60 }
 0x285   : > { %v6595_v0 = vpop.permute.xlu1 %2014 }
 0x287   : > { %4441 = vset.pattern.permute.xlu1 %v8833_v32 }
 0x288   : > { %2452 = vperm.xlu1 %4441, %v5208_v25  }
 0x28a   : > { %v959_v25 = vpop.permute.xlu1 %958 }
 0x28b   : > { %vm998_vm0 = vcmp.eq.s32.totalorder %v5455_v21, %v959_v25  ;;  %vm999_vm1 = vcmp.eq.s32.totalorder %v5464_v4, %v959_v25  ;;  %v8929_v25 = vld [vmem:[#allocation11_spill] sm:$0xff] }
 0x28c   : > { %v1030_v38 = vsel %vm998_vm0, 1, %v8840_v30  ;;  %v1031_v56 = vsel %vm999_vm1, 1, %v8840_v30  ;;  %4442 = vset.pattern.permute.xlu1 %v8823_v34  ;;  %vm2340_vm11 = vcmp.eq.s32.totalorder %v5455_v21, %v8929_v25  ;;  %vm2341_vm13 = vcmp.eq.s32.totalorder %v5464_v4, %v8929_v25 }
 0x28d   : > { %v1062_v51 = vadd.s32 %v1030_v38, %v918_v28  ;;  %v1063_v57 = vadd.s32 %v1031_v56, %v919_v50  ;;  %1741 = vperm.xlu1 %4442, %v8922_v47   ;;  %v2228_v28 = vsel %vm2196_vm10, 1, %v8840_v30  ;;  %v2229_v50 = vsel %vm2197_vm12, 1, %v8840_v30 }
 0x28e   : > { %v2372_v58 = vsel %vm2340_vm11, 1, %v8840_v30  ;;  %v2373_v35 = vsel %vm2341_vm13, 1, %v8840_v30  ;;  %vm425_vm0 = vcmp.eq.s32.totalorder %v5464_v4, %v8930_v55  ;;  %vm313_vm1 = vcmp.eq.s32.totalorder %v5464_v4, %v8931_v27 }
 0x28f   : > { %v1206_v61 = vadd.s32 %v1174_v12, %v1062_v51  ;;  %v1207_v24 = vadd.s32 %v1175_v36, %v1063_v57  ;;  %v6641_v17 = vpop.permute.xlu1 %1476  ;;  %v1973_v12 = vadd.s32 %v1941_v59, %v1829_v18  ;;  %v4650_v36 = vld [vmem:[%s4952_s28 + $0x58] sm:$0xff]  ;;  %v2260_v51 = vadd.s32 %v2228_v28, %v2116_v63  ;;  %v8935_v63 = vld [vmem:[#allocation93_spill] sm:$0xff] }
 0x290   : > { %v457_v18 = vsel %vm425_vm0, 1, %v8840_v30  ;;  %v600_v59 = vsel %vm568_vm2, 1, %v8840_v30  ;;  %vm856_vm8 = vcmp.eq.s32.totalorder %v5455_v21, %v8935_v63  ;;  %vm857_vm9 = vcmp.eq.s32.totalorder %v5464_v4, %v8935_v63 }
 0x291   : > { %v1350_v49 = vadd.s32 %v1318_v14, %v1206_v61  ;;  %v1351_v48 = vadd.s32 %v1319_v6, %v1207_v24  ;;  %4443 = vset.pattern.permute.xlu1 %v8810_v40  ;;  %v2117_v38 = vadd.s32 %v2085_v23, %v1973_v12  ;;  %v8932_v14 = vld [vmem:[#allocation51_spill] sm:$0xff]  ;;  %v456_v6 = vsel %vm424_vm14, 1, %v8840_v30 }
 0x292   : > { %2026 = vperm.xlu1 %4443, %v8909_v62   ;;  %v2404_v52 = vadd.s32 %v2372_v58, %v2260_v51  ;;  %v488_v11 = vadd.s32 %v456_v6, %v344_v33  ;;  %v601_v23 = vsel %vm569_vm5, 1, %v8840_v30  ;;  %v888_v51 = vsel %vm856_vm8, 1, %v8840_v30  ;;  %v8936_v6 = vld [vmem:[#allocation25_spill] sm:$0xff] }
 0x293   : > { %v1383_v39 = vcvt.s32.f32 %v1351_v48  ;;  %v1382_v13 = vcvt.s32.f32 %v1350_v49  ;;  %v2261_v57 = vadd.s32 %v2229_v50, %v2117_v38  ;;  %v8934_v50 = vld [vmem:[#allocation61_spill] sm:$0xff]  ;;  %vm1144_vm10 = vcmp.eq.s32.totalorder %v5455_v21, %v8936_v6 }
 0x294   : > { %v6655_v53 = vpop.permute.xlu1 %1588  ;;  %vm712_vm6 = vcmp.eq.s32.totalorder %v5455_v21, %v8934_v50  ;;  %vm713_vm7 = vcmp.eq.s32.totalorder %v5464_v4, %v8934_v50  ;;  %v632_v25 = vadd.s32 %v600_v59, %v488_v11  ;;  %vm1145_vm12 = vcmp.eq.s32.totalorder %v5464_v4, %v8936_v6 }
 0x295   : > { %2876 = vmatprep.mubr.f32.mxu1 %v1383_v39  ;;  %v2405_v16 = vadd.s32 %v2373_v35, %v2261_v57  ;;  %v345_v39 = vsel %vm313_vm1, 1, %v8840_v30  ;;  %v744_v55 = vsel %vm712_vm6, 1, %v8840_v30  ;;  %v745_v27 = vsel %vm713_vm7, 1, %v8840_v30 }
 0x296   : > { %4444 = vset.pattern.permute.xlu1 %v8842_v45  ;;  %2877 = vmatmul.mubr.f32.gmra.mrb[14].mxu1 %v1382_v13  ;;  %v489_v28 = vadd.s32 %v457_v18, %v345_v39  ;;  %v776_v58 = vadd.s32 %v744_v55, %v632_v25  ;;  %v889_v35 = vsel %vm857_vm9, 1, %v8840_v30  ;;  %vm1622_vm11 = vcmp.eq.s32.totalorder %v5455_v21, %v6403_v9 }
 0x297   : > { %970 = vperm.xlu1 %4444, %v4650_v36   ;;  %vm1510_vm13 = vcmp.eq.s32.totalorder %v5455_v21, %v6363_v54  ;;  %vm1511_vm14 = vcmp.eq.s32.totalorder %v5464_v4, %v6363_v54  ;;  %vm1288_vm0 = vcmp.eq.s32.totalorder %v5455_v21, %v1250_v2  ;;  %vm1767_vm5 = vcmp.eq.s32.totalorder %v5464_v4, %v6459_v42 }
 0x298   : > { %v633_v38 = vadd.s32 %v601_v23, %v489_v28  ;;  %v1542_v23 = vsel %vm1510_vm13, 1, %v8840_v30  ;;  %v1799_v28 = vsel %vm1767_vm5, 1, %v8840_v30  ;;  %vm2054_vm8 = vcmp.eq.s32.totalorder %v5455_v21, %v6595_v0 }
 0x299   : > { %v6671_v56 = vpop.permute.xlu1 %2158  ;;  %vm2055_vm9 = vcmp.eq.s32.totalorder %v5464_v4, %v6595_v0 }
 0x29a   : > { %v777_v33 = vadd.s32 %v745_v27, %v633_v38  ;;  %v8937_v27 = vld [vmem:[#allocation84_spill] sm:$0xff] }
 0x29b   : > { %4445 = vset.pattern.permute.xlu1 %v8840_v30  ;;  %vm1910_vm6 = vcmp.eq.s32.totalorder %v5455_v21, %v8937_v27  ;;  %vm1911_vm7 = vcmp.eq.s32.totalorder %v5464_v4, %v8937_v27 }
 0x29c   : > { %1488 = vperm.xlu1 %4445, %v8932_v14  }
 0x29d   : > { %v4104_v61 = vpop.f32.mrb[0].mxu1 }
 0x29e   : > { %v2444_v24 = vpop.permute.xlu1 %2443  ;;  %v4105_v41 = vpop.f32.mrb[1].mxu1 }
 0x29f   : > { %vm2484_vm3 = vcmp.eq.s32.totalorder %v5455_v21, %v2444_v24  ;;  %vm2485_vm4 = vcmp.eq.s32.totalorder %v5464_v4, %v2444_v24  ;;  %v4106_v44 = vadd.f32 %v4105_v41, %v4104_v61  ;;  %v920_v61 = vadd.s32 %v888_v51, %v776_v58 }
 0x2a0   : > { %v2516_v49 = vsel %vm2484_vm3, 1, %v8840_v30  ;;  %v2517_v48 = vsel %vm2485_vm4, 1, %v8840_v30  ;;  %4446 = vset.pattern.permute.xlu1 %v8814_v37  ;;  %v921_v24 = vadd.s32 %v889_v35, %v777_v33  ;;  %v1176_v41 = vsel %vm1144_vm10, 1, %v8840_v30 }
 0x2a1   : > { %1600 = vperm.xlu1 %4446, %v8932_v14   ;;  %v2549_v13 = vadd.s32 %v2517_v48, %v2405_v16  ;;  %v2548_v22 = vadd.s32 %v2516_v49, %v2404_v52  ;;  %v1177_v16 = vsel %vm1145_vm12, 1, %v8840_v30  ;;  %v1654_v49 = vsel %vm1622_vm11, 1, %v8840_v30 }
 0x2a2   : > { %vm1289_vm3 = vcmp.eq.s32.totalorder %v5464_v4, %v1250_v2  ;;  %vm1766_vm4 = vcmp.eq.s32.totalorder %v5455_v21, %v6459_v42  ;;  %v1543_v42 = vsel %vm1511_vm14, 1, %v8840_v30  ;;  %v1686_v38 = vadd.s32 %v1654_v49, %v1542_v23  ;;  %v4651_v49 = vld [vmem:[%s4952_s28 + $0x60] sm:$0xff] }
 0x2a3   : > { %v6710_v60 = vpop.permute.xlu1 %1732  ;;  %v2581_v12 = vcvt.s32.f32 %v2549_v13  ;;  %v2580_v36 = vcvt.s32.f32 %v2548_v22  ;;  %v1655_v13 = vsel %vm1623_vm15, 1, %v8840_v30  ;;  %v1942_v2 = vsel %vm1910_vm6, 1, %v8840_v30 }
 0x2a4   : > { %v1687_v55 = vadd.s32 %v1655_v13, %v1543_v42  ;;  %vm2198_vm10 = vcmp.eq.s32.totalorder %v5455_v21, %v6671_v56  ;;  %vm2199_vm12 = vcmp.eq.s32.totalorder %v5464_v4, %v6671_v56  ;;  %v8939_v13 = vld [vmem:[#allocation17_spill] sm:$0xff] }
 0x2a5   : > { %4447 = vset.pattern.permute.xlu1 %v8842_v45  ;;  %2726 = vmatprep.mubr.f32.mxu0 %v2581_v12  ;;  %v1320_v12 = vsel %vm1288_vm0, 1, %v8840_v30  ;;  %vm314_vm14 = vcmp.eq.s32.totalorder %v5455_v21, %v8939_v13  ;;  %vm315_vm15 = vcmp.eq.s32.totalorder %v5464_v4, %v8939_v13 }
 0x2a6   : > { %2170 = vperm.xlu1 %4447, %v8909_v62   ;;  %2727 = vmatmul.mubr.f32.gmra.mrb[12].mxu0 %v2580_v36  ;;  %v1321_v36 = vsel %vm1289_vm3, 1, %v8840_v30  ;;  %v1831_v35 = vadd.s32 %v1799_v28, %v1687_v55  ;;  %v347_v28 = vsel %vm315_vm15, 1, %v8840_v30  ;;  %vm1625_vm15 = vcmp.eq.s32.totalorder %v5464_v4, %v6535_v15 }
 0x2a8   : > { %v6725_v57 = vpop.permute.xlu1 %2017 }
 0x2aa   : > { %4448 = vset.pattern.permute.xlu1 %v8833_v32 }
 0x2ab   : > { %2455 = vperm.xlu1 %4448, %v8902_v3  }
 0x2ac   : > { %v4024_v52 = vpop.f32.mrb[0].mxu0 }
 0x2ad   : > { %v962_v48 = vpop.permute.xlu1 %961  ;;  %v4025_v18 = vpop.f32.mrb[1].mxu0 }
 0x2ae   : > { %vm1000_vm1 = vcmp.eq.s32.totalorder %v5455_v21, %v962_v48  ;;  %vm1001_vm2 = vcmp.eq.s32.totalorder %v5464_v4, %v962_v48  ;;  %v4026_v3 = vadd.f32 %v4025_v18, %v4024_v52  ;;  %v2230_v48 = vsel %vm2198_vm10, 1, %v8840_v30 }
 0x2af   : > { %v1032_v9 = vsel %vm1000_vm1, 1, %v8840_v30  ;;  %v1033_v39 = vsel %vm1001_vm2, 1, %v8840_v30  ;;  %4449 = vset.pattern.permute.xlu1 %v8823_v34  ;;  %v2231_v18 = vsel %vm2199_vm12, 1, %v8840_v30  ;;  %vm1146_vm10 = vcmp.eq.s32.totalorder %v5455_v21, %v5927_v26 }
 0x2b0   : > { %v1064_v22 = vadd.s32 %v1032_v9, %v920_v61  ;;  %v1065_v59 = vadd.s32 %v1033_v39, %v921_v24  ;;  %v6757_v11 = vadd.f32 %v4106_v44, %v4026_v3  ;;  %1744 = vperm.xlu1 %4449, %v8932_v14   ;;  %v1798_v44 = vsel %vm1766_vm4, 1, %v8840_v30  ;;  %v8938_v3 = vld [vmem:[#allocation26_spill] sm:$0xff] }
 0x2b1   : > { %v1830_v58 = vadd.s32 %v1798_v44, %v1686_v38  ;;  %v1943_v61 = vsel %vm1911_vm7, 1, %v8840_v30  ;;  %vm2342_vm11 = vcmp.eq.s32.totalorder %v5455_v21, %v8938_v3  ;;  %vm2343_vm13 = vcmp.eq.s32.totalorder %v5464_v4, %v8938_v3 }
 0x2b2   : > { %v1208_v50 = vadd.s32 %v1176_v41, %v1064_v22  ;;  %v1209_v25 = vadd.s32 %v1177_v16, %v1065_v59  ;;  %v6774_v63 = vpop.permute.xlu1 %1479  ;;  %v2086_v41 = vsel %vm2054_vm8, 1, %v8840_v30  ;;  %v2087_v16 = vsel %vm2055_vm9, 1, %v8840_v30 }
 0x2b3   : > { %v1974_v0 = vadd.s32 %v1942_v2, %v1830_v58  ;;  %v1975_v52 = vadd.s32 %v1943_v61, %v1831_v35  ;;  %v2374_v23 = vsel %vm2342_vm11, 1, %v8840_v30  ;;  %v2375_v42 = vsel %vm2343_vm13, 1, %v8840_v30  ;;  %v8943_v35 = vld [vmem:[#allocation75_spill] sm:$0xff] }
 0x2b4   : > { %v1352_v54 = vadd.s32 %v1320_v12, %v1208_v50  ;;  %v1353_v51 = vadd.s32 %v1321_v36, %v1209_v25  ;;  %4450 = vset.pattern.permute.xlu1 %v8810_v40  ;;  %v8940_v12 = vld [vmem:[#allocation54_spill] sm:$0xff]  ;;  %v346_v44 = vsel %vm314_vm14, 1, %v8840_v30  ;;  %vm714_vm6 = vcmp.eq.s32.totalorder %v5455_v21, %v8943_v35 }
 0x2b5   : > { %2029 = vperm.xlu1 %4450, %v8922_v47   ;;  %v2118_v56 = vadd.s32 %v2086_v41, %v1974_v0  ;;  %v2119_v9 = vadd.s32 %v2087_v16, %v1975_v52  ;;  %v8941_v36 = vld [vmem:[#allocation18_spill] sm:$0xff]  ;;  %vm715_vm7 = vcmp.eq.s32.totalorder %v5464_v4, %v8943_v35  ;;  %vm1147_vm12 = vcmp.eq.s32.totalorder %v5464_v4, %v5927_v26 }
 0x2b6   : > { %v1385_v6 = vcvt.s32.f32 %v1353_v51  ;;  %v1384_v33 = vcvt.s32.f32 %v1352_v54  ;;  %vm426_vm0 = vcmp.eq.s32.totalorder %v5455_v21, %v8941_v36  ;;  %vm427_vm1 = vcmp.eq.s32.totalorder %v5464_v4, %v8941_v36  ;;  %v8942_v50 = vld [vmem:[#allocation50_spill] sm:$0xff] }
 0x2b7   : > { %v6788_v24 = vpop.permute.xlu1 %1591  ;;  %v2262_v22 = vadd.s32 %v2230_v48, %v2118_v56  ;;  %v2263_v59 = vadd.s32 %v2231_v18, %v2119_v9  ;;  %vm570_vm2 = vcmp.eq.s32.totalorder %v5455_v21, %v8942_v50  ;;  %v458_v27 = vsel %vm426_vm0, 1, %v8840_v30  ;;  %v8944_v9 = vld [vmem:[#allocation72_spill] sm:$0xff] }
 0x2b8   : > { %2881 = vmatprep.mubr.f32.mxu1 %v1385_v6  ;;  %vm571_vm5 = vcmp.eq.s32.totalorder %v5464_v4, %v8942_v50  ;;  %v459_v58 = vsel %vm427_vm1, 1, %v8840_v30  ;;  %v602_v2 = vsel %vm570_vm2, 1, %v8840_v30  ;;  %v490_v61 = vadd.s32 %v458_v27, %v346_v44 }
 0x2b9   : > { %4451 = vset.pattern.permute.xlu1 %v8842_v45  ;;  %2882 = vmatmul.mubr.f32.gmra.mrb[16].mxu1 %v1384_v33  ;;  %v2407_v38 = vadd.s32 %v2375_v42, %v2263_v59  ;;  %v2406_v55 = vadd.s32 %v2374_v23, %v2262_v22  ;;  %v603_v41 = vsel %vm571_vm5, 1, %v8840_v30  ;;  %v746_v48 = vsel %vm714_vm6, 1, %v8840_v30  ;;  %v1253_v23 = vpop.permute.xlu0 %1252 }
 0x2ba   : > { %973 = vperm.xlu1 %4451, %v4651_v49   ;;  %v491_v49 = vadd.s32 %v459_v58, %v347_v28  ;;  %v634_v18 = vadd.s32 %v602_v2, %v490_v61  ;;  %v747_v3 = vsel %vm715_vm7, 1, %v8840_v30  ;;  %vm858_vm8 = vcmp.eq.s32.totalorder %v5455_v21, %v8944_v9 }
 0x2bb   : > { %vm859_vm9 = vcmp.eq.s32.totalorder %v5464_v4, %v8944_v9  ;;  %v890_v42 = vsel %vm858_vm8, 1, %v8840_v30  ;;  %v1178_v28 = vsel %vm1146_vm10, 1, %v8840_v30  ;;  %v1179_v50 = vsel %vm1147_vm12, 1, %v8840_v30 }
 0x2bc   : > { %v6804_v39 = vpop.permute.xlu1 %2161  ;;  %v635_v56 = vadd.s32 %v603_v41, %v491_v49  ;;  %v778_v13 = vadd.s32 %v746_v48, %v634_v18  ;;  %v891_v36 = vsel %vm859_vm9, 1, %v8840_v30  ;;  %vm1290_vm11 = vcmp.eq.s32.totalorder %v5455_v21, %v1253_v23  ;;  %v8945_v18 = vld [vmem:[#allocation85_spill] sm:$0xff] }
 0x2bd   : > { %vm1512_vm13 = vcmp.eq.s32.totalorder %v5455_v21, %v6521_v29  ;;  %vm1624_vm14 = vcmp.eq.s32.totalorder %v5455_v21, %v6535_v15  ;;  %vm1291_vm0 = vcmp.eq.s32.totalorder %v5464_v4, %v1253_v23  ;;  %vm1513_vm1 = vcmp.eq.s32.totalorder %v5464_v4, %v6521_v29 }
 0x2be   : > { %4452 = vset.pattern.permute.xlu1 %v8840_v30  ;;  %v779_v22 = vadd.s32 %v747_v3, %v635_v56  ;;  %v922_v44 = vadd.s32 %v890_v42, %v778_v13  ;;  %vm1769_vm5 = vcmp.eq.s32.totalorder %v5464_v4, %v6585_v43  ;;  %v1323_v2 = vsel %vm1291_vm0, 1, %v8840_v30 }
 0x2bf   : > { %1491 = vperm.xlu1 %4452, %v8940_v12   ;;  %v1801_v41 = vsel %vm1769_vm5, 1, %v8840_v30  ;;  %vm1912_vm6 = vcmp.eq.s32.totalorder %v5455_v21, %v8945_v18  ;;  %vm1913_vm7 = vcmp.eq.s32.totalorder %v5464_v4, %v8945_v18  ;;  %vm2056_vm8 = vcmp.eq.s32.totalorder %v5455_v21, %v6725_v57 }
 0x2c0   : > { %vm2057_vm9 = vcmp.eq.s32.totalorder %v5464_v4, %v6725_v57  ;;  %v1944_v42 = vsel %vm1912_vm6, 1, %v8840_v30  ;;  %vm2200_vm10 = vcmp.eq.s32.totalorder %v5455_v21, %v6804_v39  ;;  %vm2201_vm12 = vcmp.eq.s32.totalorder %v5464_v4, %v6804_v39 }
 0x2c1   : > { %v2447_v25 = vpop.permute.xlu1 %2446 }
 0x2c2   : > { %vm2486_vm3 = vcmp.eq.s32.totalorder %v5455_v21, %v2447_v25  ;;  %vm2487_vm4 = vcmp.eq.s32.totalorder %v5464_v4, %v2447_v25 }
 0x2c3   : > { %v2518_v54 = vsel %vm2486_vm3, 1, %v8840_v30  ;;  %v2519_v51 = vsel %vm2487_vm4, 1, %v8840_v30  ;;  %4453 = vset.pattern.permute.xlu1 %v8814_v37  ;;  %vm1768_vm4 = vcmp.eq.s32.totalorder %v5455_v21, %v6585_v43  ;;  %v1545_v43 = vsel %vm1513_vm1, 1, %v8840_v30 }
 0x2c4   : > { %1603 = vperm.xlu1 %4453, %v8940_v12   ;;  %v2551_v6 = vadd.s32 %v2519_v51, %v2407_v38  ;;  %v2550_v33 = vadd.s32 %v2518_v54, %v2406_v55  ;;  %v923_v38 = vadd.s32 %v891_v36, %v779_v22  ;;  %v1656_v54 = vsel %vm1624_vm14, 1, %v8840_v30 }
 0x2c5   : > { %v1657_v51 = vsel %vm1625_vm15, 1, %v8840_v30  ;;  %v1800_v61 = vsel %vm1768_vm4, 1, %v8840_v30  ;;  %v1945_v36 = vsel %vm1913_vm7, 1, %v8840_v30 }
 0x2c6   : > { %v6841_v16 = vpop.permute.xlu1 %1735  ;;  %v2583_v0 = vcvt.s32.f32 %v2551_v6  ;;  %v2582_v52 = vcvt.s32.f32 %v2550_v33  ;;  %v1544_v6 = vsel %vm1512_vm13, 1, %v8840_v30  ;;  %v1322_v33 = vsel %vm1290_vm11, 1, %v8840_v30 }
 0x2c7   : > { %v1688_v29 = vadd.s32 %v1656_v54, %v1544_v6  ;;  %v1689_v48 = vadd.s32 %v1657_v51, %v1545_v43  ;;  %v8947_v51 = vld [vmem:[#allocation34_spill] sm:$0xff] }
 0x2c8   : > { %4454 = vset.pattern.permute.xlu1 %v8842_v45  ;;  %2731 = vmatprep.mubr.f32.mxu0 %v2583_v0  ;;  %vm428_vm14 = vcmp.eq.s32.totalorder %v5455_v21, %v8947_v51  ;;  %vm429_vm15 = vcmp.eq.s32.totalorder %v5464_v4, %v8947_v51 }
 0x2c9   : > { %2173 = vperm.xlu1 %4454, %v8922_v47   ;;  %2732 = vmatmul.mubr.f32.gmra.mrb[14].mxu0 %v2582_v52  ;;  %v1832_v9 = vadd.s32 %v1800_v61, %v1688_v29  ;;  %v1833_v13 = vadd.s32 %v1801_v41, %v1689_v48  ;;  %v461_v61 = vsel %vm429_vm15, 1, %v8840_v30  ;;  %v8949_v41 = vld [vmem:[#allocation35_spill] sm:$0xff]  ;;  %v8950_v48 = vld [vmem:[#allocation64_spill] sm:$0xff] }
 0x2ca   : > { %vm316_vm0 = vcmp.eq.s32.totalorder %v5455_v21, %v8949_v41  ;;  %vm317_vm1 = vcmp.eq.s32.totalorder %v5464_v4, %v8949_v41  ;;  %vm572_vm4 = vcmp.eq.s32.totalorder %v5455_v21, %v8950_v48  ;;  %vm573_vm5 = vcmp.eq.s32.totalorder %v5464_v4, %v8950_v48 }
 0x2cb   : > { %v6851_v59 = vpop.permute.xlu1 %2020  ;;  %v1976_v57 = vadd.s32 %v1944_v42, %v1832_v9  ;;  %v349_v9 = vsel %vm317_vm1, 1, %v8840_v30  ;;  %v605_v42 = vsel %vm573_vm5, 1, %v8840_v30  ;;  %vm1515_vm1 = vcmp.eq.s32.totalorder %v5464_v4, %v6641_v17 }
 0x2cc   : > { %vm1771_vm5 = vcmp.eq.s32.totalorder %v5464_v4, %v6710_v60 }
 0x2cd   : > { %4455 = vset.pattern.permute.xlu1 %v8833_v32 }
 0x2ce   : > { %2458 = vperm.xlu1 %4455, %v8909_v62  }
 0x2cf   : > { %v4027_v25 = vpop.f32.mrb[2].mxu0 }
 0x2d0   : > { %v965_v26 = vpop.permute.xlu1 %964  ;;  %v4028_v62 = vpop.f32.mrb[3].mxu0 }
 0x2d1   : > { %vm1002_vm2 = vcmp.eq.s32.totalorder %v5455_v21, %v965_v26  ;;  %vm1003_vm3 = vcmp.eq.s32.totalorder %v5464_v4, %v965_v26  ;;  %v6875_v55 = vadd.f32 %v4028_v62, %v4027_v25  ;;  %v1977_v25 = vadd.s32 %v1945_v36, %v1833_v13 }
 0x2d2   : > { %v1034_v15 = vsel %vm1002_vm2, 1, %v8840_v30  ;;  %v1035_v27 = vsel %vm1003_vm3, 1, %v8840_v30  ;;  %4456 = vset.pattern.permute.xlu1 %v8823_v34  ;;  %v2232_v26 = vsel %vm2200_vm10, 1, %v8840_v30  ;;  %v2233_v62 = vsel %vm2201_vm12, 1, %v8840_v30 }
 0x2d3   : > { %v1066_v58 = vadd.s32 %v1034_v15, %v922_v44  ;;  %v1067_v35 = vadd.s32 %v1035_v27, %v923_v38  ;;  %1747 = vperm.xlu1 %4456, %v8940_v12   ;;  %v4652_v38 = vld [vmem:[%s4952_s28 + $0x68] sm:$0xff]  ;;  %vm1148_vm10 = vcmp.eq.s32.totalorder %v5455_v21, %v5997_v46  ;;  %vm1149_vm12 = vcmp.eq.s32.totalorder %v5464_v4, %v5997_v46 }
 0x2d4   : > { %v8946_v15 = vld [vmem:[#allocation28_spill] sm:$0xff] }
 0x2d5   : > { %v1210_v0 = vadd.s32 %v1178_v28, %v1066_v58  ;;  %v1211_v52 = vadd.s32 %v1179_v50, %v1067_v35  ;;  %v6900_v49 = vpop.permute.xlu1 %1482  ;;  %v2088_v28 = vsel %vm2056_vm8, 1, %v8840_v30  ;;  %v2089_v50 = vsel %vm2057_vm9, 1, %v8840_v30 }
 0x2d6   : > { %vm2344_vm11 = vcmp.eq.s32.totalorder %v5455_v21, %v8946_v15  ;;  %vm2345_vm13 = vcmp.eq.s32.totalorder %v5464_v4, %v8946_v15  ;;  %v2120_v39 = vadd.s32 %v2088_v28, %v1976_v57  ;;  %v2121_v27 = vadd.s32 %v2089_v50, %v1977_v25 }
 0x2d7   : > { %v1354_v3 = vadd.s32 %v1322_v33, %v1210_v0  ;;  %v1355_v56 = vadd.s32 %v1323_v2, %v1211_v52  ;;  %4457 = vset.pattern.permute.xlu1 %v8810_v40  ;;  %v2376_v6 = vsel %vm2344_vm11, 1, %v8840_v30  ;;  %v2377_v43 = vsel %vm2345_vm13, 1, %v8840_v30  ;;  %v8948_v33 = vld [vmem:[#allocation67_spill] sm:$0xff] }
 0x2d8   : > { %2032 = vperm.xlu1 %4457, %v8932_v14   ;;  %v2264_v58 = vadd.s32 %v2232_v26, %v2120_v39  ;;  %v2265_v35 = vadd.s32 %v2233_v62, %v2121_v27  ;;  %v460_v2 = vsel %vm428_vm14, 1, %v8840_v30  ;;  %v493_v25 = vadd.s32 %v461_v61, %v349_v9  ;;  %v1256_v61 = vpop.permute.xlu0 %1255 }
 0x2d9   : > { %v1387_v22 = vcvt.s32.f32 %v1355_v56  ;;  %v1386_v23 = vcvt.s32.f32 %v1354_v3  ;;  %v348_v56 = vsel %vm316_vm0, 1, %v8840_v30  ;;  %vm1626_vm11 = vcmp.eq.s32.totalorder %v5455_v21, %v6655_v53 }
 0x2da   : > { %v6914_v44 = vpop.permute.xlu1 %1594  ;;  %v2409_v52 = vadd.s32 %v2377_v43, %v2265_v35  ;;  %v2408_v29 = vadd.s32 %v2376_v6, %v2264_v58  ;;  %v492_v57 = vadd.s32 %v460_v2, %v348_v56  ;;  %v637_v62 = vadd.s32 %v605_v42, %v493_v25 }
 0x2db   : > { %2886 = vmatprep.mubr.f32.mxu1 %v1387_v22  ;;  %vm1627_vm13 = vcmp.eq.s32.totalorder %v5464_v4, %v6655_v53  ;;  %vm1292_vm14 = vcmp.eq.s32.totalorder %v5455_v21, %v1256_v61  ;;  %vm1293_vm15 = vcmp.eq.s32.totalorder %v5464_v4, %v1256_v61  ;;  %vm1514_vm0 = vcmp.eq.s32.totalorder %v5455_v21, %v6641_v17 }
 0x2dc   : > { %4458 = vset.pattern.permute.xlu1 %v8842_v45  ;;  %2887 = vmatmul.mubr.f32.gmra.mrb[18].mxu1 %v1386_v23  ;;  %v604_v23 = vsel %vm572_vm4, 1, %v8840_v30  ;;  %vm1770_vm4 = vcmp.eq.s32.totalorder %v5455_v21, %v6710_v60  ;;  %v1658_v48 = vsel %vm1626_vm11, 1, %v8840_v30  ;;  %v1659_v17 = vsel %vm1627_vm13, 1, %v8840_v30 }
 0x2dd   : > { %976 = vperm.xlu1 %4458, %v4652_v38   ;;  %v8951_v38 = vld [vmem:[#allocation63_spill] sm:$0xff]  ;;  %v636_v26 = vadd.s32 %v604_v23, %v492_v57  ;;  %v1546_v56 = vsel %vm1514_vm0, 1, %v8840_v30  ;;  %v1547_v9 = vsel %vm1515_vm1, 1, %v8840_v30  ;;  %v1324_v60 = vsel %vm1292_vm14, 1, %v8840_v30 }
 0x2de   : > { %vm716_vm6 = vcmp.eq.s32.totalorder %v5455_v21, %v8951_v38  ;;  %vm717_vm7 = vcmp.eq.s32.totalorder %v5464_v4, %v8951_v38  ;;  %v1691_v57 = vadd.s32 %v1659_v17, %v1547_v9  ;;  %vm2346_vm1 = vcmp.eq.s32.totalorder %v5455_v21, %v5969_v7 }
 0x2df   : > { %v6930_v54 = vpop.permute.xlu1 %2164  ;;  %v748_v39 = vsel %vm716_vm6, 1, %v8840_v30  ;;  %v749_v27 = vsel %vm717_vm7, 1, %v8840_v30 }
 0x2e0   : > { %v780_v43 = vadd.s32 %v748_v39, %v636_v26  ;;  %v781_v2 = vadd.s32 %v749_v27, %v637_v62  ;;  %v8954_v27 = vld [vmem:[#allocation19_spill] sm:$0xff]  ;;  %vm2202_vm13 = vcmp.eq.s32.totalorder %v5455_v21, %v6930_v54  ;;  %vm2203_vm14 = vcmp.eq.s32.totalorder %v5464_v4, %v6930_v54 }
 0x2e1   : > { %4459 = vset.pattern.permute.xlu1 %v8840_v30 }
 0x2e2   : > { %1494 = vperm.xlu1 %4459, %v8948_v33  }
 0x2e4   : > { %v2450_v0 = vpop.permute.xlu1 %2449 }
 0x2e5   : > { %vm2488_vm2 = vcmp.eq.s32.totalorder %v5455_v21, %v2450_v0  ;;  %vm2489_vm3 = vcmp.eq.s32.totalorder %v5464_v4, %v2450_v0 }
 0x2e6   : > { %v2520_v18 = vsel %vm2488_vm2, 1, %v8840_v30  ;;  %v2521_v3 = vsel %vm2489_vm3, 1, %v8840_v30  ;;  %4460 = vset.pattern.permute.xlu1 %v8814_v37  ;;  %v8952_v37 = vld [vmem:[#allocation94_spill] sm:$0xff] }
 0x2e7   : > { %1606 = vperm.xlu1 %4460, %v8948_v33   ;;  %v2553_v13 = vadd.s32 %v2521_v3, %v2409_v52  ;;  %v2552_v22 = vadd.s32 %v2520_v18, %v2408_v29  ;;  %vm860_vm8 = vcmp.eq.s32.totalorder %v5455_v21, %v8952_v37  ;;  %vm861_vm9 = vcmp.eq.s32.totalorder %v5464_v4, %v8952_v37  ;;  %v8953_v37 = vld [vmem:[#allocation86_spill] sm:$0xff] }
 0x2e8   : > { %v892_v51 = vsel %vm860_vm8, 1, %v8840_v30  ;;  %v893_v6 = vsel %vm861_vm9, 1, %v8840_v30  ;;  %v1180_v52 = vsel %vm1148_vm10, 1, %v8840_v30  ;;  %v1181_v29 = vsel %vm1149_vm12, 1, %v8840_v30 }
 0x2e9   : > { %v6960_v36 = vpop.permute.xlu1 %1738  ;;  %v2585_v28 = vcvt.s32.f32 %v2553_v13  ;;  %v2584_v50 = vcvt.s32.f32 %v2552_v22  ;;  %v924_v41 = vadd.s32 %v892_v51, %v780_v43  ;;  %v925_v0 = vadd.s32 %v893_v6, %v781_v2  ;;  %v8955_v51 = vld [vmem:[#allocation20_spill] sm:$0xff] }
 0x2ea   : > { %v1802_v13 = vsel %vm1770_vm4, 1, %v8840_v30  ;;  %v1803_v22 = vsel %vm1771_vm5, 1, %v8840_v30  ;;  %vm1914_vm6 = vcmp.eq.s32.totalorder %v5455_v21, %v8953_v37  ;;  %vm1915_vm7 = vcmp.eq.s32.totalorder %v5464_v4, %v8953_v37  ;;  %v8956_v2 = vld [vmem:[#allocation52_spill] sm:$0xff] }
 0x2eb   : > { %4462 = vset.pattern.permute.xlu1 %v8842_v45  ;;  %2736 = vmatprep.mubr.f32.mxu0 %v2585_v28  ;;  %v1835_v62 = vadd.s32 %v1803_v22, %v1691_v57  ;;  %vm2058_vm8 = vcmp.eq.s32.totalorder %v5455_v21, %v6851_v59  ;;  %vm2059_vm9 = vcmp.eq.s32.totalorder %v5464_v4, %v6851_v59  ;;  %v1946_v59 = vsel %vm1914_vm6, 1, %v8840_v30 }
 0x2ec   : > { %2176 = vperm.xlu1 %4462, %v8932_v14   ;;  %2737 = vmatmul.mubr.f32.gmra.mrb[16].mxu0 %v2584_v50  ;;  %v1690_v50 = vadd.s32 %v1658_v48, %v1546_v56  ;;  %vm318_vm10 = vcmp.eq.s32.totalorder %v5455_v21, %v8954_v27  ;;  %vm319_vm12 = vcmp.eq.s32.totalorder %v5464_v4, %v8954_v27  ;;  %v2090_v6 = vsel %vm2058_vm8, 1, %v8840_v30 }
 0x2ed   : > { %v4030_v15 = vpop.f32.mrb[4].mxu0  ;;  %vm430_vm11 = vcmp.eq.s32.totalorder %v5455_v21, %v8955_v51  ;;  %v2091_v43 = vsel %vm2059_vm9, 1, %v8840_v30  ;;  %vm574_vm0 = vcmp.eq.s32.totalorder %v5455_v21, %v8956_v2 }
 0x2ee   : > { %v6975_v58 = vpop.permute.xlu1 %2023  ;;  %v4031_v35 = vpop.f32.mrb[5].mxu0  ;;  %v1834_v26 = vadd.s32 %v1802_v13, %v1690_v50  ;;  %v2378_v13 = vsel %vm2346_vm1, 1, %v8840_v30 }
 0x2ef   : > { %v6982_v14 = vadd.f32 %v4031_v35, %v4030_v15  ;;  %v1947_v35 = vsel %vm1915_vm7, 1, %v8840_v30 }
 0x2f0   : > { %4463 = vset.pattern.permute.xlu1 %v8833_v32  ;;  %v1978_v61 = vadd.s32 %v1946_v59, %v1834_v26 }
 0x2f1   : > { %2461 = vperm.xlu1 %4463, %v8922_v47  }
 0x2f3   : > { %v968_v46 = vpop.permute.xlu1 %967 }
 0x2f4   : > { %vm1004_vm2 = vcmp.eq.s32.totalorder %v5455_v21, %v968_v46  ;;  %vm1005_vm3 = vcmp.eq.s32.totalorder %v5464_v4, %v968_v46  ;;  %v2234_v46 = vsel %vm2202_vm13, 1, %v8840_v30 }
 0x2f5   : > { %v1036_v47 = vsel %vm1004_vm2, 1, %v8840_v30  ;;  %v1037_v53 = vsel %vm1005_vm3, 1, %v8840_v30  ;;  %4464 = vset.pattern.permute.xlu1 %v8823_v34  ;;  %v1325_v34 = vsel %vm1293_vm15, 1, %v8840_v30  ;;  %vm431_vm15 = vcmp.eq.s32.totalorder %v5464_v4, %v8955_v51  ;;  %v8960_v51 = vld [vmem:[#allocation74_spill] sm:$0xff] }
 0x2f6   : > { %v1068_v18 = vadd.s32 %v1036_v47, %v924_v41  ;;  %v1069_v3 = vadd.s32 %v1037_v53, %v925_v0  ;;  %1750 = vperm.xlu1 %4464, %v8948_v33   ;;  %v1979_v41 = vadd.s32 %v1947_v35, %v1835_v62  ;;  %v4653_v0 = vld [vmem:[%s4952_s28 + $0x70] sm:$0xff]  ;;  %v2235_v47 = vsel %vm2203_vm14, 1, %v8840_v30  ;;  %v8959_v62 = vld [vmem:[#allocation36_spill] sm:$0xff] }
 0x2f7   : > { %vm2347_vm2 = vcmp.eq.s32.totalorder %v5464_v4, %v5969_v7  ;;  %v2122_v53 = vadd.s32 %v2090_v6, %v1978_v61  ;;  %v463_v54 = vsel %vm431_vm15, 1, %v8840_v30  ;;  %vm575_vm3 = vcmp.eq.s32.totalorder %v5464_v4, %v8956_v2  ;;  %v8961_v2 = vld [vmem:[#allocation37_spill] sm:$0xff] }
 0x2f8   : > { %v1212_v23 = vadd.s32 %v1180_v52, %v1068_v18  ;;  %v1213_v42 = vadd.s32 %v1181_v29, %v1069_v3  ;;  %v7020_v28 = vpop.permute.xlu1 %1485  ;;  %v350_v52 = vsel %vm318_vm10, 1, %v8840_v30  ;;  %v462_v29 = vsel %vm430_vm11, 1, %v8840_v30  ;;  %v8957_v3 = vld [vmem:[#allocation77_spill] sm:$0xff] }
 0x2f9   : > { %v2123_v48 = vadd.s32 %v2091_v43, %v1979_v41  ;;  %v351_v18 = vsel %vm319_vm12, 1, %v8840_v30  ;;  %v606_v7 = vsel %vm574_vm0, 1, %v8840_v30  ;;  %vm718_vm4 = vcmp.eq.s32.totalorder %v5455_v21, %v8957_v3 }
 0x2fa   : > { %v1356_v25 = vadd.s32 %v1324_v60, %v1212_v23  ;;  %v1357_v38 = vadd.s32 %v1325_v34, %v1213_v42  ;;  %4465 = vset.pattern.permute.xlu1 %v8810_v40  ;;  %vm719_vm5 = vcmp.eq.s32.totalorder %v5464_v4, %v8957_v3  ;;  %v2266_v56 = vadd.s32 %v2234_v46, %v2122_v53  ;;  %v8962_v53 = vld [vmem:[#allocation87_spill] sm:$0xff]  ;;  %v7149_v3 = vpop.permute.xlu0 %1258 }
 0x2fb   : > { %2035 = vperm.xlu1 %4465, %v8940_v12   ;;  %v2267_v9 = vadd.s32 %v2235_v47, %v2123_v48  ;;  %v8958_v60 = vmov 3   ;;  %v494_v34 = vadd.s32 %v462_v29, %v350_v52  ;;  %v2379_v22 = vsel %vm2347_vm2, 1, %v8840_v30 }
 0x2fc   : > { %v1389_v15 = vcvt.s32.f32 %v1357_v38  ;;  %v1388_v39 = vcvt.s32.f32 %v1356_v25  ;;  %v607_v23 = vsel %vm575_vm3, 1, %v8840_v30  ;;  %v495_v42 = vadd.s32 %v463_v54, %v351_v18 }
 0x2fd   : > { %v7034_v40 = vpop.permute.xlu1 %1597  ;;  %v638_v50 = vadd.s32 %v606_v7, %v494_v34  ;;  %v750_v57 = vsel %vm718_vm4, 1, %v8840_v30  ;;  %v751_v25 = vsel %vm719_vm5, 1, %v8840_v30  ;;  %v2411_v37 = vadd.s32 %v2379_v22, %v2267_v9 }
 0x2fe   : > { %2891 = vmatprep.mubr.f32.mxu1 %v1389_v15  ;;  %v2410_v26 = vadd.s32 %v2378_v13, %v2266_v56  ;;  %vm432_vm8 = vcmp.eq.s32.totalorder %v5455_v21, %v8959_v62  ;;  %v639_v15 = vadd.s32 %v607_v23, %v495_v42  ;;  %vm862_vm9 = vcmp.eq.s32.totalorder %v5455_v21, %v8960_v51 }
 0x2ff   : > { %4466 = vset.pattern.permute.xlu1 %v8842_v45  ;;  %2892 = vmatmul.mubr.f32.gmra.mrb[20].mxu1 %v1388_v39  ;;  %v782_v59 = vadd.s32 %v750_v57, %v638_v50  ;;  %vm863_vm10 = vcmp.eq.s32.totalorder %v5464_v4, %v8960_v51  ;;  %vm320_vm12 = vcmp.eq.s32.totalorder %v5455_v21, %v8961_v2  ;;  %v7127_v29 = vsel %vm432_vm8, 1, %v8840_v30  ;;  %v2927_v50 = vld [vmem:[#allocation5 + $0x28] sm:$0xff] }
 0x300   : > { %979 = vperm.xlu1 %4466, %v4653_v0   ;;  %v783_v43 = vadd.s32 %v751_v25, %v639_v15  ;;  %v894_v46 = vsel %vm862_vm9, 1, %v8840_v30  ;;  %vm1628_vm11 = vcmp.eq.s32.totalorder %v5455_v21, %v6788_v24  ;;  %v895_v47 = vsel %vm863_vm10, 1, %v8840_v30  ;;  %v2926_v15 = vld [vmem:[#allocation5 + $0x20] sm:$0xff] }
 0x301   : > { %vm1916_vm13 = vcmp.eq.s32.totalorder %v5455_v21, %v8962_v53  ;;  %vm1629_vm14 = vcmp.eq.s32.totalorder %v5464_v4, %v6788_v24  ;;  %v8963_v48 = vmov 6   ;;  %v7138_v18 = vadd.s32 %v894_v46, %v782_v59  ;;  %v2923_v24 = vld [vmem:[#allocation5 + $0x8] sm:$0xff] }
 0x302   : > { %v7080_v17 = vpop.permute.xlu1 %2167  ;;  %v7141_v54 = vsel %vm320_vm12, 1, %v8840_v30  ;;  %vm1516_vm15 = vcmp.eq.s32.totalorder %v5455_v21, %v6774_v63  ;;  %vm1772_vm0 = vcmp.eq.s32.totalorder %v5455_v21, %v6841_v16  ;;  %v7147_v7 = vadd.s32 %v895_v47, %v783_v43 }
 0x303   : > { %vm1917_vm1 = vcmp.eq.s32.totalorder %v5464_v4, %v8962_v53  ;;  %vm1517_vm2 = vcmp.eq.s32.totalorder %v5464_v4, %v6774_v63  ;;  %v1660_v56 = vsel %vm1628_vm11, 1, %v8840_v30  ;;  %vm1773_vm3 = vcmp.eq.s32.totalorder %v5464_v4, %v6841_v16 }
 0x304   : > { %4467 = vset.pattern.permute.xlu1 %v8958_v60  ;;  %v7165_v9 = vsel %vm1916_vm13, 1, %v8840_v30  ;;  %vm1150_vm4 = vcmp.eq.s32.totalorder %v5455_v21, %v6080_v10  ;;  %vm1151_vm5 = vcmp.eq.s32.totalorder %v5464_v4, %v6080_v10  ;;  %v1661_v60 = vsel %vm1629_vm14, 1, %v8840_v30 }
 0x305   : > { %1894 = vperm.xlu1 %4467, %v8948_v33   ;;  %v1548_v22 = vsel %vm1516_vm15, 1, %v8840_v30  ;;  %v1804_v23 = vsel %vm1772_vm0, 1, %v8840_v30  ;;  %v1549_v57 = vsel %vm1517_vm2, 1, %v8840_v30  ;;  %v1182_v63 = vsel %vm1150_vm4, 1, %v8840_v30 }
 0x306   : > { %v1692_v25 = vadd.s32 %v1660_v56, %v1548_v22  ;;  %v1183_v16 = vsel %vm1151_vm5, 1, %v8840_v30  ;;  %vm2060_vm8 = vcmp.eq.s32.totalorder %v5455_v21, %v6975_v58  ;;  %v2931_v56 = vld [vmem:[#allocation5 + $0x48] sm:$0xff]  ;;  %vm2061_vm9 = vcmp.eq.s32.totalorder %v5464_v4, %v6975_v58  ;;  %v2928_v22 = vld [vmem:[#allocation5 + $0x30] sm:$0xff] }
 0x307   : > { %v2453_v38 = vpop.permute.xlu1 %2452  ;;  %vm433_vm11 = vcmp.eq.s32.totalorder %v5464_v4, %v8959_v62  ;;  %vm321_vm13 = vcmp.eq.s32.totalorder %v5464_v4, %v8961_v2  ;;  %vm2348_vm15 = vcmp.eq.s32.totalorder %v5455_v21, %v6023_v1  ;;  %vm2204_vm0 = vcmp.eq.s32.totalorder %v5455_v21, %v7080_v17 }
 0x308   : > { %vm2490_vm6 = vcmp.eq.s32.totalorder %v5455_v21, %v2453_v38  ;;  %vm2491_vm7 = vcmp.eq.s32.totalorder %v5464_v4, %v2453_v38  ;;  %v1805_v38 = vsel %vm1773_vm3, 1, %v8840_v30  ;;  %v2380_v2 = vsel %vm2348_vm15, 1, %v8840_v30 }
 0x309   : > { %v2522_v39 = vsel %vm2490_vm6, 1, %v8840_v30  ;;  %v2523_v27 = vsel %vm2491_vm7, 1, %v8840_v30  ;;  %4468 = vset.pattern.permute.xlu1 %v8842_v45  ;;  %vm1294_vm6 = vcmp.eq.s32.totalorder %v5455_v21, %v7149_v3  ;;  %vm1295_vm7 = vcmp.eq.s32.totalorder %v5464_v4, %v7149_v3 }
 0x30a   : > { %2179 = vperm.xlu1 %4468, %v8940_v12   ;;  %v2555_v35 = vadd.s32 %v2523_v27, %v2411_v37  ;;  %v2554_v6 = vadd.s32 %v2522_v39, %v2410_v26  ;;  %v4216_v37 = vpack.c.bf16 %v2927_v50, %v2923_v24  ;;  %v2922_v26 = vld [vmem:[#allocation5] sm:$0xff]  ;;  %v1949_v39 = vsel %vm1917_vm1, 1, %v8840_v30 }
 0x30b   : > { %v1693_v27 = vadd.s32 %v1661_v60, %v1549_v57  ;;  %v4218_v59 = vpack.c.bf16 %v2926_v15, %v2922_v26  ;;  %v7216_v43 = vsel %vm1294_vm6, 1, %v8840_v30  ;;  %v2924_v60 = vld [vmem:[#allocation5 + $0x10] sm:$0xff]  ;;  %v2934_v24 = vld [vmem:[#allocation5 + $0x60] sm:$0xff]  ;;  %v7259_v3 = vsel %vm2061_vm9, 1, %v8840_v30 }
 0x30c   : > { %v7121_v61 = vpop.permute.xlu1 %1741  ;;  %v2587_v41 = vcvt.s32.f32 %v2555_v35  ;;  %v2586_v52 = vcvt.s32.f32 %v2554_v6  ;;  %v1836_v35 = vadd.s32 %v1804_v23, %v1692_v25  ;;  %4217 = vmatprep.subr.bf16.mxu0 %v4216_v37  ;;  %v2930_v23 = vld [vmem:[#allocation5 + $0x40] sm:$0xff]  ;;  %v4250_v26 = vpack.c.bf16 %v2928_v22, %v2924_v60 }
 0x30d   : > { %v1837_v46 = vadd.s32 %v1805_v38, %v1693_v27  ;;  %4219 = vmatpush1.bf16.msra.mxu0 %v4218_v59  ;;  %v7231_v38 = vld [vmem:[%s4952_s28 + $0x78] sm:$0xff]  ;;  %vm2205_vm1 = vcmp.eq.s32.totalorder %v5464_v4, %v7080_v17  ;;  %vm2349_vm6 = vcmp.eq.s32.totalorder %v5464_v4, %v6023_v1 }
 0x30e   : > { %4469 = vset.pattern.permute.xlu1 %v8963_v48  ;;  %2741 = vmatprep.mubr.f32.mxu0 %v2587_v41  ;;  %v2925_v41 = vld [vmem:[#allocation5 + $0x18] sm:$0xff] }
 0x30f   : > { %1123 = vperm.xlu1 %4469, %v4653_v0   ;;  %2742 = vmatmul.mubr.f32.gmra.mrb[18].mxu0 %v2586_v52  ;;  %v2929_v52 = vld [vmem:[#allocation5 + $0x38] sm:$0xff] }
 0x310   : > { %v4033_v0 = vpop.f32.mrb[6].mxu0  ;;  %v4248_v53 = vpack.c.bf16 %v2929_v52, %v2925_v41  ;;  %v2933_v59 = vld [vmem:[#allocation5 + $0x58] sm:$0xff]  ;;  %v1980_v52 = vadd.s32 %v7165_v9, %v1836_v35  ;;  %v2936_v35 = vld [vmem:[#allocation5 + $0x70] sm:$0xff] }
 0x311   : > { %v7175_v34 = vpop.permute.xlu1 %2026  ;;  %v4034_v13 = vpop.f32.mrb[7].mxu0  ;;  %v8964_v41 = vld [vmem:[#allocation66_spill] sm:$0xff] }
 0x312   : > { %v7185_v42 = vadd.f32 %v4034_v13, %v4033_v0  ;;  %v2935_v0 = vld [vmem:[#allocation5 + $0x68] sm:$0xff]  ;;  %4249 = vmatprep.subr.bf16.mxu1 %v4248_v53  ;;  %vm576_vm14 = vcmp.eq.s32.totalorder %v5455_v21, %v8964_v41 }
 0x313   : > { %2323 = vperm.xlu1 %4469, %v8940_v12   ;;  %v4220_v13 = vpack.c.bf16 %v2935_v0, %v2931_v56  ;;  %4251 = vmatpush1.bf16.msra.mxu1 %v4250_v26  ;;  %v2943_v53 = vld [vmem:[#allocation5 + $0xa8] sm:$0xff]  ;;  %v2932_v56 = vld [vmem:[#allocation5 + $0x50] sm:$0xff]  ;;  %v7253_v0 = vadd.s32 %v1949_v39, %v1837_v46  ;;  %v608_v62 = vsel %vm576_vm14, 1, %v8840_v30 }
 0x314   : > { %v4107_v51 = vpop.f32.mrb[2].mxu1  ;;  %v4254_v26 = vpack.c.bf16 %v2936_v35, %v2932_v56 }
 0x315   : > { %v4108_v6 = vpop.f32.mrb[3].mxu1  ;;  %4221 = vmatprep.subr.bf16.mxu0 %v4220_v13  ;;  %v2125_v17 = vadd.s32 %v7259_v3, %v7253_v0 }
 0x316   : > { %v4109_v10 = vadd.f32 %v4108_v6, %v4107_v51  ;;  %v971_v47 = vpop.permute.xlu1 %970  ;;  %v4222_v51 = vpack.c.bf16 %v2934_v24, %v2930_v23  ;;  %v2937_v6 = vld [vmem:[#allocation5 + $0x78] sm:$0xff]  ;;  %v2938_v23 = vld [vmem:[#allocation5 + $0x80] sm:$0xff] }
 0x317   : > { %vm1006_vm10 = vcmp.eq.s32.totalorder %v5455_v21, %v971_v47  ;;  %vm1007_vm12 = vcmp.eq.s32.totalorder %v5464_v4, %v971_v47  ;;  %4471 = vset.pattern.permute.xlu1 %v8842_v45  ;;  %v2092_v45 = vsel %vm2060_vm8, 1, %v8840_v30  ;;  %v2939_v47 = vld [vmem:[#allocation5 + $0x88] sm:$0xff]  ;;  %v2942_v24 = vld [vmem:[#allocation5 + $0xa0] sm:$0xff] }
 0x318   : > { %v7226_v50 = vadd.f32 %v4109_v10, %v6875_v55  ;;  %v1038_v57 = vsel %vm1006_vm10, 1, %v8840_v30  ;;  %v1039_v25 = vsel %vm1007_vm12, 1, %v8840_v30  ;;  %982 = vperm.xlu1 %4471, %v7231_v38   ;;  %v4110_v37 = vpop.f32.mrb[4].mxu1  ;;  %4223 = vmatpush1.bf16.msra.mxu0 %v4222_v51  ;;  %v4224_v9 = vpack.c.bf16 %v2943_v53, %v2939_v47 }
 0x319   : > { %v1070_v55 = vadd.s32 %v1038_v57, %v7138_v18  ;;  %v1071_v15 = vadd.s32 %v1039_v25, %v7147_v7  ;;  %v4111_v27 = vpop.f32.mrb[5].mxu1  ;;  %v1327_v18 = vsel %vm1295_vm7, 1, %v8840_v30  ;;  %v4252_v7 = vpack.c.bf16 %v2937_v6, %v2933_v59  ;;  %v2941_v25 = vld [vmem:[#allocation5 + $0x98] sm:$0xff] }
 0x31a   : > { %v4112_v10 = vadd.f32 %v4111_v27, %v4110_v37  ;;  %v7261_v57 = vadd.s32 %v2092_v45, %v1980_v52  ;;  %4225 = vmatprep.subr.bf16.mxu0 %v4224_v9  ;;  %v2945_v37 = vld [vmem:[#allocation5 + $0xb8] sm:$0xff]  ;;  %v4226_v45 = vpack.c.bf16 %v2942_v24, %v2938_v23  ;;  %v2940_v27 = vld [vmem:[#allocation5 + $0x90] sm:$0xff]  ;;  %vm577_vm7 = vcmp.eq.s32.totalorder %v5464_v4, %v8964_v41 }
 0x31b   : > { %v1214_v60 = vadd.s32 %v1182_v63, %v1070_v55  ;;  %v1215_v13 = vadd.s32 %v1183_v16, %v1071_v15  ;;  %v1489_v22 = vpop.permute.xlu1 %1488  ;;  %4253 = vmatprep.subr.bf16.mxu1 %v4252_v7  ;;  %v2947_v55 = vld [vmem:[#allocation5 + $0xc8] sm:$0xff]  ;;  %v4256_v6 = vpack.c.bf16 %v2945_v37, %v2941_v25  ;;  %v2236_v7 = vsel %vm2204_vm0, 1, %v8840_v30  ;;  %v2949_v23 = vld [vmem:[#allocation5 + $0xd8] sm:$0xff]  ;;  %v2948_v37 = vld [vmem:[#allocation5 + $0xd0] sm:$0xff] }
 0x31c   : > { %v7266_v39 = vadd.f32 %v4112_v10, %v6982_v14  ;;  %2182 = vperm.xlu1 %4471, %v8948_v33   ;;  %v4113_v63 = vpop.f32.mrb[6].mxu1  ;;  %vm1522_vm2 = vcmp.eq.s32.totalorder %v5455_v21, %v1489_v22  ;;  %vm1523_vm3 = vcmp.eq.s32.totalorder %v5464_v4, %v1489_v22  ;;  %v2951_v15 = vld [vmem:[#allocation5 + $0xe8] sm:$0xff]  ;;  %v2946_v10 = vld [vmem:[#allocation5 + $0xc0] sm:$0xff]  ;;  %4255 = vmatpush1.bf16.msra.mxu1 %v4254_v26  ;;  %v2953_v24 = vld [vmem:[#allocation5 + $0xf8] sm:$0xff]  ;;  %v609_v1 = vsel %vm577_vm7, 1, %v8840_v30 }
 0x31d   : > { %v1358_v16 = vadd.s32 %v7216_v43, %v1214_v60  ;;  %v1359_v58 = vadd.s32 %v1327_v18, %v1215_v13  ;;  %v4114_v46 = vpop.f32.mrb[7].mxu1  ;;  %v4228_v52 = vpack.c.bf16 %v2951_v15, %v2947_v55  ;;  %v2944_v43 = vld [vmem:[#allocation5 + $0xb0] sm:$0xff]  ;;  %v2950_v18 = vld [vmem:[#allocation5 + $0xe0] sm:$0xff]  ;;  %v1554_v47 = vsel %vm1522_vm2, 1, %v8840_v30  ;;  %4227 = vmatpush1.bf16.msra.mxu0 %v4226_v45  ;;  %v2959_v25 = vld [vmem:[#allocation5 + $0x128] sm:$0xff]  ;;  %4257 = vmatprep.subr.bf16.mxu1 %v4256_v6 }
 0x31e   : > { %v4115_v14 = vadd.f32 %v4114_v46, %v4113_v63  ;;  %v4258_v13 = vpack.c.bf16 %v2944_v43, %v2940_v27  ;;  %v1555_v9 = vsel %vm1523_vm3, 1, %v8840_v30  ;;  %v4260_v22 = vpack.c.bf16 %v2953_v24, %v2949_v23  ;;  %v2955_v46 = vld [vmem:[#allocation5 + $0x108] sm:$0xff]  ;;  %v2952_v15 = vld [vmem:[#allocation5 + $0xf0] sm:$0xff]  ;;  %v2954_v27 = vld [vmem:[#allocation5 + $0x100] sm:$0xff] }
 0x31f   : > { %v1391_v51 = vcvt.s32.f32 %v1359_v58  ;;  %v1390_v59 = vcvt.s32.f32 %v1358_v16  ;;  %4229 = vmatprep.subr.bf16.mxu0 %v4228_v52  ;;  %v4232_v55 = vpack.c.bf16 %v2959_v25, %v2955_v46  ;;  %v465_v45 = vsel %vm433_vm11, 1, %v8840_v30  ;;  %v2962_v23 = vld [vmem:[#allocation5 + $0x140] sm:$0xff]  ;;  %v2965_v46 = vld [vmem:[#allocation5 + $0x158] sm:$0xff]  ;;  %v2968_v41 = vld [vmem:[#allocation5 + $0x170] sm:$0xff] }
 0x320   : > { %v7282_v53 = vadd.f32 %v4115_v14, %v7185_v42  ;;  %4472 = vset.pattern.permute.xlu1 %v8833_v32  ;;  %v1601_v56 = vpop.permute.xlu1 %1600  ;;  %v4116_v60 = vpop.f32.mrb[8].mxu1  ;;  %v4230_v42 = vpack.c.bf16 %v2950_v18, %v2946_v10  ;;  %4259 = vmatpush1.bf16.msra.mxu1 %v4258_v13  ;;  %v4262_v43 = vpack.c.bf16 %v2952_v15, %v2948_v37  ;;  %v353_v6 = vsel %vm321_vm13, 1, %v8840_v30  ;;  %v2957_v18 = vld [vmem:[#allocation5 + $0x118] sm:$0xff]  ;;  %v2966_v24 = vld [vmem:[#allocation5 + $0x160] sm:$0xff] }
 0x321   : > { %vm1634_vm4 = vcmp.eq.s32.totalorder %v5455_v21, %v1601_v56  ;;  %vm1635_vm5 = vcmp.eq.s32.totalorder %v5464_v4, %v1601_v56  ;;  %2467 = vperm.xlu1 %4472, %v8940_v12   ;;  %v4117_v35 = vpop.f32.mrb[9].mxu1  ;;  %2896 = vmatprep.mubr.f32.mxu1 %v1391_v51  ;;  %v2237_v12 = vsel %vm2205_vm1, 1, %v8840_v30  ;;  %v2958_v51 = vld [vmem:[#allocation5 + $0x120] sm:$0xff]  ;;  %v496_v52 = vadd.s32 %v7127_v29, %v7141_v54  ;;  %v2956_v56 = vld [vmem:[#allocation5 + $0x110] sm:$0xff]  ;;  %v2969_v25 = vld [vmem:[#allocation5 + $0x178] sm:$0xff] }
 0x322   : > { %v1666_v63 = vsel %vm1634_vm4, 1, %v8840_v30  ;;  %v1667_v16 = vsel %vm1635_vm5, 1, %v8840_v30  ;;  %v7293_v58 = vadd.f32 %v4117_v35, %v4116_v60  ;;  %2897 = vmatmul.mubr.f32.gmra.mrb[22].mxu1 %v1390_v59  ;;  %v2268_v10 = vadd.s32 %v2236_v7, %v7261_v57  ;;  %4261 = vmatprep.subr.bf16.mxu1 %v4260_v22  ;;  %v2963_v7 = vld [vmem:[#allocation5 + $0x148] sm:$0xff]  ;;  %v2960_v35 = vld [vmem:[#allocation5 + $0x130] sm:$0xff] }
 0x323   : > { %v7299_v14 = vadd.s32 %v1666_v63, %v1554_v47  ;;  %v7301_v26 = vadd.s32 %v1667_v16, %v1555_v9  ;;  %v2961_v47 = vld [vmem:[#allocation5 + $0x138] sm:$0xff]  ;;  %v2269_v29 = vadd.s32 %v2237_v12, %v2125_v17  ;;  %4231 = vmatpush1.bf16.msra.mxu0 %v4230_v42  ;;  %v4234_v57 = vpack.c.bf16 %v2958_v51, %v2954_v27  ;;  %v8965_v63 = vld [vmem:[#allocation65_spill] sm:$0xff]  ;;  %v2971_v27 = vld [vmem:[#allocation5 + $0x188] sm:$0xff] }
 0x324   : > { %v4119_v59 = vpop.f32.mrb[10].mxu1  ;;  %v2381_v60 = vsel %vm2349_vm6, 1, %v8840_v30  ;;  %4233 = vmatprep.subr.bf16.mxu0 %v4232_v55  ;;  %v4264_v13 = vpack.c.bf16 %v2961_v47, %v2957_v18  ;;  %4263 = vmatpush1.bf16.msra.mxu1 %v4262_v43  ;;  %v497_v42 = vadd.s32 %v465_v45, %v353_v6  ;;  %vm720_vm8 = vcmp.eq.s32.totalorder %v5455_v21, %v8965_v63  ;;  %v2975_v51 = vld [vmem:[#allocation5 + $0x1a8] sm:$0xff]  ;;  %v2964_v45 = vld [vmem:[#allocation5 + $0x150] sm:$0xff]  ;;  %v2973_v18 = vld [vmem:[#allocation5 + $0x198] sm:$0xff] }
 0x325   : > { %4474 = vset.pattern.permute.xlu1 %v8963_v48  ;;  %v7323_v0 = vpop.permute.xlu1 %2170  ;;  %v4120_v3 = vpop.f32.mrb[11].mxu1  ;;  %v2967_v48 = vld [vmem:[#allocation5 + $0x168] sm:$0xff]  ;;  %v640_v16 = vadd.s32 %v608_v62, %v496_v52  ;;  %v2412_v22 = vadd.s32 %v2380_v2, %v2268_v10  ;;  %v2413_v12 = vadd.s32 %v2381_v60, %v2269_v29  ;;  %v4238_v55 = vpack.c.bf16 %v2966_v24, %v2962_v23  ;;  %v2970_v52 = vld [vmem:[#allocation5 + $0x180] sm:$0xff]  ;;  %v2977_v47 = vld [vmem:[#allocation5 + $0x1b8] sm:$0xff] }
 0x326   : > { %v7329_v54 = vadd.f32 %v4120_v3, %v4119_v59  ;;  %2326 = vperm.xlu1 %4474, %v8948_v33   ;;  %v4236_v9 = vpack.c.bf16 %v2967_v48, %v2963_v7  ;;  %v4266_v33 = vpack.c.bf16 %v2960_v35, %v2956_v56  ;;  %4265 = vmatprep.subr.bf16.mxu1 %v4264_v13  ;;  %v8966_v59 = vld [vmem:[#allocation95_spill] sm:$0xff]  ;;  %v752_v2 = vsel %vm720_vm8, 1, %v8840_v30  ;;  %v8967_v29 = vld [vmem:[#allocation88_spill] sm:$0xff]  ;;  %v2972_v56 = vld [vmem:[#allocation5 + $0x190] sm:$0xff] }
 0x327   : > { %4235 = vmatpush1.bf16.msra.mxu0 %v4234_v57  ;;  %v4268_v15 = vpack.c.bf16 %v2969_v25, %v2965_v46  ;;  %v4240_v17 = vpack.c.bf16 %v2975_v51, %v2971_v27  ;;  %vm864_vm12 = vcmp.eq.s32.totalorder %v5455_v21, %v8966_v59  ;;  %v4270_v6 = vpack.c.bf16 %v2968_v41, %v2964_v45  ;;  %v2974_v62 = vld [vmem:[#allocation5 + $0x1a0] sm:$0xff]  ;;  %v2979_v7 = vld [vmem:[#allocation5 + $0x1c8] sm:$0xff]  ;;  %v2976_v24 = vld [vmem:[#allocation5 + $0x1b0] sm:$0xff] }
 0x328   : > { %4237 = vmatprep.subr.bf16.mxu0 %v4236_v9  ;;  %4267 = vmatpush1.bf16.msra.mxu1 %v4266_v33  ;;  %vm721_vm11 = vcmp.eq.s32.totalorder %v5464_v4, %v8965_v63  ;;  %v641_v10 = vadd.s32 %v609_v1, %v497_v42  ;;  %vm1918_vm13 = vcmp.eq.s32.totalorder %v5455_v21, %v8967_v29  ;;  %v2983_v48 = vld [vmem:[#allocation5 + $0x1e8] sm:$0xff]  ;;  %v896_v60 = vsel %vm864_vm12, 1, %v8840_v30  ;;  %v2978_v1 = vld [vmem:[#allocation5 + $0x1c0] sm:$0xff]  ;;  %v2980_v45 = vld [vmem:[#allocation5 + $0x1d0] sm:$0xff] }
 0x329   : > { %4269 = vmatprep.subr.bf16.mxu1 %v4268_v15  ;;  %vm865_vm14 = vcmp.eq.s32.totalorder %v5464_v4, %v8966_v59  ;;  %v4272_v57 = vpack.c.bf16 %v2977_v47, %v2973_v18  ;;  %v4242_v23 = vpack.c.bf16 %v2974_v62, %v2970_v52  ;;  %v753_v33 = vsel %vm721_vm11, 1, %v8840_v30  ;;  %v2985_v15 = vld [vmem:[#allocation5 + $0x1f8] sm:$0xff] }
 0x32a   : > { %4475 = vset.pattern.permute.xlu1 %v8833_v32  ;;  %v2456_v37 = vpop.permute.xlu1 %2455  ;;  %v784_v42 = vadd.s32 %v752_v2, %v640_v16  ;;  %v4244_v46 = vpack.c.bf16 %v2983_v48, %v2979_v7  ;;  %v4274_v25 = vpack.c.bf16 %v2976_v24, %v2972_v56  ;;  %vm1919_vm15 = vcmp.eq.s32.totalorder %v5464_v4, %v8967_v29  ;;  %v2981_v16 = vld [vmem:[#allocation5 + $0x1d8] sm:$0xff] }
 0x32b   : > { %vm2492_vm9 = vcmp.eq.s32.totalorder %v5455_v21, %v2456_v37  ;;  %vm2493_vm10 = vcmp.eq.s32.totalorder %v5464_v4, %v2456_v37  ;;  %1270 = vperm.xlu1 %4475, %v7231_v38   ;;  %4239 = vmatpush1.bf16.msra.mxu0 %v4238_v55  ;;  %v2982_v37 = vld [vmem:[#allocation5 + $0x1e0] sm:$0xff]  ;;  %v785_v55 = vadd.s32 %v753_v33, %v641_v10  ;;  %v897_v63 = vsel %vm865_vm14, 1, %v8840_v30 }
 0x32c   : > { %v2524_v32 = vsel %vm2492_vm9, 1, %v8840_v30  ;;  %v2525_v43 = vsel %vm2493_vm10, 1, %v8840_v30  ;;  %4241 = vmatprep.subr.bf16.mxu0 %v4240_v17  ;;  %4271 = vmatpush1.bf16.msra.mxu1 %v4270_v6  ;;  %v928_v27 = vadd.s32 %v896_v60, %v784_v42  ;;  %vm1630_vm0 = vcmp.eq.s32.totalorder %v5455_v21, %v6914_v44  ;;  %v2984_v17 = vld [vmem:[#allocation5 + $0x1f0] sm:$0xff] }
 0x32d   : > { %v2556_v3 = vadd.s32 %v2524_v32, %v2412_v22  ;;  %v2557_v38 = vadd.s32 %v2525_v43, %v2413_v12  ;;  %v1262_v22 = vpop.permute.xlu0 %1261  ;;  %v7378_v12 = vsel %vm1918_vm13, 1, %v8840_v30  ;;  %4273 = vmatprep.subr.bf16.mxu1 %v4272_v57  ;;  %vm1631_vm1 = vcmp.eq.s32.totalorder %v5464_v4, %v6914_v44  ;;  %v8968_v43 = vld [vmem:[#allocation89_spill] sm:$0xff] }
 0x32e   : > { %v4276_v51 = vpack.c.bf16 %v2985_v15, %v2981_v16  ;;  %vm1152_vm2 = vcmp.eq.s32.totalorder %v5455_v21, %v6143_v20  ;;  %vm1153_vm3 = vcmp.eq.s32.totalorder %v5464_v4, %v6143_v20  ;;  %vm1296_vm4 = vcmp.eq.s32.totalorder %v5455_v21, %v1262_v22 }
 0x32f   : > { %v7366_v13 = vpop.permute.xlu1 %1744  ;;  %v2589_v9 = vcvt.s32.f32 %v2557_v38  ;;  %v2588_v35 = vcvt.s32.f32 %v2556_v3  ;;  %4243 = vmatpush1.bf16.msra.mxu0 %v4242_v23  ;;  %v4246_v59 = vpack.c.bf16 %v2982_v37, %v2978_v1  ;;  %v7397_v32 = vsel %vm1919_vm15, 1, %v8840_v30 }
 0x330   : > { %vm1920_vm5 = vcmp.eq.s32.totalorder %v5455_v21, %v8968_v43  ;;  %vm1921_vm6 = vcmp.eq.s32.totalorder %v5464_v4, %v8968_v43  ;;  %vm1518_vm7 = vcmp.eq.s32.totalorder %v5455_v21, %v6900_v49  ;;  %vm1519_vm8 = vcmp.eq.s32.totalorder %v5464_v4, %v6900_v49  ;;  %4245 = vmatprep.subr.bf16.mxu0 %v4244_v46 }
 0x331   : > { %2746 = vmatprep.mubr.f32.mxu0 %v2589_v9  ;;  %4275 = vmatpush1.bf16.msra.mxu1 %v4274_v25  ;;  %v4278_v62 = vpack.c.bf16 %v2984_v17, %v2980_v45  ;;  %v1662_v10 = vsel %vm1630_vm0, 1, %v8840_v30  ;;  %v1663_v3 = vsel %vm1631_vm1, 1, %v8840_v30  ;;  %vm1297_vm9 = vcmp.eq.s32.totalorder %v5464_v4, %v1262_v22 }
 0x332   : > { %2747 = vmatmul.mubr.f32.gmra.mrb[20].mxu0 %v2588_v35  ;;  %4277 = vmatprep.subr.bf16.mxu1 %v4276_v51  ;;  %v929_v18 = vadd.s32 %v897_v63, %v785_v55  ;;  %v1184_v47 = vsel %vm1152_vm2, 1, %v8840_v30  ;;  %vm1774_vm10 = vcmp.eq.s32.totalorder %v5455_v21, %v6960_v36  ;;  %vm1775_vm12 = vcmp.eq.s32.totalorder %v5464_v4, %v6960_v36 }
 0x333   : > { %v4036_v41 = vpop.f32.mrb[8].mxu0  ;;  %v1185_v44 = vsel %vm1153_vm3, 1, %v8840_v30  ;;  %v1550_v2 = vsel %vm1518_vm7, 1, %v8840_v30  ;;  %v1551_v29 = vsel %vm1519_vm8, 1, %v8840_v30  ;;  %4247 = vmatpush1.bf16.msra.mxu0 %v4246_v59  ;;  %v1328_v20 = vsel %vm1296_vm4, 1, %v8840_v30 }
 0x334   : > { %v7407_v6 = vpop.permute.xlu1 %2029  ;;  %v4037_v52 = vpop.f32.mrb[9].mxu0  ;;  %v1694_v36 = vadd.s32 %v1662_v10, %v1550_v2  ;;  %v1695_v7 = vadd.s32 %v1663_v3, %v1551_v29  ;;  %v1329_v48 = vsel %vm1297_vm9, 1, %v8840_v30  ;;  %v1806_v56 = vsel %vm1774_vm10, 1, %v8840_v30 }
 0x335   : > { %v4038_v38 = vadd.f32 %v4037_v52, %v4036_v41  ;;  %4279 = vmatpush1.bf16.msra.mxu1 %v4278_v62  ;;  %v1807_v60 = vsel %vm1775_vm12, 1, %v8840_v30  ;;  %vm1632_vm11 = vcmp.eq.s32.totalorder %v5455_v21, %v7034_v40  ;;  %vm1633_vm13 = vcmp.eq.s32.totalorder %v5464_v4, %v7034_v40 }
 0x336   : > { %vm1520_vm14 = vcmp.eq.s32.totalorder %v5455_v21, %v7020_v28  ;;  %vm1521_vm15 = vcmp.eq.s32.totalorder %v5464_v4, %v7020_v28  ;;  %vm1776_vm2 = vcmp.eq.s32.totalorder %v5455_v21, %v7121_v61  ;;  %vm1777_vm3 = vcmp.eq.s32.totalorder %v5464_v4, %v7121_v61 }
 0x337   : > { %v7439_v57 = vadd.f32 %v7293_v58, %v4038_v38  ;;  %v1664_v9 = vsel %vm1632_vm11, 1, %v8840_v30  ;;  %v1665_v35 = vsel %vm1633_vm13, 1, %v8840_v30  ;;  %v1838_v24 = vadd.s32 %v1806_v56, %v1694_v36 }
 0x338   : > { %v1839_v33 = vadd.s32 %v1807_v60, %v1695_v7  ;;  %v1552_v42 = vsel %vm1520_vm14, 1, %v8840_v30  ;;  %v1553_v22 = vsel %vm1521_vm15, 1, %v8840_v30  ;;  %v1808_v46 = vsel %vm1776_vm2, 1, %v8840_v30 }
 0x339   : > { %v974_v49 = vpop.permute.xlu1 %973  ;;  %v1809_v61 = vsel %vm1777_vm3, 1, %v8840_v30  ;;  %v1952_v55 = vsel %vm1920_vm5, 1, %v8840_v30  ;;  %v1953_v63 = vsel %vm1921_vm6, 1, %v8840_v30  ;;  %v1696_v16 = vadd.s32 %v1664_v9, %v1552_v42 }
 0x33a   : > { %vm1008_vm0 = vcmp.eq.s32.totalorder %v5455_v21, %v974_v49  ;;  %vm1009_vm1 = vcmp.eq.s32.totalorder %v5464_v4, %v974_v49  ;;  %v1697_v15 = vadd.s32 %v1665_v35, %v1553_v22  ;;  %vm2062_vm4 = vcmp.eq.s32.totalorder %v5455_v21, %v7175_v34  ;;  %v8970_v22 = vld [vmem:[#allocation22_spill] sm:$0xff] }
 0x33b   : > { %v1040_v58 = vsel %vm1008_vm0, 1, %v8840_v30  ;;  %v1041_v40 = vsel %vm1009_vm1, 1, %v8840_v30  ;;  %vm2063_vm7 = vcmp.eq.s32.totalorder %v5464_v4, %v7175_v34  ;;  %vm2352_vm8 = vcmp.eq.s32.totalorder %v5455_v21, %v6182_v5 }
 0x33c   : > { %v1072_v23 = vadd.s32 %v1040_v58, %v928_v27  ;;  %v1073_v28 = vadd.s32 %v1041_v40, %v929_v18  ;;  %v1840_v45 = vadd.s32 %v1808_v46, %v1696_v16  ;;  %v1841_v17 = vadd.s32 %v1809_v61, %v1697_v15 }
 0x33d   : > { %v1982_v41 = vadd.s32 %v7378_v12, %v1838_v24  ;;  %v1983_v59 = vadd.s32 %v7397_v32, %v1839_v33  ;;  %vm2350_vm5 = vcmp.eq.s32.totalorder %v5455_v21, %v6113_v31  ;;  %vm2351_vm6 = vcmp.eq.s32.totalorder %v5464_v4, %v6113_v31  ;;  %v8969_v24 = vld [vmem:[#allocation21_spill] sm:$0xff] }
 0x33e   : > { %v1216_v25 = vadd.s32 %v1184_v47, %v1072_v23  ;;  %v1217_v1 = vadd.s32 %v1185_v44, %v1073_v28  ;;  %v1492_v37 = vpop.permute.xlu1 %1491  ;;  %v2094_v52 = vsel %vm2062_vm4, 1, %v8840_v30  ;;  %v2095_v62 = vsel %vm2063_vm7, 1, %v8840_v30 }
 0x33f   : > { %vm1524_vm9 = vcmp.eq.s32.totalorder %v5455_v21, %v1492_v37  ;;  %vm1525_vm10 = vcmp.eq.s32.totalorder %v5464_v4, %v1492_v37  ;;  %vm2064_vm12 = vcmp.eq.s32.totalorder %v5455_v21, %v7407_v6  ;;  %vm2065_vm11 = vcmp.eq.s32.totalorder %v5464_v4, %v7407_v6 }
 0x340   : > { %v1360_v27 = vadd.s32 %v1328_v20, %v1216_v25  ;;  %v1361_v51 = vadd.s32 %v1329_v48, %v1217_v1  ;;  %vm2206_vm13 = vcmp.eq.s32.totalorder %v5455_v21, %v7323_v0  ;;  %vm2207_vm14 = vcmp.eq.s32.totalorder %v5464_v4, %v7323_v0 }
 0x341   : > { %v1556_v32 = vsel %vm1524_vm9, 1, %v8840_v30  ;;  %v1557_v10 = vsel %vm1525_vm10, 1, %v8840_v30  ;;  %v2096_v38 = vsel %vm2064_vm12, 1, %v8840_v30  ;;  %v2097_v18 = vsel %vm2065_vm11, 1, %v8840_v30 }
 0x342   : > { %v1393_v34 = vcvt.s32.f32 %v1361_v51  ;;  %v1392_v43 = vcvt.s32.f32 %v1360_v27  ;;  %v2238_v2 = vsel %vm2206_vm13, 1, %v8840_v30  ;;  %v2239_v29 = vsel %vm2207_vm14, 1, %v8840_v30  ;;  %v8971_v51 = vld [vmem:[#allocation55_spill] sm:$0xff] }
 0x343   : > { %v1604_v12 = vpop.permute.xlu1 %1603  ;;  %v1984_v36 = vadd.s32 %v1952_v55, %v1840_v45  ;;  %v1985_v7 = vadd.s32 %v1953_v63, %v1841_v17  ;;  %vm2353_vm1 = vcmp.eq.s32.totalorder %v5464_v4, %v6182_v5  ;;  %v2126_v48 = vadd.s32 %v2094_v52, %v1982_v41 }
 0x344   : > { %vm1636_vm15 = vcmp.eq.s32.totalorder %v5455_v21, %v1604_v12  ;;  %vm1637_vm0 = vcmp.eq.s32.totalorder %v5464_v4, %v1604_v12  ;;  %2901 = vmatprep.mubr.f32.mxu1 %v1393_v34  ;;  %v2127_v56 = vadd.s32 %v2095_v62, %v1983_v59  ;;  %vm322_vm4 = vcmp.eq.s32.totalorder %v5455_v21, %v8969_v24 }
 0x345   : > { %v1668_v3 = vsel %vm1636_vm15, 1, %v8840_v30  ;;  %v1669_v6 = vsel %vm1637_vm0, 1, %v8840_v30  ;;  %2902 = vmatmul.mubr.f32.gmra.mrb[24].mxu1 %v1392_v43  ;;  %v2128_v58 = vadd.s32 %v2096_v38, %v1984_v36  ;;  %v2129_v40 = vadd.s32 %v2097_v18, %v1985_v7  ;;  %v8972_v43 = vld [vmem:[#allocation79_spill] sm:$0xff] }
 0x346   : > { %v7509_v47 = vadd.s32 %v1668_v3, %v1556_v32  ;;  %v7511_v0 = vadd.s32 %v1669_v6, %v1557_v10  ;;  %v4122_v44 = vpop.f32.mrb[12].mxu1  ;;  %v2270_v9 = vadd.s32 %v2238_v2, %v2126_v48  ;;  %v2271_v35 = vadd.s32 %v2239_v29, %v2127_v56  ;;  %v8973_v56 = vld [vmem:[#allocation76_spill] sm:$0xff] }
 0x347   : > { %v4123_v20 = vpop.f32.mrb[13].mxu1  ;;  %vm323_vm7 = vcmp.eq.s32.totalorder %v5464_v4, %v8969_v24  ;;  %vm434_vm9 = vcmp.eq.s32.totalorder %v5455_v21, %v8970_v22  ;;  %vm435_vm10 = vcmp.eq.s32.totalorder %v5464_v4, %v8970_v22  ;;  %v2384_v46 = vsel %vm2352_vm8, 1, %v8840_v30  ;;  %v8974_v24 = vld [vmem:[#allocation29_spill] sm:$0xff] }
 0x348   : > { %v7517_v60 = vadd.f32 %v4123_v20, %v4122_v44  ;;  %v2174_v49 = vpop.permute.xlu1 %2173  ;;  %v2385_v61 = vsel %vm2353_vm1, 1, %v8840_v30  ;;  %v2382_v25 = vsel %vm2350_vm5, 1, %v8840_v30  ;;  %v2383_v1 = vsel %vm2351_vm6, 1, %v8840_v30 }
 0x349   : > { %vm2208_vm2 = vcmp.eq.s32.totalorder %v5455_v21, %v2174_v49  ;;  %vm2209_vm3 = vcmp.eq.s32.totalorder %v5464_v4, %v2174_v49  ;;  %v2414_v16 = vadd.s32 %v2382_v25, %v2270_v9  ;;  %v2415_v15 = vadd.s32 %v2383_v1, %v2271_v35 }
 0x34a   : > { %v2240_v23 = vsel %vm2208_vm2, 1, %v8840_v30  ;;  %v2241_v28 = vsel %vm2209_vm3, 1, %v8840_v30  ;;  %vm578_vm5 = vcmp.eq.s32.totalorder %v5455_v21, %v8971_v51  ;;  %vm579_vm6 = vcmp.eq.s32.totalorder %v5464_v4, %v8971_v51 }
 0x34b   : > { %v2272_v33 = vadd.s32 %v2240_v23, %v2128_v58  ;;  %v2273_v42 = vadd.s32 %v2241_v28, %v2129_v40  ;;  %v354_v17 = vsel %vm322_vm4, 1, %v8840_v30  ;;  %v355_v41 = vsel %vm323_vm7, 1, %v8840_v30 }
 0x34c   : > { %v466_v59 = vsel %vm434_vm9, 1, %v8840_v30  ;;  %v467_v34 = vsel %vm435_vm10, 1, %v8840_v30  ;;  %vm722_vm11 = vcmp.eq.s32.totalorder %v5455_v21, %v8972_v43  ;;  %vm723_vm13 = vcmp.eq.s32.totalorder %v5464_v4, %v8972_v43 }
 0x34d   : > { %v2459_v37 = vpop.permute.xlu1 %2458  ;;  %v7547_v55 = vadd.s32 %v2384_v46, %v2272_v33  ;;  %v7549_v63 = vadd.s32 %v2385_v61, %v2273_v42  ;;  %v610_v32 = vsel %vm578_vm5, 1, %v8840_v30  ;;  %v611_v10 = vsel %vm579_vm6, 1, %v8840_v30 }
 0x34e   : > { %vm2494_vm8 = vcmp.eq.s32.totalorder %v5455_v21, %v2459_v37  ;;  %vm2495_vm12 = vcmp.eq.s32.totalorder %v5464_v4, %v2459_v37  ;;  %v498_v3 = vadd.s32 %v466_v59, %v354_v17  ;;  %v499_v6 = vadd.s32 %v467_v34, %v355_v41  ;;  %v8975_v59 = vld [vmem:[#allocation90_spill] sm:$0xff] }
 0x34f   : > { %v2526_v5 = vsel %vm2494_vm8, 1, %v8840_v30  ;;  %v2527_v27 = vsel %vm2495_vm12, 1, %v8840_v30  ;;  %v754_v44 = vsel %vm722_vm11, 1, %v8840_v30  ;;  %v755_v2 = vsel %vm723_vm13, 1, %v8840_v30 }
 0x350   : > { %v2558_v31 = vadd.s32 %v2526_v5, %v2414_v16  ;;  %v2559_v45 = vadd.s32 %v2527_v27, %v2415_v15  ;;  %v642_v7 = vadd.s32 %v610_v32, %v498_v3  ;;  %v643_v20 = vadd.s32 %v611_v10, %v499_v6 }
 0x351   : > { %vm866_vm0 = vcmp.eq.s32.totalorder %v5455_v21, %v8973_v56  ;;  %vm867_vm1 = vcmp.eq.s32.totalorder %v5464_v4, %v8973_v56  ;;  %vm1154_vm2 = vcmp.eq.s32.totalorder %v5455_v21, %v8974_v24  ;;  %vm1155_vm3 = vcmp.eq.s32.totalorder %v5464_v4, %v8974_v24 }
 0x352   : > { %v1748_v52 = vpop.permute.xlu1 %1747  ;;  %v2591_v62 = vcvt.s32.f32 %v2559_v45  ;;  %v2590_v12 = vcvt.s32.f32 %v2558_v31  ;;  %v786_v40 = vadd.s32 %v754_v44, %v642_v7  ;;  %v787_v9 = vadd.s32 %v755_v2, %v643_v20 }
 0x353   : > { %vm1780_vm14 = vcmp.eq.s32.totalorder %v5455_v21, %v1748_v52  ;;  %vm1781_vm15 = vcmp.eq.s32.totalorder %v5464_v4, %v1748_v52  ;;  %v898_v23 = vsel %vm866_vm0, 1, %v8840_v30  ;;  %v899_v28 = vsel %vm867_vm1, 1, %v8840_v30 }
 0x354   : > { %v1812_v38 = vsel %vm1780_vm14, 1, %v8840_v30  ;;  %v1813_v18 = vsel %vm1781_vm15, 1, %v8840_v30  ;;  %2751 = vmatprep.mubr.f32.mxu0 %v2591_v62  ;;  %v930_v42 = vadd.s32 %v898_v23, %v786_v40  ;;  %v931_v22 = vadd.s32 %v899_v28, %v787_v9 }
 0x355   : > { %v7588_v29 = vadd.s32 %v1812_v38, %v7509_v47  ;;  %v7591_v36 = vadd.s32 %v1813_v18, %v7511_v0  ;;  %2752 = vmatmul.mubr.f32.gmra.mrb[22].mxu0 %v2590_v12  ;;  %v1265_v0 = vpop.permute.xlu0 %1264  ;;  %v1186_v61 = vsel %vm1154_vm2, 1, %v8840_v30  ;;  %v1187_v25 = vsel %vm1155_vm3, 1, %v8840_v30 }
 0x356   : > { %v4039_v48 = vpop.f32.mrb[10].mxu0  ;;  %vm1298_vm9 = vcmp.eq.s32.totalorder %v5455_v21, %v1265_v0  ;;  %vm1299_vm10 = vcmp.eq.s32.totalorder %v5464_v4, %v1265_v0  ;;  %vm1778_vm8 = vcmp.eq.s32.totalorder %v5455_v21, %v7366_v13  ;;  %vm1779_vm12 = vcmp.eq.s32.totalorder %v5464_v4, %v7366_v13 }
 0x357   : > { %v2033_v49 = vpop.permute.xlu1 %2032  ;;  %v4040_v58 = vpop.f32.mrb[11].mxu0  ;;  %v1330_v16 = vsel %vm1298_vm9, 1, %v8840_v30  ;;  %v1331_v15 = vsel %vm1299_vm10, 1, %v8840_v30  ;;  %v1810_v31 = vsel %vm1778_vm8, 1, %v8840_v30  ;;  %v1811_v45 = vsel %vm1779_vm12, 1, %v8840_v30 }
 0x358   : > { %v4041_v35 = vadd.f32 %v4040_v58, %v4039_v48  ;;  %vm1922_vm5 = vcmp.eq.s32.totalorder %v5455_v21, %v8975_v59  ;;  %vm1923_vm6 = vcmp.eq.s32.totalorder %v5464_v4, %v8975_v59  ;;  %v1842_v43 = vadd.s32 %v1810_v31, %v7299_v14  ;;  %v8980_v59 = vld [vmem:[#allocation24_spill] sm:$0xff] }
 0x359   : > { %v1843_v52 = vadd.s32 %v1811_v45, %v7301_v26  ;;  %vm2066_vm11 = vcmp.eq.s32.totalorder %v5455_v21, %v2033_v49  ;;  %vm2067_vm13 = vcmp.eq.s32.totalorder %v5464_v4, %v2033_v49  ;;  %v1954_v12 = vsel %vm1922_vm5, 1, %v8840_v30  ;;  %v2465_v20 = vpop.permute.xlu0 %2464  ;;  %v8977_v45 = vld [vmem:[#allocation39_spill] sm:$0xff] }
 0x35a   : > { %v7598_v47 = vadd.f32 %v7329_v54, %v4041_v35  ;;  %v1955_v32 = vsel %vm1923_vm6, 1, %v8840_v30  ;;  %v2098_v10 = vsel %vm2066_vm11, 1, %v8840_v30  ;;  %v2099_v3 = vsel %vm2067_vm13, 1, %v8840_v30 }
 0x35b   : > { %v1986_v14 = vadd.s32 %v1954_v12, %v1842_v43  ;;  %v1987_v38 = vadd.s32 %v1955_v32, %v1843_v52  ;;  %vm2354_vm14 = vcmp.eq.s32.totalorder %v5455_v21, %v6231_v8  ;;  %vm2355_vm15 = vcmp.eq.s32.totalorder %v5464_v4, %v6231_v8 }
 0x35c   : > { %v977_v33 = vpop.permute.xlu1 %976  ;;  %vm2499_vm2 = vcmp.eq.s32.totalorder %v5464_v4, %v2465_v20  ;;  %v2386_v8 = vsel %vm2354_vm14, 1, %v8840_v30  ;;  %v2387_v40 = vsel %vm2355_vm15, 1, %v8840_v30  ;;  %vm2498_vm3 = vcmp.eq.s32.totalorder %v5455_v21, %v2465_v20 }
 0x35d   : > { %vm1010_vm4 = vcmp.eq.s32.totalorder %v5455_v21, %v977_v33  ;;  %vm1011_vm7 = vcmp.eq.s32.totalorder %v5464_v4, %v977_v33  ;;  %v2130_v2 = vadd.s32 %v2098_v10, %v1986_v14  ;;  %v2131_v7 = vadd.s32 %v2099_v3, %v1987_v38 }
 0x35e   : > { %v1042_v54 = vsel %vm1010_vm4, 1, %v8840_v30  ;;  %v1043_v46 = vsel %vm1011_vm7, 1, %v8840_v30  ;;  %v2531_v9 = vsel %vm2499_vm2, 1, %v8840_v30  ;;  %v2530_v33 = vsel %vm2498_vm3, 1, %v8840_v30 }
 0x35f   : > { %v1074_v1 = vadd.s32 %v1042_v54, %v930_v42  ;;  %v1075_v37 = vadd.s32 %v1043_v46, %v931_v22  ;;  %vm324_vm10 = vcmp.eq.s32.totalorder %v5455_v21, %v8977_v45  ;;  %vm325_vm12 = vcmp.eq.s32.totalorder %v5464_v4, %v8977_v45  ;;  %v1268_v45 = vpop.permute.xlu0 %1267 }
 0x360   : > { %vm438_vm13 = vcmp.eq.s32.totalorder %v5455_v21, %v8980_v59  ;;  %vm439_vm15 = vcmp.eq.s32.totalorder %v5464_v4, %v8980_v59  ;;  %v357_v52 = vsel %vm325_vm12, 1, %v8840_v30 }
 0x361   : > { %v1218_v5 = vadd.s32 %v1186_v61, %v1074_v1  ;;  %v1219_v27 = vadd.s32 %v1187_v25, %v1075_v37  ;;  %v7620_v51 = vpop.permute.xlu1 %1494  ;;  %v470_v3 = vsel %vm438_vm13, 1, %v8840_v30  ;;  %vm1300_vm13 = vcmp.eq.s32.totalorder %v5455_v21, %v1268_v45 }
 0x363   : > { %v1362_v17 = vadd.s32 %v1330_v16, %v1218_v5  ;;  %v1363_v41 = vadd.s32 %v1331_v15, %v1219_v27 }
 0x365   : > { %v1395_v13 = vcvt.s32.f32 %v1363_v41  ;;  %v1394_v34 = vcvt.s32.f32 %v1362_v17  ;;  %v8978_v41 = vld [vmem:[#allocation23_spill] sm:$0xff] }
 0x366   : > { %v7632_v62 = vpop.permute.xlu1 %1606  ;;  %vm326_vm5 = vcmp.eq.s32.totalorder %v5455_v21, %v8978_v41  ;;  %vm327_vm6 = vcmp.eq.s32.totalorder %v5464_v4, %v8978_v41  ;;  %v8986_v41 = vld [vmem:[#allocation91_spill] sm:$0xff] }
 0x367   : > { %2906 = vmatprep.mubr.f32.mxu1 %v1395_v13  ;;  %v358_v12 = vsel %vm326_vm5, 1, %v8840_v30  ;;  %v359_v10 = vsel %vm327_vm6, 1, %v8840_v30 }
 0x368   : > { %2907 = vmatmul.mubr.f32.gmra.mrb[26].mxu1 %v1394_v34  ;;  %v356_v34 = vsel %vm324_vm10, 1, %v8840_v30 }
 0x369   : > { %v4125_v6 = vpop.f32.mrb[14].mxu1 }
 0x36a   : > { %v4126_v26 = vpop.f32.mrb[15].mxu1 }
 0x36b   : > { %v7642_v18 = vadd.f32 %v4126_v26, %v4125_v6  ;;  %v2177_v44 = vpop.permute.xlu1 %2176  ;;  %v471_v26 = vsel %vm439_vm15, 1, %v8840_v30 }
 0x36c   : > { %vm2210_vm0 = vcmp.eq.s32.totalorder %v5455_v21, %v2177_v44  ;;  %vm2211_vm1 = vcmp.eq.s32.totalorder %v5464_v4, %v2177_v44 }
 0x36d   : > { %v2242_v48 = vsel %vm2210_vm0, 1, %v8840_v30  ;;  %v2243_v56 = vsel %vm2211_vm1, 1, %v8840_v30 }
 0x36e   : > { %v2274_v49 = vadd.s32 %v2242_v48, %v2130_v2  ;;  %v2275_v58 = vadd.s32 %v2243_v56, %v2131_v7  ;;  %v8981_v2 = vld [vmem:[#allocation56_spill] sm:$0xff] }
 0x36f   : > { %vm582_vm0 = vcmp.eq.s32.totalorder %v5455_v21, %v8981_v2  ;;  %vm583_vm1 = vcmp.eq.s32.totalorder %v5464_v4, %v8981_v2  ;;  %v8982_v7 = vld [vmem:[#allocation68_spill] sm:$0xff] }
 0x370   : > { %v2418_v35 = vadd.s32 %v2386_v8, %v2274_v49  ;;  %v2419_v0 = vadd.s32 %v2387_v40, %v2275_v58  ;;  %v2462_v23 = vpop.permute.xlu1 %2461  ;;  %vm724_vm2 = vcmp.eq.s32.totalorder %v5455_v21, %v8982_v7  ;;  %vm725_vm3 = vcmp.eq.s32.totalorder %v5464_v4, %v8982_v7  ;;  %v8983_v56 = vld [vmem:[#allocation80_spill] sm:$0xff] }
 0x371   : > { %vm2496_vm4 = vcmp.eq.s32.totalorder %v5455_v21, %v2462_v23  ;;  %vm2497_vm7 = vcmp.eq.s32.totalorder %v5464_v4, %v2462_v23  ;;  %v8984_v49 = vld [vmem:[#allocation96_spill] sm:$0xff]  ;;  %v502_v58 = vadd.s32 %v470_v3, %v358_v12  ;;  %v503_v8 = vadd.s32 %v471_v26, %v359_v10 }
 0x372   : > { %v2528_v28 = vsel %vm2496_vm4, 1, %v8840_v30  ;;  %v2529_v24 = vsel %vm2497_vm7, 1, %v8840_v30  ;;  %v2563_v54 = vadd.s32 %v2531_v9, %v2419_v0  ;;  %v2562_v1 = vadd.s32 %v2530_v33, %v2418_v35 }
 0x373   : > { %v2560_v42 = vadd.s32 %v2528_v28, %v7547_v55  ;;  %v2561_v22 = vadd.s32 %v2529_v24, %v7549_v63  ;;  %v8976_v63 = vld [vmem:[#allocation38_spill] sm:$0xff]  ;;  %vm726_vm4 = vcmp.eq.s32.totalorder %v5455_v21, %v8983_v56  ;;  %vm868_vm7 = vcmp.eq.s32.totalorder %v5455_v21, %v8984_v49 }
 0x374   : > { %v2595_v37 = vcvt.s32.f32 %v2563_v54  ;;  %v2594_v27 = vcvt.s32.f32 %v2562_v1  ;;  %vm436_vm9 = vcmp.eq.s32.totalorder %v5455_v21, %v8976_v63  ;;  %vm437_vm8 = vcmp.eq.s32.totalorder %v5464_v4, %v8976_v63 }
 0x375   : > { %v7660_v46 = vpop.permute.xlu1 %1750  ;;  %v2593_v61 = vcvt.s32.f32 %v2561_v22  ;;  %v2592_v25 = vcvt.s32.f32 %v2560_v42  ;;  %v468_v13 = vsel %vm436_vm9, 1, %v8840_v30  ;;  %v469_v43 = vsel %vm437_vm8, 1, %v8840_v30 }
 0x376   : > { %v500_v6 = vadd.s32 %v468_v13, %v356_v34  ;;  %v501_v44 = vadd.s32 %v469_v43, %v357_v52  ;;  %vm869_vm9 = vcmp.eq.s32.totalorder %v5464_v4, %v8984_v49  ;;  %v614_v40 = vsel %vm582_vm0, 1, %v8840_v30  ;;  %v8987_v49 = vld [vmem:[#allocation97_spill] sm:$0xff] }
 0x377   : > { %2756 = vmatprep.mubr.f32.mxu0 %v2593_v61  ;;  %v615_v9 = vsel %vm583_vm1, 1, %v8840_v30  ;;  %v756_v35 = vsel %vm724_vm2, 1, %v8840_v30  ;;  %v757_v0 = vsel %vm725_vm3, 1, %v8840_v30  ;;  %vm727_vm12 = vcmp.eq.s32.totalorder %v5464_v4, %v8983_v56 }
 0x378   : > { %2757 = vmatmul.mubr.f32.gmra.mrb[24].mxu0 %v2592_v25  ;;  %v758_v28 = vsel %vm726_vm4, 1, %v8840_v30  ;;  %v900_v24 = vsel %vm868_vm7, 1, %v8840_v30  ;;  %v901_v33 = vsel %vm869_vm9, 1, %v8840_v30  ;;  %v646_v42 = vadd.s32 %v614_v40, %v502_v58  ;;  %v8985_v25 = vld [vmem:[#allocation78_spill] sm:$0xff] }
 0x379   : > { %v4042_v16 = vpop.f32.mrb[12].mxu0  ;;  %2761 = vmatprep.mubr.f32.mxu0 %v2595_v37  ;;  %v647_v22 = vadd.s32 %v615_v9, %v503_v8  ;;  %vm870_vm5 = vcmp.eq.s32.totalorder %v5455_v21, %v8985_v25  ;;  %vm871_vm6 = vcmp.eq.s32.totalorder %v5464_v4, %v8985_v25  ;;  %vm1925_vm1 = vcmp.eq.s32.totalorder %v5464_v4, %v8986_v41 }
 0x37a   : > { %v7662_v15 = vpop.permute.xlu1 %2035  ;;  %v4043_v5 = vpop.f32.mrb[13].mxu0  ;;  %v902_v43 = vsel %vm870_vm5, 1, %v8840_v30  ;;  %v1332_v26 = vsel %vm1300_vm13, 1, %v8840_v30  ;;  %vm1526_vm2 = vcmp.eq.s32.totalorder %v5455_v21, %v7620_v51  ;;  %vm2070_vm3 = vcmp.eq.s32.totalorder %v5455_v21, %v8987_v49 }
 0x37b   : > { %v4044_v31 = vadd.f32 %v4043_v5, %v4042_v16  ;;  %v759_v5 = vsel %vm727_vm12, 1, %v8840_v30  ;;  %vm2071_vm4 = vcmp.eq.s32.totalorder %v5464_v4, %v8987_v49  ;;  %vm1527_vm7 = vcmp.eq.s32.totalorder %v5464_v4, %v7620_v51 }
 0x37c   : > { %2762 = vmatmul.mubr.f32.gmra.mrb[26].mxu0 %v2594_v27  ;;  %v790_v27 = vadd.s32 %v758_v28, %v646_v42  ;;  %v791_v10 = vadd.s32 %v759_v5, %v647_v22  ;;  %vm1638_vm9 = vcmp.eq.s32.totalorder %v5455_v21, %v7632_v62  ;;  %v1558_v40 = vsel %vm1526_vm2, 1, %v8840_v30 }
 0x37d   : > { %v7665_v55 = vadd.f32 %v7517_v60, %v4044_v31  ;;  %v8979_v60 = vld [vmem:[#allocation69_spill] sm:$0xff]  ;;  %vm2069_vm12 = vcmp.eq.s32.totalorder %v5464_v4, %v7662_v15  ;;  %v1559_v51 = vsel %vm1527_vm7, 1, %v8840_v30  ;;  %vm1782_vm5 = vcmp.eq.s32.totalorder %v5455_v21, %v7660_v46 }
 0x37e   : > { %vm580_vm11 = vcmp.eq.s32.totalorder %v5455_v21, %v8979_v60  ;;  %vm581_vm14 = vcmp.eq.s32.totalorder %v5464_v4, %v8979_v60  ;;  %v7763_v7 = vadd.s32 %v902_v43, %v790_v27 }
 0x37f   : > { %v980_v17 = vpop.permute.xlu1 %979  ;;  %v612_v32 = vsel %vm580_vm11, 1, %v8840_v30  ;;  %v613_v14 = vsel %vm581_vm14, 1, %v8840_v30  ;;  %vm1924_vm11 = vcmp.eq.s32.totalorder %v5455_v21, %v8986_v41  ;;  %vm1301_vm14 = vcmp.eq.s32.totalorder %v5464_v4, %v1268_v45 }
 0x380   : > { %v644_v20 = vadd.s32 %v612_v32, %v500_v6  ;;  %v645_v48 = vadd.s32 %v613_v14, %v501_v44  ;;  %vm1012_vm10 = vcmp.eq.s32.totalorder %v5455_v21, %v980_v17  ;;  %vm1013_vm8 = vcmp.eq.s32.totalorder %v5464_v4, %v980_v17 }
 0x381   : > { %v1044_v1 = vsel %vm1012_vm10, 1, %v8840_v30  ;;  %v1045_v37 = vsel %vm1013_vm8, 1, %v8840_v30  ;;  %v903_v32 = vsel %vm871_vm6, 1, %v8840_v30  ;;  %v1956_v14 = vsel %vm1924_vm11, 1, %v8840_v30 }
 0x382   : > { %v788_v54 = vadd.s32 %v756_v35, %v644_v20  ;;  %v789_v61 = vadd.s32 %v757_v0, %v645_v48  ;;  %v1333_v44 = vsel %vm1301_vm14, 1, %v8840_v30  ;;  %v1957_v20 = vsel %vm1925_vm1, 1, %v8840_v30 }
 0x383   : > { %vm1639_vm10 = vcmp.eq.s32.totalorder %v5464_v4, %v7632_v62  ;;  %vm2068_vm8 = vcmp.eq.s32.totalorder %v5455_v21, %v7662_v15  ;;  %v1988_v9 = vadd.s32 %v1956_v14, %v7588_v29  ;;  %v1989_v35 = vadd.s32 %v1957_v20, %v7591_v36 }
 0x384   : > { %v7696_v38 = vpop.permute.xlu1 %1894  ;;  %v932_v31 = vadd.s32 %v900_v24, %v788_v54  ;;  %v933_v63 = vadd.s32 %v901_v33, %v789_v61  ;;  %vm1783_vm6 = vcmp.eq.s32.totalorder %v5464_v4, %v7660_v46  ;;  %v1670_v29 = vsel %vm1638_vm9, 1, %v8840_v30 }
 0x385   : > { %v1671_v36 = vsel %vm1639_vm10, 1, %v8840_v30  ;;  %v2100_v0 = vsel %vm2068_vm8, 1, %v8840_v30  ;;  %v2101_v15 = vsel %vm2069_vm12, 1, %v8840_v30  ;;  %vm1926_vm14 = vcmp.eq.s32.totalorder %v5455_v21, %v7696_v38 }
 0x386   : > { %v1076_v13 = vadd.s32 %v1044_v1, %v932_v31  ;;  %v1077_v34 = vadd.s32 %v1045_v37, %v933_v63  ;;  %v1814_v46 = vsel %vm1782_vm5, 1, %v8840_v30  ;;  %v1815_v28 = vsel %vm1783_vm6, 1, %v8840_v30 }
 0x387   : > { %v1703_v33 = vadd.s32 %v1671_v36, %v1559_v51  ;;  %v2132_v42 = vadd.s32 %v2100_v0, %v1988_v9  ;;  %v2133_v61 = vadd.s32 %v2101_v15, %v1989_v35  ;;  %v1958_v25 = vsel %vm1926_vm14, 1, %v8840_v30 }
 0x388   : > { %v2102_v45 = vsel %vm2070_vm3, 1, %v8840_v30  ;;  %v935_v41 = vadd.s32 %v903_v32, %v791_v10  ;;  %vm1158_vm8 = vcmp.eq.s32.totalorder %v5455_v21, %v6258_v19  ;;  %vm1159_vm12 = vcmp.eq.s32.totalorder %v5464_v4, %v6258_v19  ;;  %v2471_v32 = vpop.permute.xlu0 %2470 }
 0x389   : > { %v7719_v23 = vpop.permute.xlu1 %2179  ;;  %v1847_v5 = vadd.s32 %v1815_v28, %v1703_v33  ;;  %vm2502_vm5 = vcmp.eq.s32.totalorder %v5455_v21, %v2471_v32  ;;  %vm2503_vm6 = vcmp.eq.s32.totalorder %v5464_v4, %v2471_v32 }
 0x38a   : > { %vm2212_vm11 = vcmp.eq.s32.totalorder %v5455_v21, %v7719_v23  ;;  %vm2213_vm13 = vcmp.eq.s32.totalorder %v5464_v4, %v7719_v23  ;;  %v1702_v23 = vadd.s32 %v1670_v29, %v1558_v40  ;;  %v2535_v28 = vsel %vm2503_vm6, 1, %v8840_v30 }
 0x38b   : > { %v2244_v24 = vsel %vm2212_vm11, 1, %v8840_v30  ;;  %v2245_v22 = vsel %vm2213_vm13, 1, %v8840_v30 }
 0x38c   : > { %v4128_v16 = vpop.f32.mrb[16].mxu1  ;;  %v2276_v27 = vadd.s32 %v2244_v24, %v2132_v42  ;;  %v1191_v24 = vsel %vm1159_vm12, 1, %v8840_v30 }
 0x38d   : > { %v4129_v17 = vpop.f32.mrb[17].mxu1 }
 0x38e   : > { %v7737_v60 = vadd.f32 %v4129_v17, %v4128_v16  ;;  %v1124_v59 = vpop.permute.xlu1 %1123  ;;  %v1846_v16 = vadd.s32 %v1814_v46, %v1702_v23  ;;  %v2277_v17 = vadd.s32 %v2245_v22, %v2133_v61  ;;  %v2534_v46 = vsel %vm2502_vm5, 1, %v8840_v30 }
 0x38f   : > { %vm1156_vm15 = vcmp.eq.s32.totalorder %v5455_v21, %v1124_v59  ;;  %vm1157_vm0 = vcmp.eq.s32.totalorder %v5464_v4, %v1124_v59 }
 0x390   : > { %v1188_v52 = vsel %vm1156_vm15, 1, %v8840_v30  ;;  %v1189_v12 = vsel %vm1157_vm0, 1, %v8840_v30  ;;  %vm1927_vm15 = vcmp.eq.s32.totalorder %v5464_v4, %v7696_v38 }
 0x391   : > { %v1220_v3 = vadd.s32 %v1188_v52, %v1076_v13  ;;  %v1221_v6 = vadd.s32 %v1189_v12, %v1077_v34  ;;  %v1959_v38 = vsel %vm1927_vm15, 1, %v8840_v30  ;;  %v2103_v13 = vsel %vm2071_vm4, 1, %v8840_v30 }
 0x392   : > { %v2324_v2 = vpop.permute.xlu1 %2323  ;;  %v1990_v34 = vadd.s32 %v1958_v25, %v1846_v16  ;;  %v1991_v43 = vadd.s32 %v1959_v38, %v1847_v5 }
 0x393   : > { %v1365_v48 = vadd.s32 %v1333_v44, %v1221_v6  ;;  %v1364_v56 = vadd.s32 %v1332_v26, %v1220_v3  ;;  %vm2356_vm0 = vcmp.eq.s32.totalorder %v5455_v21, %v2324_v2  ;;  %vm2357_vm1 = vcmp.eq.s32.totalorder %v5464_v4, %v2324_v2 }
 0x394   : > { %v2388_v1 = vsel %vm2356_vm0, 1, %v8840_v30  ;;  %v2389_v31 = vsel %vm2357_vm1, 1, %v8840_v30  ;;  %v2135_v49 = vadd.s32 %v2103_v13, %v1991_v43 }
 0x395   : > { %v1397_v58 = vcvt.s32.f32 %v1365_v48  ;;  %v1396_v8 = vcvt.s32.f32 %v1364_v56  ;;  %v2420_v52 = vadd.s32 %v2388_v1, %v2276_v27  ;;  %v2421_v12 = vadd.s32 %v2389_v31, %v2277_v17 }
 0x396   : > { %v2134_v56 = vadd.s32 %v2102_v45, %v1990_v34 }
 0x397   : > { %v983_v62 = vpop.permute.xlu1 %982  ;;  %2911 = vmatprep.mubr.f32.mxu1 %v1397_v58 }
 0x398   : > { %2912 = vmatmul.mubr.f32.gmra.mrb[28].mxu1 %v1396_v8  ;;  %vm1014_vm3 = vcmp.eq.s32.totalorder %v5455_v21, %v983_v62  ;;  %vm1015_vm9 = vcmp.eq.s32.totalorder %v5464_v4, %v983_v62 }
 0x399   : > { %v1046_v20 = vsel %vm1014_vm3, 1, %v8840_v30  ;;  %v1047_v48 = vsel %vm1015_vm9, 1, %v8840_v30 }
 0x39a   : > { %v1078_v51 = vadd.s32 %v1046_v20, %v7763_v7  ;;  %v1079_v62 = vadd.s32 %v1047_v48, %v935_v41  ;;  %v1190_v7 = vsel %vm1158_vm8, 1, %v8840_v30 }
 0x39b   : > { %v2183_v54 = vpop.permute.xlu1 %2182 }
 0x39c   : > { %v4045_v37 = vpop.f32.mrb[14].mxu0  ;;  %vm2214_vm2 = vcmp.eq.s32.totalorder %v5455_v21, %v2183_v54  ;;  %vm2215_vm7 = vcmp.eq.s32.totalorder %v5464_v4, %v2183_v54  ;;  %v1222_v22 = vadd.s32 %v1190_v7, %v1078_v51  ;;  %v1223_v54 = vadd.s32 %v1191_v24, %v1079_v62  ;;  %v2986_v24 = vld [vmem:[%s8578_s3] sm:$0xf] }
 0x39d   : > { %v4046_v63 = vpop.f32.mrb[15].mxu0  ;;  %v2246_v14 = vsel %vm2214_vm2, 1, %v8840_v30  ;;  %v2247_v26 = vsel %vm2215_vm7, 1, %v8840_v30 }
 0x39e   : > { %v4047_v59 = vadd.f32 %v4046_v63, %v4045_v37  ;;  %v2278_v9 = vadd.s32 %v2246_v14, %v2134_v56  ;;  %v2279_v35 = vadd.s32 %v2247_v26, %v2135_v49  ;;  %v4797_v63 = vmov 0.0  }
 0x3a0   : > { %v7823_v3 = vadd.f32 %v7642_v18, %v4047_v59  ;;  %v2468_v6 = vpop.permute.xlu1 %2467 }
 0x3a1   : > { %vm2500_vm10 = vcmp.eq.s32.totalorder %v5455_v21, %v2468_v6  ;;  %vm2501_vm4 = vcmp.eq.s32.totalorder %v5464_v4, %v2468_v6 }
 0x3a2   : > { %v2532_v10 = vsel %vm2500_vm10, 1, %v8840_v30  ;;  %v2533_v18 = vsel %vm2501_vm4, 1, %v8840_v30 }
 0x3a3   : > { %v2564_v44 = vadd.s32 %v2532_v10, %v2420_v52  ;;  %v2565_v2 = vadd.s32 %v2533_v18, %v2421_v12 }
 0x3a5   : > { %v2327_v58 = vpop.permute.xlu1 %2326  ;;  %v2597_v8 = vcvt.s32.f32 %v2565_v2  ;;  %v2596_v40 = vcvt.s32.f32 %v2564_v44 }
 0x3a6   : > { %vm2358_vm11 = vcmp.eq.s32.totalorder %v5455_v21, %v2327_v58  ;;  %vm2359_vm13 = vcmp.eq.s32.totalorder %v5464_v4, %v2327_v58 }
 0x3a7   : > { %v2390_v29 = vsel %vm2358_vm11, 1, %v8840_v30  ;;  %v2391_v36 = vsel %vm2359_vm13, 1, %v8840_v30  ;;  %2766 = vmatprep.mubr.f32.mxu0 %v2597_v8 }
 0x3a8   : > { %v2422_v0 = vadd.s32 %v2390_v29, %v2278_v9  ;;  %v2423_v15 = vadd.s32 %v2391_v36, %v2279_v35  ;;  %2767 = vmatmul.mubr.f32.gmra.mrb[28].mxu0 %v2596_v40  ;;  %v8988_v36 = vlaneseq }
 0x3aa   : > { %v1271_v23 = vpop.permute.xlu1 %1270  ;;  %v2567_v33 = vadd.s32 %v2535_v28, %v2423_v15  ;;  %v2566_v42 = vadd.s32 %v2534_v46, %v2422_v0  ;;  %v2989_v0 = vshrl.u32 %v8988_v36, 7 }
 0x3ab   : > { %vm1302_vm14 = vcmp.eq.s32.totalorder %v5455_v21, %v1271_v23  ;;  %vm1303_vm15 = vcmp.eq.s32.totalorder %v5464_v4, %v1271_v23 }
 0x3ac   : > { %v1334_v61 = vsel %vm1302_vm14, 1, %v8840_v30  ;;  %v1335_v25 = vsel %vm1303_vm15, 1, %v8840_v30  ;;  %v2599_v38 = vcvt.s32.f32 %v2567_v33  ;;  %v2598_v1 = vcvt.s32.f32 %v2566_v42 }
 0x3ad   : > { %v1366_v37 = vadd.s32 %v1334_v61, %v1222_v22  ;;  %v1367_v16 = vadd.s32 %v1335_v25, %v1223_v54  ;;  %v2990_v7 = vsub.s32 0, %v2989_v0  ;;  %v2994_v23 = vsub.s32 1, %v2989_v0 }
 0x3ae   : > { %2771 = vmatprep.mubr.f32.mxu0 %v2599_v38  ;;  %v2998_v42 = vsub.s32 2, %v2989_v0  ;;  %v3002_v61 = vsub.s32 3, %v2989_v0 }
 0x3af   : > { %2772 = vmatmul.mubr.f32.gmra.mrb[30].mxu0 %v2598_v1  ;;  %v4131_v19 = vpop.f32.mrb[18].mxu1  ;;  %v1399_v5 = vcvt.s32.f32 %v1367_v16  ;;  %v1398_v27 = vcvt.s32.f32 %v1366_v37  ;;  %v7917_v54 = vrot.slane %v2986_v24, %v2990_v7  ;;  %v7919_v38 = vrot.slane %v2986_v24, %v2994_v23 }
 0x3b0   : > { %v4132_v31 = vpop.f32.mrb[19].mxu1  ;;  %3072 = vmatprep.mubr.f32.mxu0 %v4797_v63 }
 0x3b1   : > { %v4133_v21 = vadd.f32 %v4132_v31, %v4131_v19  ;;  %2916 = vmatprep.mubr.f32.mxu1 %v1399_v5  ;;  %v7921_v19 = vrot.slane %v2986_v24, %v2998_v42 }
 0x3b2   : > { %2917 = vmatmul.mubr.f32.gmra.mrb[30].mxu1 %v1398_v27 }
 0x3b3   : > { %3073 = vmatmul.mubr.f32.vlgmr.msra.gmra.mrb[32].mxu0 %v6757_v11  ;;  %3233 = vmatprep.mubr.f32.mxu1 %v4797_v63 }
 0x3b4   : > { %3078 = vmatprep.mubr.f32.mxu0 %v4797_v63 }
 0x3b6   : > { %3234 = vmatmul.mubr.f32.vlgmr.msra.gmra.mrb[32].mxu1 %v6757_v11 }
 0x3b7   : > { %3079 = vmatmul.mubr.f32.gmra.mrb[34].mxu0 %v7226_v50  ;;  %3239 = vmatprep.mubr.f32.mxu1 %v4797_v63 }
 0x3b8   : > { %3084 = vmatprep.mubr.f32.mxu0 %v4797_v63 }
 0x3ba   : > { %3240 = vmatmul.mubr.f32.gmra.mrb[34].mxu1 %v7226_v50 }
 0x3bb   : > { %3085 = vmatmul.mubr.f32.gmra.mrb[36].mxu0 %v7266_v39  ;;  %3245 = vmatprep.mubr.f32.mxu1 %v4797_v63 }
 0x3bc   : > { %3090 = vmatprep.mubr.f32.mxu0 %v4797_v63 }
 0x3be   : > { %3246 = vmatmul.mubr.f32.gmra.mrb[36].mxu1 %v7266_v39 }
 0x3bf   : > { %v4048_v30 = vpop.f32.mrb[16].mxu0  ;;  %3091 = vmatmul.mubr.f32.gmra.mrb[38].mxu0 %v7282_v53  ;;  %3251 = vmatprep.mubr.f32.mxu1 %v4797_v63 }
 0x3c0   : > { %v4049_v4 = vpop.f32.mrb[17].mxu0  ;;  %3096 = vmatprep.mubr.f32.mxu0 %v4797_v63 }
 0x3c1   : > { %v4050_v11 = vadd.f32 %v4049_v4, %v4048_v30 }
 0x3c2   : > { %3252 = vmatmul.mubr.f32.gmra.mrb[38].mxu1 %v7282_v53 }
 0x3c3   : > { %v2884_v50 = vadd.f32 %v7737_v60, %v4050_v11  ;;  %3097 = vmatmul.mubr.f32.gmra.mrb[40].mxu0 %v7439_v57  ;;  %3257 = vmatprep.mubr.f32.mxu1 %v4797_v63 }
 0x3c4   : > { %3102 = vmatprep.mubr.f32.mxu0 %v4797_v63 }
 0x3c6   : > { %3258 = vmatmul.mubr.f32.gmra.mrb[40].mxu1 %v7439_v57 }
 0x3c7   : > { %3103 = vmatmul.mubr.f32.gmra.mrb[42].mxu0 %v7598_v47  ;;  %3263 = vmatprep.mubr.f32.mxu1 %v4797_v63 }
 0x3c8   : > { %3108 = vmatprep.mubr.f32.mxu0 %v4797_v63 }
 0x3ca   : > { %3264 = vmatmul.mubr.f32.gmra.mrb[42].mxu1 %v7598_v47 }
 0x3cb   : > { %3109 = vmatmul.mubr.f32.gmra.mrb[44].mxu0 %v7665_v55  ;;  %3269 = vmatprep.mubr.f32.mxu1 %v4797_v63 }
 0x3cc   : > { %3114 = vmatprep.mubr.f32.mxu0 %v4797_v63 }
 0x3ce   : > { %3270 = vmatmul.mubr.f32.gmra.mrb[44].mxu1 %v7665_v55 }
 0x3cf   : > { %3115 = vmatmul.mubr.f32.gmra.mrb[46].mxu0 %v7823_v3  ;;  %3275 = vmatprep.mubr.f32.mxu1 %v4797_v63 }
 0x3d0   : > { %3120 = vmatprep.mubr.f32.mxu0 %v4797_v63 }
 0x3d2   : > { %v4134_v39 = vpop.f32.mrb[20].mxu1  ;;  %3276 = vmatmul.mubr.f32.gmra.mrb[46].mxu1 %v7823_v3 }
 0x3d3   : > { %v4135_v53 = vpop.f32.mrb[21].mxu1  ;;  %3121 = vmatmul.mubr.f32.gmra.mrb[48].mxu0 %v2884_v50  ;;  %3281 = vmatprep.mubr.f32.mxu1 %v4797_v63 }
 0x3d4   : > { %v4136_v57 = vadd.f32 %v4135_v53, %v4134_v39  ;;  %3126 = vmatprep.mubr.f32.mxu0 %v4797_v63 }
 0x3d6   : > { %3282 = vmatmul.mubr.f32.gmra.mrb[48].mxu1 %v2884_v50 }
 0x3d7   : > { %3287 = vmatprep.mubr.f32.mxu1 %v4797_v63 }
 0x3e2   : > { %v4051_v47 = vpop.f32.mrb[18].mxu0 }
 0x3e3   : > { %v4052_v55 = vpop.f32.mrb[19].mxu0 }
 0x3e4   : > { %v4053_v60 = vadd.f32 %v4052_v55, %v4051_v47 }
 0x3e6   : > { %v2889_v45 = vadd.f32 %v4133_v21, %v4053_v60  ;;  %v7926_v21 = vrot.slane %v2986_v24, %v3002_v61 }
 0x3e8   : > { %3127 = vmatmul.mubr.f32.gmra.mrb[50].mxu0 %v2889_v45  ;;  %3288 = vmatmul.mubr.f32.gmra.mrb[50].mxu1 %v2889_v45 }
 0x3e9   : > { %3132 = vmatprep.mubr.f32.mxu0 %v4797_v63  ;;  %3293 = vmatprep.mubr.f32.mxu1 %v4797_v63 }
 0x3f5   : > { %v4137_v17 = vpop.f32.mrb[22].mxu1 }
 0x3f6   : > { %v4138_v41 = vpop.f32.mrb[23].mxu1 }
 0x3f7   : > { %v4139_v59 = vadd.f32 %v4138_v41, %v4137_v17 }
 0x405   : > { %v4054_v13 = vpop.f32.mrb[20].mxu0 }
 0x406   : > { %v4055_v34 = vpop.f32.mrb[21].mxu0 }
 0x407   : > { %v4056_v43 = vadd.f32 %v4055_v34, %v4054_v13 }
 0x409   : > { %v2894_v52 = vadd.f32 %v4136_v57, %v4056_v43 }
 0x40b   : > { %3133 = vmatmul.mubr.f32.gmra.mrb[52].mxu0 %v2894_v52  ;;  %3294 = vmatmul.mubr.f32.gmra.mrb[52].mxu1 %v2894_v52 }
 0x40c   : > { %3138 = vmatprep.mubr.f32.mxu0 %v4797_v63  ;;  %3299 = vmatprep.mubr.f32.mxu1 %v4797_v63 }
 0x418   : > { %v4140_v12 = vpop.f32.mrb[24].mxu1 }
 0x419   : > { %v4141_v3 = vpop.f32.mrb[25].mxu1 }
 0x41a   : > { %v4142_v6 = vadd.f32 %v4141_v3, %v4140_v12 }
 0x428   : > { %v4057_v32 = vpop.f32.mrb[22].mxu0 }
 0x429   : > { %v4058_v10 = vpop.f32.mrb[23].mxu0 }
 0x42a   : > { %v4059_v18 = vadd.f32 %v4058_v10, %v4057_v32 }
 0x42c   : > { %v2899_v14 = vadd.f32 %v4139_v59, %v4059_v18 }
 0x42e   : > { %3139 = vmatmul.mubr.f32.gmra.mrb[54].mxu0 %v2899_v14  ;;  %3300 = vmatmul.mubr.f32.gmra.mrb[54].mxu1 %v2899_v14 }
 0x42f   : > { %3144 = vmatprep.mubr.f32.mxu0 %v4797_v63  ;;  %3305 = vmatprep.mubr.f32.mxu1 %v4797_v63 }
 0x43b   : > { %v4143_v26 = vpop.f32.mrb[26].mxu1 }
 0x43c   : > { %v4144_v44 = vpop.f32.mrb[27].mxu1 }
 0x43d   : > { %v4145_v2 = vadd.f32 %v4144_v44, %v4143_v26 }
 0x44b   : > { %v4060_v20 = vpop.f32.mrb[24].mxu0 }
 0x44c   : > { %v4061_v48 = vpop.f32.mrb[25].mxu0 }
 0x44d   : > { %v4062_v56 = vadd.f32 %v4061_v48, %v4060_v20 }
 0x44f   : > { %v2904_v49 = vadd.f32 %v4142_v6, %v4062_v56  ;;  %v4063_v58 = vpop.f32.mrb[26].mxu0 }
 0x450   : > { %v4064_v8 = vpop.f32.mrb[27].mxu0 }
 0x451   : > { %v4065_v40 = vadd.f32 %v4064_v8, %v4063_v58  ;;  %3145 = vmatmul.mubr.f32.gmra.mrb[56].mxu0 %v2904_v49  ;;  %3306 = vmatmul.mubr.f32.gmra.mrb[56].mxu1 %v2904_v49 }
 0x452   : > { %3150 = vmatprep.mubr.f32.mxu0 %v4797_v63  ;;  %3311 = vmatprep.mubr.f32.mxu1 %v4797_v63 }
 0x453   : > { %v2909_v9 = vadd.f32 %v4145_v2, %v4065_v40 }
 0x455   : > { %3151 = vmatmul.mubr.f32.gmra.mrb[58].mxu0 %v2909_v9  ;;  %3312 = vmatmul.mubr.f32.gmra.mrb[58].mxu1 %v2909_v9 }
 0x456   : > { %3156 = vmatprep.mubr.f32.mxu0 %v4797_v63  ;;  %3317 = vmatprep.mubr.f32.mxu1 %v4797_v63 }
 0x46b   : > { %v4146_v35 = vpop.f32.mrb[28].mxu1 }
 0x46c   : > { %v4147_v51 = vpop.f32.mrb[29].mxu1 }
 0x46d   : > { %v4148_v62 = vadd.f32 %v4147_v51, %v4146_v35 }
 0x47b   : > { %v4066_v29 = vpop.f32.mrb[28].mxu0 }
 0x47c   : > { %v4067_v15 = vpop.f32.mrb[29].mxu0 }
 0x47d   : > { %v4068_v46 = vadd.f32 %v4067_v15, %v4066_v29 }
 0x47f   : > { %v2914_v28 = vadd.f32 %v4148_v62, %v4068_v46 }
 0x481   : > { %3157 = vmatmul.mubr.f32.gmra.mrb[60].mxu0 %v2914_v28  ;;  %3318 = vmatmul.mubr.f32.gmra.mrb[60].mxu1 %v2914_v28 }
 0x482   : > { %v4069_v33 = vpop.f32.mrb[30].mxu0  ;;  %3162 = vmatprep.mubr.f32.mxu0 %v4797_v63  ;;  %3323 = vmatprep.mubr.f32.mxu1 %v4797_v63 }
 0x483   : > { %v4070_v22 = vpop.f32.mrb[31].mxu0 }
 0x484   : > { %v4071_v25 = vadd.f32 %v4070_v22, %v4069_v33 }
 0x485   : > { %v4149_v1 = vpop.f32.mrb[30].mxu1 }
 0x486   : > { %v4150_v37 = vpop.f32.mrb[31].mxu1  ;;  %v3074_v16 = vpop.f32.mrb[32].mxu0 }
 0x487   : > { %v4151_v5 = vadd.f32 %v4150_v37, %v4149_v1  ;;  %v7924_v27 = vadd.f32 %v3074_v16, %v7917_v54  ;;  %v3076_v31 = vpop.f32.mrb[33].mxu0 }
 0x488   : > { %v7929_v63 = vadd.f32 %v3076_v31, %v7919_v38 }
 0x489   : > { %8989 = vst [vmem:[#allocation41_spill] sm:$0xff] %v7924_v27  ;;  %v2919_v30 = vadd.f32 %v4151_v5, %v4071_v25  ;;  %v3235_v4 = vpop.f32.mrb[32].mxu1 }
 0x48a   : > { %8990 = vst [vmem:[#allocation40_spill] sm:$0xff] %v7929_v63  ;;  %v3330_v11 = vmax.f32 %v7924_v27, %v7929_v63  ;;  %v7934_v50 = vadd.f32 %v3235_v4, %v7921_v19  ;;  %v3080_v39 = vpop.f32.mrb[34].mxu0  ;;  %v3237_v53 = vpop.f32.mrb[33].mxu1 }
 0x48b   : > { %v7937_v57 = vadd.f32 %v3080_v39, %v7917_v54  ;;  %v7940_v47 = vadd.f32 %v3237_v53, %v7926_v21  ;;  %v3082_v55 = vpop.f32.mrb[35].mxu0  ;;  %3163 = vmatmul.mubr.f32.gmra.mrb[62].mxu0 %v2919_v30  ;;  %3324 = vmatmul.mubr.f32.gmra.mrb[62].mxu1 %v2919_v30 }
 0x48c   : > { %8991 = vst [vmem:[#allocation42_spill] sm:$0xff] %v7934_v50  ;;  %v3331_v60 = vmax.f32 %v3330_v11, %v7934_v50  ;;  %v7944_v45 = vadd.f32 %v3082_v55, %v7919_v38 }
 0x48d   : > { %8992 = vst [vmem:[#allocation45_spill] sm:$0xff] %v7937_v57  ;;  %8993 = vst [vmem:[#allocation44_spill] sm:$0xff] %v7940_v47  ;;  %v3241_v17 = vpop.f32.mrb[34].mxu1 }
 0x48e   : > { %8994 = vst [vmem:[#allocation53_spill] sm:$0xff] %v7944_v45  ;;  %v3335_v41 = vmax.f32 %v7937_v57, %v7944_v45  ;;  %v7949_v59 = vadd.f32 %v3241_v17, %v7921_v19  ;;  %v3086_v13 = vpop.f32.mrb[36].mxu0  ;;  %v3243_v34 = vpop.f32.mrb[35].mxu1  ;;  %v3332_v43 = vmax.f32 %v3331_v60, %v7940_v47 }
 0x48f   : > { %v7953_v52 = vadd.f32 %v3086_v13, %v7917_v54  ;;  %v7956_v12 = vadd.f32 %v3243_v34, %v7926_v21  ;;  %v3088_v3 = vpop.f32.mrb[37].mxu0 }
 0x490   : > { %8995 = vst [vmem:[#allocation57_spill] sm:$0xff] %v7949_v59  ;;  %v3336_v6 = vmax.f32 %v3335_v41, %v7949_v59  ;;  %v7960_v32 = vadd.f32 %v3088_v3, %v7919_v38  ;;  %3333 = vmax.xlane.f32.xlu1 %v3332_v43 }
 0x491   : > { %8996 = vst [vmem:[#allocation58_spill] sm:$0xff] %v7956_v12  ;;  %v3247_v10 = vpop.f32.mrb[36].mxu1 }
 0x492   : > { %v3340_v18 = vmax.f32 %v7953_v52, %v7960_v32  ;;  %v7965_v14 = vadd.f32 %v3247_v10, %v7921_v19  ;;  %v3092_v26 = vpop.f32.mrb[38].mxu0  ;;  %v3249_v44 = vpop.f32.mrb[37].mxu1  ;;  %v3337_v2 = vmax.f32 %v3336_v6, %v7956_v12 }
 0x493   : > { %v7969_v20 = vadd.f32 %v3092_v26, %v7917_v54  ;;  %v7972_v48 = vadd.f32 %v3249_v44, %v7926_v21  ;;  %v3094_v56 = vpop.f32.mrb[39].mxu0 }
 0x494   : > { %8997 = vst [vmem:[#allocation81_spill] sm:$0xff] %v7965_v14  ;;  %v3341_v49 = vmax.f32 %v3340_v18, %v7965_v14  ;;  %v7976_v58 = vadd.f32 %v3094_v56, %v7919_v38  ;;  %3338 = vmax.xlane.f32.xlu0 %v3337_v2 }
 0x495   : > { %8998 = vst [vmem:[#allocation43_spill] sm:$0xff] %v7969_v20  ;;  %8999 = vst [vmem:[#allocation98_spill] sm:$0xff] %v7972_v48  ;;  %v3253_v8 = vpop.f32.mrb[38].mxu1 }
 0x496   : > { %9000 = vst [vmem:[#allocation99_spill] sm:$0xff] %v7976_v58  ;;  %v3345_v40 = vmax.f32 %v7969_v20, %v7976_v58  ;;  %v7981_v9 = vadd.f32 %v3253_v8, %v7921_v19  ;;  %v3098_v35 = vpop.f32.mrb[40].mxu0  ;;  %v3255_v51 = vpop.f32.mrb[39].mxu1  ;;  %v3342_v62 = vmax.f32 %v3341_v49, %v7972_v48 }
 0x497   : > { %v7985_v29 = vadd.f32 %v3098_v35, %v7917_v54  ;;  %v7988_v36 = vadd.f32 %v3255_v51, %v7926_v21  ;;  %v3100_v0 = vpop.f32.mrb[41].mxu0 }
 0x498   : > { %9001 = vst [vmem:[#allocation102_spill] sm:$0xff] %v7981_v9  ;;  %v3346_v15 = vmax.f32 %v3345_v40, %v7981_v9  ;;  %v7992_v46 = vadd.f32 %v3100_v0, %v7919_v38  ;;  %3343 = vmax.xlane.f32.xlu1 %v3342_v62 }
 0x499   : > { %9002 = vst [vmem:[#allocation101_spill] sm:$0xff] %v7985_v29  ;;  %9003 = vst [vmem:[#allocation13_spill] sm:$0xff] %v7988_v36  ;;  %v3259_v28 = vpop.f32.mrb[40].mxu1 }
 0x49a   : > { %9004 = vst [vmem:[#allocation100_spill] sm:$0xff] %v7992_v46  ;;  %v3350_v7 = vmax.f32 %v7985_v29, %v7992_v46  ;;  %v7997_v24 = vadd.f32 %v3259_v28, %v7921_v19  ;;  %v3104_v23 = vpop.f32.mrb[42].mxu0  ;;  %v3261_v33 = vpop.f32.mrb[41].mxu1  ;;  %v3347_v42 = vmax.f32 %v3346_v15, %v7988_v36 }
 0x49b   : > { %v8001_v22 = vadd.f32 %v3104_v23, %v7917_v54  ;;  %v8004_v61 = vadd.f32 %v3261_v33, %v7926_v21  ;;  %v3106_v25 = vpop.f32.mrb[43].mxu0 }
 0x49c   : > { %9005 = vst [vmem:[#allocation46_spill] sm:$0xff] %v7997_v24  ;;  %v3351_v1 = vmax.f32 %v3350_v7, %v7997_v24  ;;  %v8008_v37 = vadd.f32 %v3106_v25, %v7919_v38  ;;  %3348 = vmax.xlane.f32.xlu0 %v3347_v42 }
 0x49d   : > { %9006 = vst [vmem:[#allocation30_spill] sm:$0xff] %v8001_v22  ;;  %9007 = vst [vmem:[#allocation31_spill] sm:$0xff] %v8004_v61  ;;  %v3265_v16 = vpop.f32.mrb[42].mxu1 }
 0x49e   : > { %9008 = vst [vmem:[#allocation60_spill] sm:$0xff] %v8008_v37  ;;  %v3355_v5 = vmax.f32 %v8001_v22, %v8008_v37  ;;  %v8013_v31 = vadd.f32 %v3265_v16, %v7921_v19  ;;  %v3110_v30 = vpop.f32.mrb[44].mxu0  ;;  %v3267_v4 = vpop.f32.mrb[43].mxu1  ;;  %v3352_v11 = vmax.f32 %v3351_v1, %v8004_v61 }
 0x49f   : > { %v8017_v39 = vadd.f32 %v3110_v30, %v7917_v54  ;;  %v8020_v53 = vadd.f32 %v3267_v4, %v7926_v21  ;;  %v3112_v55 = vpop.f32.mrb[45].mxu0 }
 0x4a0   : > { %9009 = vst [vmem:[#allocation59_spill] sm:$0xff] %v8013_v31  ;;  %v3356_v60 = vmax.f32 %v3355_v5, %v8013_v31  ;;  %v8024_v17 = vadd.f32 %v3112_v55, %v7919_v38  ;;  %3353 = vmax.xlane.f32.xlu1 %v3352_v11 }
 0x4a1   : > { %9010 = vst [vmem:[#allocation92_spill] sm:$0xff] %v8017_v39  ;;  %v3271_v41 = vpop.f32.mrb[44].mxu1 }
 0x4a2   : > { %9011 = vst [vmem:[#allocation47_spill] sm:$0xff] %v8024_v17  ;;  %v3360_v13 = vmax.f32 %v8017_v39, %v8024_v17  ;;  %v8029_v34 = vadd.f32 %v3271_v41, %v7921_v19  ;;  %v3116_v43 = vpop.f32.mrb[46].mxu0  ;;  %v3273_v3 = vpop.f32.mrb[45].mxu1  ;;  %v3357_v6 = vmax.f32 %v3356_v60, %v8020_v53 }
 0x4a3   : > { %v8033_v10 = vadd.f32 %v3116_v43, %v7917_v54  ;;  %v8036_v18 = vadd.f32 %v3273_v3, %v7926_v21  ;;  %v3118_v26 = vpop.f32.mrb[47].mxu0 }
 0x4a4   : > { %9012 = vst [vmem:[#allocation27_spill] sm:$0xff] %v8029_v34  ;;  %v3361_v44 = vmax.f32 %v3360_v13, %v8029_v34  ;;  %v8040_v2 = vadd.f32 %v3118_v26, %v7919_v38  ;;  %3358 = vmax.xlane.f32.xlu0 %v3357_v6 }
 0x4a5   : > { %9013 = vst [vmem:[#allocation70_spill] sm:$0xff] %v8033_v10  ;;  %9014 = vst [vmem:[#allocation12_spill] sm:$0xff] %v8036_v18  ;;  %v3277_v56 = vpop.f32.mrb[46].mxu1 }
 0x4a6   : > { %9015 = vst [vmem:[#allocation82_spill] sm:$0xff] %v8040_v2  ;;  %v3365_v49 = vmax.f32 %v8033_v10, %v8040_v2  ;;  %v8045_v8 = vadd.f32 %v3277_v56, %v7921_v19  ;;  %v3122_v40 = vpop.f32.mrb[48].mxu0  ;;  %v3279_v35 = vpop.f32.mrb[47].mxu1  ;;  %v3362_v51 = vmax.f32 %v3361_v44, %v8036_v18 }
 0x4a7   : > { %v8049_v62 = vadd.f32 %v3122_v40, %v7917_v54  ;;  %v8052_v0 = vadd.f32 %v3279_v35, %v7926_v21  ;;  %v3124_v15 = vpop.f32.mrb[49].mxu0 }
 0x4a8   : > { %9016 = vst [vmem:[#allocation103_spill] sm:$0xff] %v8045_v8  ;;  %v3366_v28 = vmax.f32 %v3365_v49, %v8045_v8  ;;  %v8056_v7 = vadd.f32 %v3124_v15, %v7919_v38  ;;  %3363 = vmax.xlane.f32.xlu1 %v3362_v51 }
 0x4a9   : > { %9017 = vst [vmem:[#allocation15_spill] sm:$0xff] %v8049_v62  ;;  %v3283_v23 = vpop.f32.mrb[48].mxu1 }
 0x4aa   : > { %9018 = vst [vmem:[#allocation49_spill] sm:$0xff] %v8056_v7  ;;  %v3370_v33 = vmax.f32 %v8049_v62, %v8056_v7  ;;  %v8061_v42 = vadd.f32 %v3283_v23, %v7921_v19  ;;  %v3285_v25 = vpop.f32.mrb[49].mxu1  ;;  %v3367_v1 = vmax.f32 %v3366_v28, %v8052_v0 }
 0x4ab   : > { %v8065_v16 = vadd.f32 %v3285_v25, %v7926_v21 }
 0x4ac   : > { %9019 = vst [vmem:[#allocation16_spill] sm:$0xff] %v8061_v42  ;;  %v3371_v5 = vmax.f32 %v3370_v33, %v8061_v42  ;;  %3368 = vmax.xlane.f32.xlu0 %v3367_v1 }
 0x4ad   : > { %9020 = vst [vmem:[#allocation48_spill] sm:$0xff] %v8065_v16 }
 0x4ae   : > { %v3372_v30 = vmax.f32 %v3371_v5, %v8065_v16 }
 0x4b0   : > { %3373 = vmax.xlane.f32.xlu1 %v3372_v30 }
 0x4bb   : > { %v3128_v4 = vpop.f32.mrb[50].mxu0  ;;  %v3289_v11 = vpop.f32.mrb[50].mxu1 }
 0x4bc   : > { %v8070_v55 = vadd.f32 %v3128_v4, %v7917_v54  ;;  %v3130_v60 = vpop.f32.mrb[51].mxu0  ;;  %v3291_v41 = vpop.f32.mrb[51].mxu1  ;;  %v8076_v43 = vadd.f32 %v3289_v11, %v7921_v19 }
 0x4bd   : > { %v8073_v13 = vadd.f32 %v3130_v60, %v7919_v38  ;;  %v8081_v6 = vadd.f32 %v3291_v41, %v7926_v21 }
 0x4be   : > { %9021 = vst [vmem:[#allocation73_spill] sm:$0xff] %v8070_v55 }
 0x4bf   : > { %9022 = vst [vmem:[#allocation71_spill] sm:$0xff] %v8073_v13  ;;  %v3375_v3 = vmax.f32 %v8070_v55, %v8073_v13 }
 0x4c1   : > { %v3376_v26 = vmax.f32 %v3375_v3, %v8076_v43 }
 0x4c3   : > { %v3377_v44 = vmax.f32 %v3376_v26, %v8081_v6 }
 0x4c5   : > { %3378 = vmax.xlane.f32.xlu0 %v3377_v44 }
 0x4de   : > { %v3134_v56 = vpop.f32.mrb[52].mxu0  ;;  %v3295_v49 = vpop.f32.mrb[52].mxu1 }
 0x4df   : > { %v8086_v40 = vadd.f32 %v3134_v56, %v7917_v54  ;;  %v3136_v35 = vpop.f32.mrb[53].mxu0  ;;  %v3297_v51 = vpop.f32.mrb[53].mxu1  ;;  %v8092_v28 = vadd.f32 %v3295_v49, %v7921_v19 }
 0x4e0   : > { %v8089_v15 = vadd.f32 %v3136_v35, %v7919_v38  ;;  %v8097_v33 = vadd.f32 %v3297_v51, %v7926_v21 }
 0x4e2   : > { %v3380_v23 = vmax.f32 %v8086_v40, %v8089_v15 }
 0x4e4   : > { %v3381_v25 = vmax.f32 %v3380_v23, %v8092_v28 }
 0x4e6   : > { %v3382_v1 = vmax.f32 %v3381_v25, %v8097_v33 }
 0x4e8   : > { %3383 = vmax.xlane.f32.xlu1 %v3382_v1 }
 0x501   : > { %v3140_v5 = vpop.f32.mrb[54].mxu0  ;;  %v3301_v30 = vpop.f32.mrb[54].mxu1 }
 0x502   : > { %v8102_v4 = vadd.f32 %v3140_v5, %v7917_v54  ;;  %v3142_v11 = vpop.f32.mrb[55].mxu0  ;;  %v3303_v60 = vpop.f32.mrb[55].mxu1  ;;  %v8108_v3 = vadd.f32 %v3301_v30, %v7921_v19 }
 0x503   : > { %v8105_v41 = vadd.f32 %v3142_v11, %v7919_v38  ;;  %v8113_v44 = vadd.f32 %v3303_v60, %v7926_v21 }
 0x504   : > { %9024 = vst [vmem:[#allocation83_spill] sm:$0xff] %v8108_v3 }
 0x505   : > { %9023 = vst [vmem:[#allocation14_spill] sm:$0xff] %v8105_v41  ;;  %v3385_v26 = vmax.f32 %v8102_v4, %v8105_v41  ;;  %9025 = vst [vmem:[#allocation11_spill] sm:$0xff] %v8113_v44 }
 0x507   : > { %v3386_v56 = vmax.f32 %v3385_v26, %v8108_v3 }
 0x509   : > { %v3387_v49 = vmax.f32 %v3386_v56, %v8113_v44 }
 0x50b   : > { %3388 = vmax.xlane.f32.xlu0 %v3387_v49 }
 0x524   : > { %v3146_v35 = vpop.f32.mrb[56].mxu0  ;;  %v3307_v51 = vpop.f32.mrb[56].mxu1 }
 0x525   : > { %v8118_v23 = vadd.f32 %v3146_v35, %v7917_v54  ;;  %v3148_v25 = vpop.f32.mrb[57].mxu0  ;;  %v3309_v1 = vpop.f32.mrb[57].mxu1  ;;  %v8129_v44 = vadd.f32 %v3307_v51, %v7921_v19 }
 0x526   : > { %v8121_v5 = vadd.f32 %v3148_v25, %v7919_v38  ;;  %v8138_v41 = vadd.f32 %v3309_v1, %v7926_v21 }
 0x527   : > { %9026 = vst [vmem:[#allocation32_spill] sm:$0xff] %v8118_v23 }
 0x528   : > { %9027 = vst [vmem:[#allocation33_spill] sm:$0xff] %v8121_v5  ;;  %v3152_v30 = vpop.f32.mrb[58].mxu0  ;;  %v3313_v11 = vpop.f32.mrb[58].mxu1  ;;  %v3390_v60 = vmax.f32 %v8118_v23, %v8121_v5 }
 0x529   : > { %v8126_v26 = vadd.f32 %v3152_v30, %v7917_v54  ;;  %v3154_v56 = vpop.f32.mrb[59].mxu0  ;;  %v3315_v49 = vpop.f32.mrb[59].mxu1  ;;  %v8141_v5 = vadd.f32 %v3313_v11, %v7921_v19 }
 0x52a   : > { %v8132_v35 = vadd.f32 %v3154_v56, %v7919_v38  ;;  %v3391_v3 = vmax.f32 %v3390_v60, %v8129_v44  ;;  %v8146_v51 = vadd.f32 %v3315_v49, %v7926_v21  ;;  %v8155_v60 = vpop.xlane.xlu0 %3338 }
 0x52b   : > { %9029 = vst [vmem:[#allocation62_spill] sm:$0xff] %v8141_v5  ;;  %9031 = vst [vmem:[#allocation93_spill] sm:$0xff] %v8155_v60 }
 0x52c   : > { %9028 = vst [vmem:[#allocation51_spill] sm:$0xff] %v8132_v35  ;;  %v3395_v25 = vmax.f32 %v8126_v26, %v8132_v35  ;;  %v3392_v30 = vmax.f32 %v3391_v3, %v8138_v41  ;;  %9030 = vst [vmem:[#allocation61_spill] sm:$0xff] %v8146_v51  ;;  %v8149_v35 = vpop.xlane.xlu1 %3333 }
 0x52d   : > { %v3410_v1 = vsub.f32 %v7924_v27, %v8149_v35  ;;  %v3411_v11 = vsub.f32 %v7929_v63, %v8149_v35  ;;  %v3412_v3 = vsub.f32 %v7934_v50, %v8149_v35  ;;  %v3413_v49 = vsub.f32 %v7940_v47, %v8149_v35 }
 0x52e   : > { %v3396_v23 = vmax.f32 %v3395_v25, %v8141_v5  ;;  %3393 = vmax.xlane.f32.xlu1 %v3392_v30  ;;  %v3416_v63 = vsub.f32 %v7949_v59, %v8155_v60  ;;  %v3417_v50 = vsub.f32 %v7956_v12, %v8155_v60 }
 0x52f   : > { %v3474_v25 = vmul.f32 1.442695, %v3410_v1  ;;  %v3476_v30 = vmul.f32 1.442695, %v3411_v11  ;;  %v3480_v5 = vmul.f32 1.442695, %v3413_v49 }
 0x530   : > { %v3397_v56 = vmax.f32 %v3396_v23, %v8146_v51  ;;  %v3414_v23 = vsub.f32 %v7937_v57, %v8155_v60  ;;  %v8165_v27 = vpop.xlane.xlu1 %3343  ;;  %v3478_v51 = vmul.f32 1.442695, %v3412_v3  ;;  %v8175_v57 = vpop.xlane.xlu0 %3348  ;;  %v3486_v3 = vmul.f32 1.442695, %v3416_v63 }
 0x531   : > { %4476 = vpow2.f32 %v3474_v25  ;;  %v3418_v1 = vsub.f32 %v7953_v52, %v8165_v27  ;;  %9032 = vst [vmem:[#allocation25_spill] sm:$0xff] %v8175_v57  ;;  %v3420_v49 = vsub.f32 %v7965_v14, %v8165_v27  ;;  %v3488_v59 = vmul.f32 1.442695, %v3417_v50 }
 0x532   : > { %3398 = vmax.xlane.f32.xlu0 %v3397_v56  ;;  %v3415_v56 = vsub.f32 %v7944_v45, %v8155_v60  ;;  %v3482_v47 = vmul.f32 1.442695, %v3414_v23  ;;  %4478 = vpow2.f32 %v3476_v30  ;;  %v3419_v45 = vsub.f32 %v7960_v32, %v8165_v27 }
 0x533   : > { %4480 = vpow2.f32 %v3478_v51  ;;  %v3421_v25 = vsub.f32 %v7972_v48, %v8165_v27  ;;  %v3490_v23 = vmul.f32 1.442695, %v3418_v1  ;;  %v3422_v30 = vsub.f32 %v7969_v20, %v8175_v57 }
 0x534   : > { %v3484_v11 = vmul.f32 1.442695, %v3415_v56  ;;  %4482 = vpow2.f32 %v3480_v5  ;;  %v3492_v56 = vmul.f32 1.442695, %v3419_v45  ;;  %v3423_v12 = vsub.f32 %v7976_v58, %v8175_v57  ;;  %v8185_v51 = vpop.xlane.xlu1 %3353 }
 0x535   : > { %4484 = vpow2.f32 %v3482_v47  ;;  %9033 = vst [vmem:[#allocation84_spill] sm:$0xff] %v8185_v51  ;;  %v3494_v63 = vmul.f32 1.442695, %v3420_v49  ;;  %v3424_v50 = vsub.f32 %v7981_v9, %v8175_v57  ;;  %v3496_v5 = vmul.f32 1.442695, %v3421_v25 }
 0x536   : > { %4486 = vpow2.f32 %v3484_v11  ;;  %v3425_v47 = vsub.f32 %v7988_v36, %v8175_v57  ;;  %v3498_v1 = vmul.f32 1.442695, %v3422_v30  ;;  %v3426_v45 = vsub.f32 %v7985_v29, %v8185_v51  ;;  %v8201_v36 = vpop.xlane.xlu0 %3358 }
 0x537   : > { %4488 = vpow2.f32 %v3486_v3  ;;  %v3500_v11 = vmul.f32 1.442695, %v3423_v12  ;;  %v3427_v58 = vsub.f32 %v7992_v46, %v8185_v51  ;;  %v3502_v9 = vmul.f32 1.442695, %v3424_v50 }
 0x538   : > { %4490 = vpow2.f32 %v3488_v59  ;;  %v8195_v3 = vpop.xlane.xlu1 %3363  ;;  %v3428_v59 = vsub.f32 %v7997_v24, %v8185_v51  ;;  %v3429_v30 = vsub.f32 %v8004_v61, %v8185_v51 }
 0x539   : > { %4492 = vpow2.f32 %v3490_v23  ;;  %9034 = vst [vmem:[#allocation26_spill] sm:$0xff] %v8195_v3  ;;  %v3504_v23 = vmul.f32 1.442695, %v3425_v47  ;;  %v3434_v20 = vsub.f32 %v8017_v39, %v8195_v3  ;;  %v3435_v50 = vsub.f32 %v8024_v17, %v8195_v3 }
 0x53a   : > { %4494 = vpow2.f32 %v3492_v56  ;;  %v3506_v56 = vmul.f32 1.442695, %v3426_v45  ;;  %v3510_v60 = vmul.f32 1.442695, %v3428_v59  ;;  %v3512_v39 = vmul.f32 1.442695, %v3429_v30  ;;  %v8223_v24 = vpop.xlane.xlu0 %3368 }
 0x53b   : > { %v4477_v49 = vpop.eup %4476  ;;  %4496 = vpow2.f32 %v3494_v63  ;;  %v3508_v63 = vmul.f32 1.442695, %v3427_v58  ;;  %v3432_v58 = vsub.f32 %v8013_v31, %v8201_v36  ;;  %v3522_v61 = vmul.f32 1.442695, %v3434_v20 }
 0x53c   : > { %v4479_v25 = vpop.eup %4478  ;;  %4498 = vpow2.f32 %v3496_v5  ;;  %v3524_v30 = vmul.f32 1.442695, %v3435_v50 }
 0x53d   : > { %v4481_v12 = vpop.eup %4480  ;;  %4500 = vpow2.f32 %v3498_v1  ;;  %v8209_v5 = vpop.xlane.xlu1 %3373  ;;  %v3430_v1 = vsub.f32 %v8001_v22, %v8201_v36  ;;  %v3602_v29 = vadd.f32 %v4479_v25, %v4477_v49  ;;  %v3439_v49 = vsub.f32 %v8040_v2, %v8223_v24 }
 0x53e   : > { %v8205_v57 = vpop.eup %4482  ;;  %4502 = vpow2.f32 %v3500_v11  ;;  %9035 = vst [vmem:[#allocation17_spill] sm:$0xff] %v8209_v5  ;;  %v3431_v11 = vsub.f32 %v8008_v37, %v8201_v36  ;;  %v3443_v37 = vsub.f32 %v8056_v7, %v8209_v5  ;;  %v3438_v7 = vsub.f32 %v8033_v10, %v8223_v24 }
 0x53f   : > { %v8211_v47 = vpop.eup %4484  ;;  %4504 = vpow2.f32 %v3502_v9  ;;  %v3442_v9 = vsub.f32 %v8049_v62, %v8209_v5  ;;  %v3514_v20 = vmul.f32 1.442695, %v3430_v1  ;;  %v3440_v2 = vsub.f32 %v8045_v8, %v8223_v24 }
 0x540   : > { %v8215_v45 = vpop.eup %4486  ;;  %4506 = vpow2.f32 %v3504_v23  ;;  %v3516_v51 = vmul.f32 1.442695, %v3431_v11  ;;  %v3436_v23 = vsub.f32 %v8029_v34, %v8195_v3  ;;  %v3540_v25 = vmul.f32 1.442695, %v3443_v37 }
 0x541   : > { %v8221_v17 = vpop.eup %4488  ;;  %4508 = vpow2.f32 %v3506_v56  ;;  %v3444_v37 = vsub.f32 %v8061_v42, %v8209_v5 }
 0x542   : > { %v8227_v59 = vpop.eup %4490  ;;  %4510 = vpow2.f32 %v3508_v63  ;;  %v3518_v63 = vmul.f32 1.442695, %v3432_v58 }
 0x543   : > { %v4493_v46 = vpop.eup %4492  ;;  %4512 = vpow2.f32 %v3510_v60  ;;  %v3538_v60 = vmul.f32 1.442695, %v3442_v9 }
 0x544   : > { %v4495_v62 = vpop.eup %4494  ;;  %4514 = vpow2.f32 %v3512_v39  ;;  %v3437_v39 = vsub.f32 %v8036_v18, %v8195_v3  ;;  %v3530_v18 = vmul.f32 1.442695, %v3438_v7  ;;  %v3542_v3 = vmul.f32 1.442695, %v3444_v37 }
 0x545   : > { %v4497_v14 = vpop.eup %4496  ;;  %4516 = vpow2.f32 %v3522_v61  ;;  %v3441_v37 = vsub.f32 %v8052_v0, %v8223_v24 }
 0x546   : > { %4518 = vpow2.f32 %v3524_v30  ;;  %v3526_v30 = vmul.f32 1.442695, %v3436_v23 }
 0x547   : > { %4520 = vpow2.f32 %v3514_v20 }
 0x548   : > { %4522 = vpow2.f32 %v3516_v51  ;;  %v3532_v51 = vmul.f32 1.442695, %v3439_v49 }
 0x549   : > { %4524 = vpow2.f32 %v3538_v60  ;;  %v3612_v60 = vadd.f32 %v4495_v62, %v4493_v46 }
 0x54a   : > { %4526 = vpow2.f32 %v3540_v25  ;;  %v3607_v25 = vadd.f32 %v8215_v45, %v8211_v47 }
 0x54b   : > { %4528 = vpow2.f32 %v3518_v63  ;;  %v3534_v63 = vmul.f32 1.442695, %v3440_v2  ;;  %v3613_v2 = vadd.f32 %v4497_v14, %v3612_v60 }
 0x552   : > { %v8251_v61 = vpop.xlane.xlu0 %3378 }
 0x553   : > { %v3446_v23 = vsub.f32 %v8070_v55, %v8251_v61  ;;  %v3447_v42 = vsub.f32 %v8073_v13, %v8251_v61 }
 0x554   : > { %v3158_v31 = vpop.f32.mrb[60].mxu0  ;;  %v3319_v22 = vpop.f32.mrb[60].mxu1 }
 0x555   : > { %v8234_v56 = vadd.f32 %v3158_v31, %v7917_v54  ;;  %v3160_v50 = vpop.f32.mrb[61].mxu0  ;;  %v3321_v48 = vpop.f32.mrb[61].mxu1  ;;  %v8254_v58 = vadd.f32 %v3319_v22, %v7921_v19 }
 0x556   : > { %v8241_v1 = vadd.f32 %v3160_v50, %v7919_v38  ;;  %v8243_v31 = vpop.eup %4498  ;;  %v3603_v50 = vadd.f32 %v4481_v12, %v3602_v29  ;;  %v8267_v22 = vadd.f32 %v3321_v48, %v7926_v21  ;;  %v3528_v12 = vmul.f32 1.442695, %v3437_v39 }
 0x557   : > { %v8249_v11 = vpop.eup %4500  ;;  %4530 = vpow2.f32 %v3526_v30 }
 0x558   : > { %v3400_v9 = vmax.f32 %v8234_v56, %v8241_v1  ;;  %v8258_v10 = vpop.eup %4502  ;;  %4532 = vpow2.f32 %v3530_v18  ;;  %v3604_v62 = vadd.f32 %v8205_v57, %v3603_v50  ;;  %v3548_v18 = vmul.f32 1.442695, %v3447_v42 }
 0x559   : > { %v8264_v20 = vpop.eup %4504  ;;  %4534 = vpow2.f32 %v3532_v51  ;;  %v9036_v51 = vsub.f32 %v8020_v53, %v8201_v36  ;;  %v3448_v42 = vsub.f32 %v8076_v43, %v8251_v61 }
 0x55a   : > { %v3401_v34 = vmax.f32 %v3400_v9, %v8254_v58  ;;  %v8270_v29 = vpop.eup %4506  ;;  %v3445_v9 = vsub.f32 %v8065_v16, %v8209_v5  ;;  %v3546_v16 = vmul.f32 1.442695, %v3446_v23  ;;  %4536 = vpow2.f32 %v3528_v12 }
 0x55b   : > { %v4509_v8 = vpop.eup %4508  ;;  %4538 = vpow2.f32 %v3542_v3  ;;  %v3608_v3 = vadd.f32 %v8221_v17, %v3607_v25  ;;  %v3614_v23 = vadd.f32 %v8243_v31, %v3613_v2  ;;  %v3550_v17 = vmul.f32 1.442695, %v3448_v42 }
 0x55c   : > { %v3402_v7 = vmax.f32 %v3401_v34, %v8267_v22  ;;  %v4511_v48 = vpop.eup %4510  ;;  %4540 = vpow2.f32 %v3534_v63 }
 0x55d   : > { %v4513_v55 = vpop.eup %4512  ;;  %v3622_v45 = vadd.f32 %v4511_v48, %v4509_v8  ;;  %4542 = vpow2.f32 %v3546_v16  ;;  %v3617_v16 = vadd.f32 %v8258_v10, %v8249_v11 }
 0x55e   : > { %v3164_v39 = vpop.f32.mrb[62].mxu0  ;;  %v3325_v49 = vpop.f32.mrb[62].mxu1  ;;  %3403 = vmax.xlane.f32.xlu1 %v3402_v7  ;;  %v3544_v7 = vmul.f32 1.442695, %v3445_v9  ;;  %4544 = vpow2.f32 %v3548_v18 }
 0x55f   : > { %v8282_v13 = vadd.f32 %v3164_v39, %v7917_v54  ;;  %v3166_v34 = vpop.f32.mrb[63].mxu0  ;;  %v3327_v46 = vpop.f32.mrb[63].mxu1  ;;  %v8291_v39 = vadd.f32 %v3325_v49, %v7921_v19  ;;  %v3623_v60 = vadd.f32 %v4513_v55, %v3622_v45  ;;  %v3536_v49 = vmul.f32 1.442695, %v3441_v37 }
 0x560   : > { %v4515_v30 = vpop.eup %4514  ;;  %v8288_v5 = vadd.f32 %v3166_v34, %v7919_v38  ;;  %v3520_v38 = vmul.f32 1.442695, %v9036_v51  ;;  %v8301_v8 = vadd.f32 %v3327_v46, %v7926_v21  ;;  %4546 = vpow2.f32 %v3544_v7 }
 0x561   : > { %v4517_v47 = vpop.eup %4516  ;;  %v3449_v34 = vsub.f32 %v8081_v6, %v8251_v61  ;;  %v3624_v55 = vadd.f32 %v4515_v30, %v3623_v60  ;;  %v3618_v18 = vadd.f32 %v8264_v20, %v3617_v16 }
 0x562   : > { %v4519_v54 = vpop.eup %4518  ;;  %v3405_v57 = vmax.f32 %v8282_v13, %v8288_v5  ;;  %3605 = vadd.xlane.f32.xlu1 %v3604_v62  ;;  %4548 = vpow2.f32 %v3520_v38 }
 0x563   : > { %v4521_v50 = vpop.eup %4520  ;;  %v3632_v48 = vadd.f32 %v4519_v54, %v4517_v47  ;;  %4550 = vpow2.f32 %v3536_v49  ;;  %v3609_v47 = vadd.f32 %v8227_v59, %v3608_v3  ;;  %v3552_v2 = vmul.f32 1.442695, %v3449_v34 }
 0x564   : > { %v4523_v14 = vpop.eup %4522  ;;  %v3406_v19 = vmax.f32 %v3405_v57, %v8291_v39  ;;  %4552 = vpow2.f32 %v3550_v17  ;;  %v3619_v38 = vadd.f32 %v8270_v29, %v3618_v18 }
 0x565   : > { %v4525_v12 = vpop.eup %4524  ;;  %v3627_v10 = vadd.f32 %v4523_v14, %v4521_v50  ;;  %4554 = vpow2.f32 %v3552_v2 }
 0x566   : > { %v4527_v9 = vpop.eup %4526  ;;  %v3407_v63 = vmax.f32 %v3406_v19, %v8301_v8  ;;  %3615 = vadd.xlane.f32.xlu1 %v3614_v23 }
 0x567   : > { %v4529_v21 = vpop.eup %4528  ;;  %v3642_v62 = vadd.f32 %v4527_v9, %v4525_v12 }
 0x568   : > { %v4531_v25 = vpop.eup %4530  ;;  %3408 = vmax.xlane.f32.xlu0 %v3407_v63  ;;  %v3628_v42 = vadd.f32 %v4529_v21, %v3627_v10 }
 0x569   : > { %v4533_v31 = vpop.eup %4532  ;;  %v3633_v46 = vadd.f32 %v4531_v25, %v3632_v48 }
 0x56a   : > { %v4535_v37 = vpop.eup %4534  ;;  %3625 = vadd.xlane.f32.xlu1 %v3624_v55 }
 0x56b   : > { %v4537_v11 = vpop.eup %4536  ;;  %v3637_v51 = vadd.f32 %v4535_v37, %v4533_v31 }
 0x56c   : > { %v4539_v45 = vpop.eup %4538  ;;  %3610 = vadd.xlane.f32.xlu0 %v3609_v47  ;;  %v3634_v7 = vadd.f32 %v4537_v11, %v3633_v46 }
 0x56d   : > { %v4541_v54 = vpop.eup %4540  ;;  %v3643_v57 = vadd.f32 %v4539_v45, %v3642_v62 }
 0x56e   : > { %v4543_v30 = vpop.eup %4542  ;;  %3635 = vadd.xlane.f32.xlu1 %v3634_v7  ;;  %v3638_v14 = vadd.f32 %v4541_v54, %v3637_v51  ;;  %v9037_v7 = vld [vmem:[#allocation14_spill] sm:$0xff]  ;;  %v9038_v51 = vld [vmem:[#allocation83_spill] sm:$0xff] }
 0x56f   : > { %v4545_v19 = vpop.eup %4544 }
 0x570   : > { %v4547_v59 = vpop.eup %4546  ;;  %3620 = vadd.xlane.f32.xlu0 %v3619_v38  ;;  %v3647_v12 = vadd.f32 %v4545_v19, %v4543_v30  ;;  %v9039_v38 = vld [vmem:[#allocation11_spill] sm:$0xff] }
 0x571   : > { %v4549_v20 = vpop.eup %4548  ;;  %v3644_v50 = vadd.f32 %v4547_v59, %v3643_v57 }
 0x572   : > { %v3629_v3 = vadd.f32 %v4549_v20, %v3628_v42  ;;  %v4551_v23 = vpop.eup %4550 }
 0x573   : > { %3645 = vadd.xlane.f32.xlu1 %v3644_v50  ;;  %v4553_v60 = vpop.eup %4552  ;;  %v3639_v9 = vadd.f32 %v4551_v23, %v3638_v14 }
 0x574   : > { %3630 = vadd.xlane.f32.xlu0 %v3629_v3  ;;  %v3648_v16 = vadd.f32 %v4553_v60, %v3647_v12  ;;  %v4555_v25 = vpop.eup %4554 }
 0x575   : > { %v8314_v48 = vpop.xlane.xlu1 %3383 }
 0x576   : > { %v3450_v29 = vsub.f32 %v8086_v40, %v8314_v48  ;;  %v3451_v49 = vsub.f32 %v8089_v15, %v8314_v48  ;;  %v3452_v63 = vsub.f32 %v8092_v28, %v8314_v48  ;;  %v3453_v21 = vsub.f32 %v8097_v33, %v8314_v48 }
 0x577   : > { %v3649_v55 = vadd.f32 %v4555_v25, %v3648_v16 }
 0x578   : > { %v3554_v34 = vmul.f32 1.442695, %v3450_v29  ;;  %v3556_v17 = vmul.f32 1.442695, %v3451_v49  ;;  %3640 = vadd.xlane.f32.xlu0 %v3639_v9  ;;  %v3558_v31 = vmul.f32 1.442695, %v3452_v63 }
 0x579   : > { %v3560_v46 = vmul.f32 1.442695, %v3453_v21  ;;  %v9040_v63 = vld [vmem:[#allocation32_spill] sm:$0xff]  ;;  %v9041_v21 = vld [vmem:[#allocation33_spill] sm:$0xff] }
 0x57a   : > { %4556 = vpow2.f32 %v3554_v34 }
 0x57b   : > { %4558 = vpow2.f32 %v3556_v17 }
 0x57c   : > { %3650 = vadd.xlane.f32.xlu0 %v3649_v55  ;;  %4560 = vpow2.f32 %v3558_v31 }
 0x57d   : > { %4562 = vpow2.f32 %v3560_v46 }
 0x584   : > { %v4557_v62 = vpop.eup %4556 }
 0x585   : > { %v4559_v37 = vpop.eup %4558 }
 0x586   : > { %v3652_v47 = vadd.f32 %v4559_v37, %v4557_v62  ;;  %v4561_v18 = vpop.eup %4560 }
 0x587   : > { %v4563_v11 = vpop.eup %4562 }
 0x588   : > { %v3653_v10 = vadd.f32 %v4561_v18, %v3652_v47  ;;  %v9042_v18 = vld [vmem:[#allocation51_spill] sm:$0xff] }
 0x58a   : > { %v3654_v2 = vadd.f32 %v4563_v11, %v3653_v10  ;;  %v9043_v11 = vld [vmem:[#allocation62_spill] sm:$0xff] }
 0x58c   : > { %3655 = vadd.xlane.f32.xlu1 %v3654_v2 }
 0x598   : > { %v8324_v45 = vpop.xlane.xlu0 %3388 }
 0x599   : > { %v3454_v54 = vsub.f32 %v8102_v4, %v8324_v45  ;;  %v3455_v57 = vsub.f32 %v9037_v7, %v8324_v45  ;;  %v3456_v30 = vsub.f32 %v9038_v51, %v8324_v45  ;;  %v3457_v42 = vsub.f32 %v9039_v38, %v8324_v45 }
 0x59b   : > { %v3562_v19 = vmul.f32 1.442695, %v3454_v54  ;;  %v3564_v59 = vmul.f32 1.442695, %v3455_v57  ;;  %v3566_v20 = vmul.f32 1.442695, %v3456_v30 }
 0x59c   : > { %v3568_v50 = vmul.f32 1.442695, %v3457_v42  ;;  %v9044_v54 = vld [vmem:[#allocation61_spill] sm:$0xff] }
 0x59d   : > { %4564 = vpow2.f32 %v3562_v19 }
 0x59e   : > { %4566 = vpow2.f32 %v3564_v59 }
 0x59f   : > { %4568 = vpow2.f32 %v3566_v20 }
 0x5a0   : > { %4570 = vpow2.f32 %v3568_v50 }
 0x5a7   : > { %v4565_v14 = vpop.eup %4564 }
 0x5a8   : > { %v4567_v3 = vpop.eup %4566 }
 0x5a9   : > { %v3657_v12 = vadd.f32 %v4567_v3, %v4565_v14  ;;  %v4569_v23 = vpop.eup %4568 }
 0x5aa   : > { %v4571_v9 = vpop.eup %4570 }
 0x5ab   : > { %v3658_v60 = vadd.f32 %v4569_v23, %v3657_v12 }
 0x5ad   : > { %v3659_v29 = vadd.f32 %v4571_v9, %v3658_v60 }
 0x5af   : > { %3660 = vadd.xlane.f32.xlu0 %v3659_v29 }
 0x5bb   : > { %v8334_v49 = vpop.xlane.xlu1 %3393 }
 0x5bc   : > { %v3458_v16 = vsub.f32 %v9040_v63, %v8334_v49  ;;  %v3459_v34 = vsub.f32 %v9041_v21, %v8334_v49  ;;  %v3460_v17 = vsub.f32 %v8129_v44, %v8334_v49  ;;  %v3461_v25 = vsub.f32 %v8138_v41, %v8334_v49 }
 0x5be   : > { %v3570_v31 = vmul.f32 1.442695, %v3458_v16  ;;  %v3572_v55 = vmul.f32 1.442695, %v3459_v34  ;;  %v3574_v46 = vmul.f32 1.442695, %v3460_v17 }
 0x5bf   : > { %v8344_v62 = vpop.xlane.xlu0 %3398  ;;  %v3576_v37 = vmul.f32 1.442695, %v3461_v25 }
 0x5c0   : > { %v3462_v47 = vsub.f32 %v8126_v26, %v8344_v62  ;;  %v3463_v10 = vsub.f32 %v9042_v18, %v8344_v62  ;;  %v3464_v2 = vsub.f32 %v9043_v11, %v8344_v62  ;;  %4572 = vpow2.f32 %v3570_v31 }
 0x5c1   : > { %4574 = vpow2.f32 %v3572_v55  ;;  %v3465_v57 = vsub.f32 %v9044_v54, %v8344_v62 }
 0x5c2   : > { %v3578_v30 = vmul.f32 1.442695, %v3462_v47  ;;  %v3580_v42 = vmul.f32 1.442695, %v3463_v10  ;;  %4576 = vpow2.f32 %v3574_v46  ;;  %v3582_v19 = vmul.f32 1.442695, %v3464_v2 }
 0x5c3   : > { %4578 = vpow2.f32 %v3576_v37  ;;  %v3584_v59 = vmul.f32 1.442695, %v3465_v57 }
 0x5c4   : > { %4580 = vpow2.f32 %v3578_v30 }
 0x5c5   : > { %4582 = vpow2.f32 %v3580_v42 }
 0x5c6   : > { %4584 = vpow2.f32 %v3582_v19 }
 0x5c7   : > { %4586 = vpow2.f32 %v3584_v59 }
 0x5ca   : > { %v4573_v20 = vpop.eup %4572 }
 0x5cb   : > { %v4575_v50 = vpop.eup %4574 }
 0x5cc   : > { %v4577_v14 = vpop.eup %4576  ;;  %v3662_v3 = vadd.f32 %v4575_v50, %v4573_v20 }
 0x5cd   : > { %v4579_v12 = vpop.eup %4578 }
 0x5ce   : > { %v4581_v23 = vpop.eup %4580  ;;  %v3663_v60 = vadd.f32 %v4577_v14, %v3662_v3 }
 0x5cf   : > { %v4583_v9 = vpop.eup %4582 }
 0x5d0   : > { %v3664_v29 = vadd.f32 %v4579_v12, %v3663_v60  ;;  %v3667_v16 = vadd.f32 %v4583_v9, %v4581_v23  ;;  %v4585_v34 = vpop.eup %4584 }
 0x5d1   : > { %v4587_v25 = vpop.eup %4586 }
 0x5d2   : > { %3665 = vadd.xlane.f32.xlu1 %v3664_v29  ;;  %v3668_v17 = vadd.f32 %v4585_v34, %v3667_v16 }
 0x5d4   : > { %v3669_v31 = vadd.f32 %v4587_v25, %v3668_v17 }
 0x5d6   : > { %3670 = vadd.xlane.f32.xlu0 %v3669_v31 }
 0x5eb   : > { %v8354_v55 = vpop.xlane.xlu1 %3403 }
 0x5ec   : > { %v3466_v46 = vsub.f32 %v8234_v56, %v8354_v55  ;;  %v3467_v37 = vsub.f32 %v8241_v1, %v8354_v55  ;;  %v3468_v47 = vsub.f32 %v8254_v58, %v8354_v55  ;;  %v3469_v10 = vsub.f32 %v8267_v22, %v8354_v55 }
 0x5ee   : > { %v3586_v2 = vmul.f32 1.442695, %v3466_v46  ;;  %v3588_v57 = vmul.f32 1.442695, %v3467_v37  ;;  %v3590_v30 = vmul.f32 1.442695, %v3468_v47 }
 0x5ef   : > { %v3592_v42 = vmul.f32 1.442695, %v3469_v10  ;;  %v3606_v19 = vpop.xlane.xlu1 %3605 }
 0x5f0   : > { %4588 = vpow2.f32 %v3586_v2 }
 0x5f1   : > { %4590 = vpow2.f32 %v3588_v57 }
 0x5f2   : > { %4592 = vpow2.f32 %v3590_v30 }
 0x5f3   : > { %4594 = vpow2.f32 %v3592_v42  ;;  %v3616_v59 = vpop.xlane.xlu1 %3615 }
 0x5f4   : > { %4596 = vlog2.f32 %v3606_v19 }
 0x5f5   : > { %v8364_v20 = vpop.xlane.xlu0 %3408  ;;  %4598 = vlog2.f32 %v3616_v59 }
 0x5f6   : > { %v3470_v50 = vsub.f32 %v8282_v13, %v8364_v20  ;;  %v3471_v14 = vsub.f32 %v8288_v5, %v8364_v20  ;;  %v3472_v3 = vsub.f32 %v8291_v39, %v8364_v20  ;;  %v3473_v12 = vsub.f32 %v8301_v8, %v8364_v20 }
 0x5f7   : > { %v3626_v29 = vpop.xlane.xlu1 %3625 }
 0x5f8   : > { %v3594_v23 = vmul.f32 1.442695, %v3470_v50  ;;  %v3596_v60 = vmul.f32 1.442695, %v3471_v14  ;;  %v3598_v9 = vmul.f32 1.442695, %v3472_v3  ;;  %4600 = vlog2.f32 %v3626_v29 }
 0x5f9   : > { %v3600_v16 = vmul.f32 1.442695, %v3473_v12  ;;  %v3611_v34 = vpop.xlane.xlu0 %3610 }
 0x5fa   : > { %4602 = vpow2.f32 %v3594_v23  ;;  %v4589_v17 = vpop.eup %4588 }
 0x5fb   : > { %4604 = vpow2.f32 %v3596_v60  ;;  %v4591_v25 = vpop.eup %4590  ;;  %v3636_v31 = vpop.xlane.xlu1 %3635 }
 0x5fc   : > { %4606 = vpow2.f32 %v3598_v9  ;;  %v4593_v46 = vpop.eup %4592  ;;  %v3672_v47 = vadd.f32 %v4591_v25, %v4589_v17  ;;  %v9045_v9 = vld [vmem:[#allocation41_spill] sm:$0xff]  ;;  %v9047_v17 = vld [vmem:[#allocation42_spill] sm:$0xff] }
 0x5fd   : > { %4608 = vpow2.f32 %v3600_v16  ;;  %v3621_v37 = vpop.xlane.xlu0 %3620  ;;  %v4595_v10 = vpop.eup %4594  ;;  %v9046_v16 = vld [vmem:[#allocation40_spill] sm:$0xff] }
 0x5fe   : > { %4610 = vlog2.f32 %v3611_v34  ;;  %v4597_v2 = vpop.eup %4596  ;;  %v3673_v57 = vadd.f32 %v4593_v46, %v3672_v47 }
 0x5ff   : > { %4612 = vlog2.f32 %v3636_v31  ;;  %v4599_v30 = vpop.eup %4598  ;;  %v3683_v42 = vmul.f32 0.6931472, %v4597_v2  ;;  %v9048_v31 = vld [vmem:[#allocation44_spill] sm:$0xff] }
 0x600   : > { %4614 = vlog2.f32 %v3621_v37  ;;  %v3646_v19 = vpop.xlane.xlu1 %3645  ;;  %v3687_v59 = vmul.f32 0.6931472, %v4599_v30  ;;  %v3674_v50 = vadd.f32 %v4595_v10, %v3673_v57  ;;  %v9050_v57 = vld [vmem:[#allocation98_spill] sm:$0xff] }
 0x601   : > { %4616 = vlog2.f32 %v3646_v19  ;;  %v3631_v14 = vpop.xlane.xlu0 %3630  ;;  %v3714_v3 = vadd.f32 %v3683_v42, %v8149_v35  ;;  %v9049_v35 = vld [vmem:[#allocation81_spill] sm:$0xff] }
 0x602   : > { %4618 = vlog2.f32 %v3631_v14  ;;  %v4601_v12 = vpop.eup %4600  ;;  %v3716_v23 = vadd.f32 %v3687_v59, %v8165_v27  ;;  %3675 = vadd.xlane.f32.xlu1 %v3674_v50  ;;  %v9051_v50 = vld [vmem:[#allocation84_spill] sm:$0xff] }
 0x603   : > { %v3730_v29 = vsub.f32 %v9045_v9, %v3714_v3  ;;  %v3731_v34 = vsub.f32 %v9046_v16, %v3714_v3  ;;  %v3732_v25 = vsub.f32 %v9047_v17, %v3714_v3  ;;  %v3733_v46 = vsub.f32 %v9048_v31, %v3714_v3 }
 0x604   : > { %v4603_v60 = vpop.eup %4602  ;;  %v3738_v47 = vsub.f32 %v7953_v52, %v3716_v23  ;;  %v3739_v10 = vsub.f32 %v7960_v32, %v3716_v23  ;;  %v3740_v2 = vsub.f32 %v9049_v35, %v3716_v23  ;;  %v3741_v30 = vsub.f32 %v9050_v57, %v3716_v23 }
 0x605   : > { %v4605_v37 = vpop.eup %4604  ;;  %v3641_v27 = vpop.xlane.xlu0 %3640  ;;  %3794 = vst [vmem:[%s8387_s10] sm:$0xff] %v3730_v29  ;;  %3795 = vst [vmem:[%s8387_s10 + $0x8] sm:$0xff] %v3731_v34  ;;  %v3691_v52 = vmul.f32 0.6931472, %v4601_v12  ;;  %v9052_v12 = vld [vmem:[#allocation101_spill] sm:$0xff] }
 0x606   : > { %v4607_v42 = vpop.eup %4606  ;;  %3796 = vst [vmem:[%s8387_s10 + $0x10] sm:$0xff] %v3732_v25  ;;  %3797 = vst [vmem:[%s8387_s10 + $0x18] sm:$0xff] %v3733_v46  ;;  %4620 = vlog2.f32 %v3641_v27  ;;  %v3677_v32 = vadd.f32 %v4605_v37, %v4603_v60  ;;  %v9053_v60 = vld [vmem:[#allocation100_spill] sm:$0xff]  ;;  %v9054_v25 = vld [vmem:[#allocation46_spill] sm:$0xff] }
 0x607   : > { %v4609_v19 = vpop.eup %4608  ;;  %3802 = vst [vmem:[%s8387_s10 + $0x40] sm:$0xff] %v3738_v47  ;;  %3803 = vst [vmem:[%s8387_s10 + $0x48] sm:$0xff] %v3739_v10  ;;  %v3718_v14 = vadd.f32 %v3691_v52, %v9051_v50  ;;  %v9055_v46 = vld [vmem:[#allocation31_spill] sm:$0xff]  ;;  %v9056_v10 = vld [vmem:[#allocation93_spill] sm:$0xff] }
 0x608   : > { %3804 = vst [vmem:[%s8387_s10 + $0x50] sm:$0xff] %v3740_v2  ;;  %3805 = vst [vmem:[%s8387_s10 + $0x58] sm:$0xff] %v3741_v30  ;;  %v4611_v59 = vpop.eup %4610  ;;  %v3678_v3 = vadd.f32 %v4607_v42, %v3677_v32  ;;  %v9057_v52 = vld [vmem:[#allocation45_spill] sm:$0xff] }
 0x609   : > { %v4613_v23 = vpop.eup %4612  ;;  %v3685_v9 = vmul.f32 0.6931472, %v4611_v59  ;;  %v3651_v29 = vpop.xlane.xlu0 %3650  ;;  %v3746_v34 = vsub.f32 %v9052_v12, %v3718_v14  ;;  %v3747_v17 = vsub.f32 %v9053_v60, %v3718_v14  ;;  %v3748_v31 = vsub.f32 %v9054_v25, %v3718_v14  ;;  %v9058_v59 = vld [vmem:[#allocation53_spill] sm:$0xff] }
 0x60a   : > { %v4615_v16 = vpop.eup %4614  ;;  %v3749_v37 = vsub.f32 %v9055_v46, %v3718_v14  ;;  %v3695_v2 = vmul.f32 0.6931472, %v4613_v23  ;;  %4622 = vlog2.f32 %v3651_v29  ;;  %v3679_v42 = vadd.f32 %v4609_v19, %v3678_v3  ;;  %v9059_v14 = vld [vmem:[#allocation57_spill] sm:$0xff]  ;;  %v9060_v23 = vld [vmem:[#allocation58_spill] sm:$0xff] }
 0x60b   : > { %v4617_v47 = vpop.eup %4616  ;;  %v3715_v35 = vadd.f32 %v3685_v9, %v9056_v10  ;;  %v3689_v57 = vmul.f32 0.6931472, %v4615_v16  ;;  %3810 = vst [vmem:[%s8387_s10 + $0x80] sm:$0xff] %v3746_v34  ;;  %3811 = vst [vmem:[%s8387_s10 + $0x88] sm:$0xff] %v3747_v17  ;;  %v9061_v29 = vld [vmem:[#allocation26_spill] sm:$0xff]  ;;  %v9062_v60 = vld [vmem:[#allocation25_spill] sm:$0xff] }
 0x60c   : > { %v4619_v30 = vpop.eup %4618  ;;  %3812 = vst [vmem:[%s8387_s10 + $0x90] sm:$0xff] %v3748_v31  ;;  %3813 = vst [vmem:[%s8387_s10 + $0x98] sm:$0xff] %v3749_v37  ;;  %v3699_v27 = vmul.f32 0.6931472, %v4617_v47  ;;  %v3720_v12 = vadd.f32 %v3695_v2, %v9061_v29  ;;  %v9063_v34 = vld [vmem:[#allocation17_spill] sm:$0xff]  ;;  %3680 = vadd.xlane.f32.xlu0 %v3679_v42  ;;  %v9064_v17 = vld [vmem:[#allocation92_spill] sm:$0xff] }
 0x60d   : > { %v3734_v32 = vsub.f32 %v9057_v52, %v3715_v35  ;;  %v3735_v50 = vsub.f32 %v9058_v59, %v3715_v35  ;;  %v3736_v9 = vsub.f32 %v9059_v14, %v3715_v35  ;;  %v3737_v16 = vsub.f32 %v9060_v23, %v3715_v35  ;;  %v9065_v37 = vld [vmem:[#allocation47_spill] sm:$0xff]  ;;  %v9067_v2 = vld [vmem:[#allocation12_spill] sm:$0xff]  ;;  %v9070_v59 = vld [vmem:[#allocation102_spill] sm:$0xff] }
 0x60e   : > { %v3717_v25 = vadd.f32 %v3689_v57, %v9062_v60  ;;  %v3722_v46 = vadd.f32 %v3699_v27, %v9063_v34  ;;  %v3693_v19 = vmul.f32 0.6931472, %v4619_v30  ;;  %v3754_v31 = vsub.f32 %v9064_v17, %v3720_v12  ;;  %v9066_v10 = vld [vmem:[#allocation27_spill] sm:$0xff]  ;;  %v9071_v30 = vld [vmem:[#allocation13_spill] sm:$0xff]  ;;  %v9075_v34 = vld [vmem:[#allocation48_spill] sm:$0xff] }
 0x60f   : > { %3798 = vst [vmem:[%s8387_s10 + $0x20] sm:$0xff] %v3734_v32  ;;  %3799 = vst [vmem:[%s8387_s10 + $0x28] sm:$0xff] %v3735_v50  ;;  %v3755_v47 = vsub.f32 %v9065_v37, %v3720_v12  ;;  %v3756_v35 = vsub.f32 %v9066_v10, %v3720_v12  ;;  %v3757_v57 = vsub.f32 %v9067_v2, %v3720_v12  ;;  %v9068_v27 = vld [vmem:[#allocation43_spill] sm:$0xff]  ;;  %v9074_v12 = vld [vmem:[#allocation16_spill] sm:$0xff] }
 0x610   : > { %3800 = vst [vmem:[%s8387_s10 + $0x30] sm:$0xff] %v3736_v9  ;;  %3801 = vst [vmem:[%s8387_s10 + $0x38] sm:$0xff] %v3737_v16  ;;  %v4621_v3 = vpop.eup %4620  ;;  %v3742_v42 = vsub.f32 %v9068_v27, %v3717_v25  ;;  %v9069_v52 = vld [vmem:[#allocation99_spill] sm:$0xff]  ;;  %v3744_v50 = vsub.f32 %v9070_v59, %v3717_v25  ;;  %v3745_v14 = vsub.f32 %v9071_v30, %v3717_v25  ;;  %v9073_v16 = vld [vmem:[#allocation49_spill] sm:$0xff] }
 0x611   : > { %v3743_v32 = vsub.f32 %v9069_v52, %v3717_v25  ;;  %3818 = vst [vmem:[%s8387_s10 + $0xc0] sm:$0xff] %v3754_v31  ;;  %3819 = vst [vmem:[%s8387_s10 + $0xc8] sm:$0xff] %v3755_v47  ;;  %v9072_v9 = vld [vmem:[#allocation15_spill] sm:$0xff]  ;;  %v3763_v29 = vsub.f32 %v9073_v16, %v3722_v46  ;;  %v3764_v60 = vsub.f32 %v9074_v12, %v3722_v46  ;;  %v3697_v31 = vmul.f32 0.6931472, %v4621_v3  ;;  %v9076_v47 = vld [vmem:[#allocation30_spill] sm:$0xff] }
 0x612   : > { %3820 = vst [vmem:[%s8387_s10 + $0xd0] sm:$0xff] %v3756_v35  ;;  %3821 = vst [vmem:[%s8387_s10 + $0xd8] sm:$0xff] %v3757_v57  ;;  %v3762_v23 = vsub.f32 %v9072_v9, %v3722_v46  ;;  %v3765_v17 = vsub.f32 %v9075_v34, %v3722_v46  ;;  %v3719_v25 = vadd.f32 %v3693_v19, %v8201_v36  ;;  %v9077_v35 = vld [vmem:[#allocation60_spill] sm:$0xff]  ;;  %v9078_v2 = vld [vmem:[#allocation59_spill] sm:$0xff] }
 0x613   : > { %3806 = vst [vmem:[%s8387_s10 + $0x60] sm:$0xff] %v3742_v42  ;;  %3807 = vst [vmem:[%s8387_s10 + $0x68] sm:$0xff] %v3743_v32  ;;  %v3721_v36 = vadd.f32 %v3697_v31, %v8223_v24  ;;  %v9079_v3 = vld [vmem:[#allocation70_spill] sm:$0xff]  ;;  %v9081_v59 = vld [vmem:[#allocation103_spill] sm:$0xff] }
 0x614   : > { %3808 = vst [vmem:[%s8387_s10 + $0x70] sm:$0xff] %v3744_v50  ;;  %3809 = vst [vmem:[%s8387_s10 + $0x78] sm:$0xff] %v3745_v14  ;;  %v4623_v37 = vpop.eup %4622  ;;  %v3750_v10 = vsub.f32 %v9076_v47, %v3719_v25  ;;  %v3751_v46 = vsub.f32 %v9077_v35, %v3719_v25  ;;  %v3752_v57 = vsub.f32 %v9078_v2, %v3719_v25  ;;  %v9080_v52 = vld [vmem:[#allocation82_spill] sm:$0xff]  ;;  %v9082_v14 = vld [vmem:[#allocation73_spill] sm:$0xff] }
 0x615   : > { %3826 = vst [vmem:[%s8387_s10 + $0x100] sm:$0xff] %v3762_v23  ;;  %3827 = vst [vmem:[%s8387_s10 + $0x108] sm:$0xff] %v3763_v29  ;;  %v3753_v27 = vsub.f32 %v8020_v53, %v3719_v25  ;;  %v3701_v19 = vmul.f32 0.6931472, %v4623_v37  ;;  %v3758_v42 = vsub.f32 %v9079_v3, %v3721_v36  ;;  %v3759_v32 = vsub.f32 %v9080_v52, %v3721_v36  ;;  %v9083_v23 = vld [vmem:[#allocation71_spill] sm:$0xff] }
 0x616   : > { %3828 = vst [vmem:[%s8387_s10 + $0x110] sm:$0xff] %v3764_v60  ;;  %3829 = vst [vmem:[%s8387_s10 + $0x118] sm:$0xff] %v3765_v17  ;;  %v3760_v50 = vsub.f32 %v9081_v59, %v3721_v36  ;;  %v3761_v53 = vsub.f32 %v8052_v0, %v3721_v36 }
 0x617   : > { %3814 = vst [vmem:[%s8387_s10 + $0xa0] sm:$0xff] %v3750_v10  ;;  %3815 = vst [vmem:[%s8387_s10 + $0xa8] sm:$0xff] %v3751_v46  ;;  %v3723_v30 = vadd.f32 %v3701_v19, %v8251_v61 }
 0x618   : > { %3816 = vst [vmem:[%s8387_s10 + $0xb0] sm:$0xff] %v3752_v57  ;;  %3817 = vst [vmem:[%s8387_s10 + $0xb8] sm:$0xff] %v3753_v27 }
 0x619   : > { %v3656_v24 = vpop.xlane.xlu1 %3655  ;;  %3822 = vst [vmem:[%s8387_s10 + $0xe0] sm:$0xff] %v3758_v42  ;;  %3823 = vst [vmem:[%s8387_s10 + $0xe8] sm:$0xff] %v3759_v32  ;;  %v3766_v9 = vsub.f32 %v9082_v14, %v3723_v30  ;;  %v3767_v16 = vsub.f32 %v9083_v23, %v3723_v30  ;;  %v3768_v29 = vsub.f32 %v8076_v43, %v3723_v30 }
 0x61a   : > { %3824 = vst [vmem:[%s8387_s10 + $0xf0] sm:$0xff] %v3760_v50  ;;  %3825 = vst [vmem:[%s8387_s10 + $0xf8] sm:$0xff] %v3761_v53  ;;  %4624 = vlog2.f32 %v3656_v24  ;;  %v3769_v0 = vsub.f32 %v8081_v6, %v3723_v30 }
 0x61b   : > { %3830 = vst [vmem:[%s8387_s10 + $0x120] sm:$0xff] %v3766_v9  ;;  %3831 = vst [vmem:[%s8387_s10 + $0x128] sm:$0xff] %v3767_v16 }
 0x61c   : > { %3832 = vst [vmem:[%s8387_s10 + $0x130] sm:$0xff] %v3768_v29  ;;  %3833 = vst [vmem:[%s8387_s10 + $0x138] sm:$0xff] %v3769_v0 }
 0x624   : > { %v4625_v61 = vpop.eup %4624 }
 0x625   : > { %v3703_v12 = vmul.f32 0.6931472, %v4625_v61 }
 0x627   : > { %v3724_v60 = vadd.f32 %v3703_v12, %v8314_v48 }
 0x629   : > { %v3770_v34 = vsub.f32 %v8086_v40, %v3724_v60  ;;  %v3771_v17 = vsub.f32 %v8089_v15, %v3724_v60  ;;  %v3772_v25 = vsub.f32 %v8092_v28, %v3724_v60  ;;  %v3773_v43 = vsub.f32 %v8097_v33, %v3724_v60 }
 0x62b   : > { %3834 = vst [vmem:[%s8387_s10 + $0x140] sm:$0xff] %v3770_v34  ;;  %3835 = vst [vmem:[%s8387_s10 + $0x148] sm:$0xff] %v3771_v17 }
 0x62c   : > { %3836 = vst [vmem:[%s8387_s10 + $0x150] sm:$0xff] %v3772_v25  ;;  %3837 = vst [vmem:[%s8387_s10 + $0x158] sm:$0xff] %v3773_v43 }
 0x63c   : > { %v3661_v6 = vpop.xlane.xlu0 %3660 }
 0x63d   : > { %4626 = vlog2.f32 %v3661_v6 }
 0x647   : > { %v4627_v31 = vpop.eup %4626 }
 0x648   : > { %v3705_v48 = vmul.f32 0.6931472, %v4627_v31 }
 0x64a   : > { %v3725_v40 = vadd.f32 %v3705_v48, %v8324_v45 }
 0x64c   : > { %v3774_v15 = vsub.f32 %v8102_v4, %v3725_v40  ;;  %v3775_v37 = vsub.f32 %v9037_v7, %v3725_v40  ;;  %v3776_v28 = vsub.f32 %v9038_v51, %v3725_v40  ;;  %v3777_v33 = vsub.f32 %v9039_v38, %v3725_v40 }
 0x64e   : > { %3838 = vst [vmem:[%s8387_s10 + $0x160] sm:$0xff] %v3774_v15  ;;  %3839 = vst [vmem:[%s8387_s10 + $0x168] sm:$0xff] %v3775_v37 }
 0x64f   : > { %3840 = vst [vmem:[%s8387_s10 + $0x170] sm:$0xff] %v3776_v28  ;;  %3841 = vst [vmem:[%s8387_s10 + $0x178] sm:$0xff] %v3777_v33 }
 0x65f   : > { %v3666_v47 = vpop.xlane.xlu1 %3665 }
 0x660   : > { %4628 = vlog2.f32 %v3666_v47 }
 0x663   : > { %v3671_v10 = vpop.xlane.xlu0 %3670 }
 0x664   : > { %4630 = vlog2.f32 %v3671_v10 }
 0x66a   : > { %v4629_v45 = vpop.eup %4628 }
 0x66b   : > { %v3707_v4 = vmul.f32 0.6931472, %v4629_v45 }
 0x66d   : > { %v3726_v7 = vadd.f32 %v3707_v4, %v8334_v49 }
 0x66e   : > { %v4631_v51 = vpop.eup %4630 }
 0x66f   : > { %v3778_v38 = vsub.f32 %v9040_v63, %v3726_v7  ;;  %v3779_v35 = vsub.f32 %v9041_v21, %v3726_v7  ;;  %v3780_v46 = vsub.f32 %v8129_v44, %v3726_v7  ;;  %v3781_v2 = vsub.f32 %v8138_v41, %v3726_v7 }
 0x670   : > { %v3709_v57 = vmul.f32 0.6931472, %v4631_v51 }
 0x671   : > { %3842 = vst [vmem:[%s8387_s10 + $0x180] sm:$0xff] %v3778_v38  ;;  %3843 = vst [vmem:[%s8387_s10 + $0x188] sm:$0xff] %v3779_v35 }
 0x672   : > { %3844 = vst [vmem:[%s8387_s10 + $0x190] sm:$0xff] %v3780_v46  ;;  %3845 = vst [vmem:[%s8387_s10 + $0x198] sm:$0xff] %v3781_v2  ;;  %v3727_v49 = vadd.f32 %v3709_v57, %v8344_v62 }
 0x674   : > { %v3782_v27 = vsub.f32 %v8126_v26, %v3727_v49  ;;  %v3783_v36 = vsub.f32 %v9042_v18, %v3727_v49  ;;  %v3784_v63 = vsub.f32 %v9043_v11, %v3727_v49  ;;  %v3785_v21 = vsub.f32 %v9044_v54, %v3727_v49 }
 0x676   : > { %3846 = vst [vmem:[%s8387_s10 + $0x1a0] sm:$0xff] %v3782_v27  ;;  %3847 = vst [vmem:[%s8387_s10 + $0x1a8] sm:$0xff] %v3783_v36 }
 0x677   : > { %3848 = vst [vmem:[%s8387_s10 + $0x1b0] sm:$0xff] %v3784_v63  ;;  %3849 = vst [vmem:[%s8387_s10 + $0x1b8] sm:$0xff] %v3785_v21 }
 0x68f   : > { %v3676_v41 = vpop.xlane.xlu1 %3675 }
 0x690   : > { %4632 = vlog2.f32 %v3676_v41 }
 0x699   : > { %v3681_v26 = vpop.xlane.xlu0 %3680 }
 0x69a   : > { %v4633_v44 = vpop.eup %4632  ;;  %4634 = vlog2.f32 %v3681_v26 }
 0x69b   : > { %v3711_v62 = vmul.f32 0.6931472, %v4633_v44 }
 0x69d   : > { %v3728_v18 = vadd.f32 %v3711_v62, %v8354_v55 }
 0x69f   : > { %v3786_v11 = vsub.f32 %v8234_v56, %v3728_v18  ;;  %v3787_v54 = vsub.f32 %v8241_v1, %v3728_v18  ;;  %v3788_v19 = vsub.f32 %v8254_v58, %v3728_v18  ;;  %v3789_v3 = vsub.f32 %v8267_v22, %v3728_v18 }
 0x6a1   : > { %3850 = vst [vmem:[%s8387_s10 + $0x1c0] sm:$0xff] %v3786_v11  ;;  %3851 = vst [vmem:[%s8387_s10 + $0x1c8] sm:$0xff] %v3787_v54 }
 0x6a2   : > { %3852 = vst [vmem:[%s8387_s10 + $0x1d0] sm:$0xff] %v3788_v19  ;;  %3853 = vst [vmem:[%s8387_s10 + $0x1d8] sm:$0xff] %v3789_v3 }
 0x6a4   : > { %v4635_v42 = vpop.eup %4634 }
 0x6a5   : > { %v3713_v52 = vmul.f32 0.6931472, %v4635_v42 }
 0x6a7   : > { %v3729_v56 = vadd.f32 %v3713_v52, %v8364_v20 }
 0x6a9   : > { %v3790_v1 = vsub.f32 %v8282_v13, %v3729_v56  ;;  %v3791_v58 = vsub.f32 %v8288_v5, %v3729_v56  ;;  %v3792_v22 = vsub.f32 %v8291_v39, %v3729_v56  ;;  %v3793_v55 = vsub.f32 %v8301_v8, %v3729_v56 }
 0x6ab   : > { %3854 = vst [vmem:[%s8387_s10 + $0x1e0] sm:$0xff] %v3790_v1  ;;  %3855 = vst [vmem:[%s8387_s10 + $0x1e8] sm:$0xff] %v3791_v58 }
 0x6ac   : > { %3856 = vst [vmem:[%s8387_s10 + $0x1f0] sm:$0xff] %v3792_v22  ;;  %3857 = vst [vmem:[%s8387_s10 + $0x1f8] sm:$0xff] %v3793_v55 }
 0x6ad   : > { %4724 = shalt.err (!%p4721_p11)
}
 0x6ae   : > { %s4725_s6 = scalar_lea.hbm %s8520_s14, 8192  ;;  %s4729_s5 = scalar_lea.hbm %s8579_s4, 16384 }
 0x6af   : > { %p4726_p13 = scmp.ne.s32.totalorder %s8520_s14, %s4725_s6  ;;  %p4730_p6 = scmp.lt.u32.totalorder %s8520_s14, %s8579_s4 }
 0x6b0   : > { %p4731_p9 = scmp.lt.u32.totalorder %s4729_s5, %s4725_s6  ;;  %p4733_p10 = scmp.lt.u32.totalorder %s4725_s6, %s8520_s14 }
 0x6b1   : > { %p4727_p0 = pnand %p4726_p13, %p9084_p1 }
 0x6b2   : > { %p4732_p12 = por %p4731_p9, %p4730_p6 }
 0x6b3   : > { %p4728_p5 = pneg %p4727_p0 }
 0x6b4   : > { %p4734_p2 = por %p4733_p10, %p4732_p12 }
 0x6b6   : > { %p4735_p3 = pnand %p4734_p2, %p4728_p5 }
 0x6b8   : > { %4738 = shalt.err (!%p4735_p3)
}
 0x6b9   : > { %s4799_s9 = smov 512   ;;  %s4800_s10 = smov 32  }
 0x6ba   : > { %4288 = dma.vmem_to_hbm [thread:$0]  (%p9084_p1), %s8522_s12, 8192, %s8520_s14, %s8534_s19, %s4799_s9, %s4799_s9, %s4800_s10  }
 0x6bb PF: > { %p4305_p4 = scmp.ge.s32.totalorder %s4781_s18, 2  ;;  %s3888_s11 = sand.u32 1, %s4769_s15  }
 0x6bc   : > { %p9085_p7 = scmp.ne.s32.totalorder %s8766_s26, 0  ;;  %s3889_s29 = scalar_lea.sflag [#allocation4], %s3888_s11 }
 0x6be   : > { %p4298_p8 = pnand %p4305_p4, %p9085_p7 }
 0x6c0   : > { %4764 = dma.done.wait (!%p4298_p8), %s3889_s29, 8192  }
 0x6c1   : > { %4766 = vsyncadd (!%p4298_p8), %s3889_s29, 4294959104  ;;  %p16_p11 = scmp.ge.s32.totalorder %s4851_s21, 4   ;;  %s9086_s15 = smov %s4773_s16 }
 0x6c2   : > { %s9087_s16 = smov %s4777_s17  ;;  %s9088_s17 = smov %s4862_s24 }
 0x6c3   : > { %s9089_s18 = smov %s4851_s21  ;;  %18 = sbr.rel (!%p16_p11) target bundleno = 5 (0x5), region = 80 }
 0x6ca   :  { %3894 = vsyncpa [#allocation3], 1 }
 0x6cb   :  { %3896 = vsyncpa [#allocation3 + $0x1], 1 }
 0x6cc   :  { %3897 = vsyncpa [#allocation6], 1 }
 0x6cd   :  { %3898 = vsyncpa [#allocation4], 1 }
 0x6ce   :  { %3900 = vsyncpa [#allocation4 + $0x1], 1 }

</bundles_post_ra>
